<compile_context>
chip_gen: v7x
topology: tpu7x:2x2x1
jax: 0.10.0
libtpu: 0.0.40
codegen_flags: <defaults>
</compile_context>

<pallas_src>
import functools
import math

import jax
import jax.numpy as jnp
from jax.experimental import pallas as pl
from jax.experimental.pallas import tpu as pltpu


# ----------------------------------------------------------------------------
# Fused kernel: self-attn + LN1 -> cross-attn + LN2 -> FFN + LN3
# ----------------------------------------------------------------------------
def _decoder_layer_kernel(
    # --- inputs ---------------------------------------------------------------
    tgt_ref,    # (1, St, D)  full tgt sequence (q tiles + self-attn K/V source), bf16
    mem_ref,    # (1, Sm, D)  full memory sequence (cross-attn K/V source), bf16
    sa_wq, sa_bq, sa_wk, sa_bk, sa_wv, sa_bv, sa_wo, sa_bo, ln1_g, ln1_b,
    ca_wq, ca_bq, ca_wk, ca_bk, ca_wv, ca_bv, ca_wo, ca_bo, ln2_g, ln2_b,
    ff_w1, ff_b1, ff_w2, ff_b2, ln3_g, ln3_b,
    # --- outputs --------------------------------------------------------------
    o_ref,      # (1, Tq, D)
    # --- scratch (persists across grid steps) ----------------------------------
    k_self, v_self, k_cross, v_cross,   # (nhead, S, dh) bf16, head-major
    ctx_buf,                            # (Tq, D) bf16 per-tile attention context
    *, nhead: int, q_block: int, eps: float, compute_dtype,
):
    cdt = compute_dtype
    f32 = jnp.float32
    D = tgt_ref.shape[2]
    dh = D // nhead

    tgt_seq = tgt_ref.at[0]   # (St, D) ref view (no copy)
    mem_seq = mem_ref.at[0]   # (Sm, D) ref view

    def project(src, w_ref, b_ref):
        # bf16 MXU matmul with f32 accumulation; bias added in f32.
        return jnp.dot(src.astype(cdt), w_ref[...],
                       preferred_element_type=f32) + b_ref[...]

    # K/V depend only on the full tgt / memory sequences, not on the query tile:
    # project once per batch row (first q-tile) into persistent head-major bf16 scratch.
    @pl.when(pl.program_id(1) == 0)
    def _():
        k_s = project(tgt_seq[...], sa_wk, sa_bk)     # (St, D) f32
        v_s = project(tgt_seq[...], sa_wv, sa_bv)
        k_c = project(mem_seq[...], ca_wk, ca_bk)     # (Sm, D) f32
        v_c = project(mem_seq[...], ca_wv, ca_bv)
        for h in range(nhead):                        # static unroll, once per row
            lo = h * dh
            k_self[h] = k_s[:, lo:lo + dh].astype(cdt)
            v_self[h] = v_s[:, lo:lo + dh].astype(cdt)
            k_cross[h] = k_c[:, lo:lo + dh].astype(cdt)
            v_cross[h] = v_c[:, lo:lo + dh].astype(cdt)

    def attend(xq, k_heads, v_heads, wq_ref, bq_ref, wo_ref, bo_ref):
        # 1/sqrt(dh) is already folded into wq / bq at parameter-prep time; cast q once.
        q = project(xq, wq_ref, bq_ref).astype(cdt)                    # (Tq, D)
        for h in range(nhead):                                         # static unroll
            lo = h * dh
            # contract q's last dim against k's last dim: no explicit transpose (no XLU).
            s = jax.lax.dot_general(q[:, lo:lo + dh], k_heads[h],
                                    (((1,), (1,)), ((), ())),
                                    preferred_element_type=f32)        # (Tq, Sk)
            m = jnp.max(s, axis=-1, keepdims=True)
            p = jnp.exp(s - m)
            denom = jnp.sum(p, axis=-1, keepdims=True)
            p = p * pl.reciprocal(denom, approx=True)                  # divide on EUP
            ctx = jnp.dot(p.astype(cdt), v_heads[h],
                          preferred_element_type=f32)                  # (Tq, dh)
            ctx_buf[:, lo:lo + dh] = ctx.astype(cdt)
        # ONE D-deep W_O matmul over all heads (full MXU depth), no per-head f32 adds.
        return jnp.dot(ctx_buf[...], wo_ref[...],
                       preferred_element_type=f32) + bo_ref[...]

    def layer_norm(y, g_ref, b_ref):
        mean = jnp.mean(y, axis=-1, keepdims=True)
        c = y - mean
        var = jnp.mean(c * c, axis=-1, keepdims=True)
        return c * jax.lax.rsqrt(var + eps) * g_ref[...] + b_ref[...]

    # Query tile sliced from the already-resident full-tgt block (no duplicate DMA stream).
    q_start = pl.multiple_of(pl.program_id(1) * q_block, q_block)
    x = tgt_seq[pl.ds(q_start, q_block), :].astype(f32)                # (Tq, D) f32 residual

    # Stage 1: self-attention + residual + LayerNorm1 (post-norm)
    x = layer_norm(x + attend(x, k_self, v_self, sa_wq, sa_bq, sa_wo, sa_bo),
                   ln1_g, ln1_b)
    # Stage 2: cross-attention + residual + LayerNorm2
    x = layer_norm(x + attend(x, k_cross, v_cross, ca_wq, ca_bq, ca_wo, ca_bo),
                   ln2_g, ln2_b)
    # Stage 3: feed-forward (linear1 -> ReLU -> linear2) + residual + LayerNorm3
    hid = jnp.maximum(project(x, ff_w1, ff_b1), 0.0)
    x = layer_norm(x + project(hid, ff_w2, ff_b2), ln3_g, ln3_b)

    o_ref[0] = x.astype(o_ref.dtype)


# ----------------------------------------------------------------------------
# Wrapper
# ----------------------------------------------------------------------------
def _tpu_vmem_capacity_bytes():
    try:
        return int(pltpu.get_tpu_info().vmem_capacity_bytes)
    except Exception:
        return 64 * 1024 * 1024   # conservative fallback (v7x per-TC size)


def _const_spec(a):
    zeros = (0,) * a.ndim
    # Weight/bias blocks never change index -> single-buffered residency (default
    # double-buffering would 2x resident-weight VMEM for nothing).
    return pl.BlockSpec(a.shape, lambda b, qi, _z=zeros: _z,
                        pipeline_mode=pl.Buffered(1))


def _pick_q_block(seq_len, target):
    if seq_len <= target:
        return seq_len
    for t in range(target, 7, -1):
        if seq_len % t == 0 and t % 8 == 0:
            return t
    return seq_len


def _prepare_params(params, nhead, compute_dtype):
    """Flatten params into kernel-operand order, fold 1/sqrt(dh) into Wq/bq and cast
    matmul weights to the MXU compute dtype (biases / LN params stay f32)."""
    D = params["self_attn"]["wq"].shape[0]
    scale = 1.0 / math.sqrt(D // nhead)
    f32 = jnp.float32

    def attn(p):
        return [
            (p["wq"] * scale).astype(compute_dtype), (p["bq"] * scale).astype(f32),
            p["wk"].astype(compute_dtype), p["bk"].astype(f32),
            p["wv"].astype(compute_dtype), p["bv"].astype(f32),
            p["wo"].astype(compute_dtype), p["bo"].astype(f32),
        ]

    def ln(l):
        return [l["gamma"].astype(f32), l["beta"].astype(f32)]

    return (attn(params["self_attn"]) + ln(params["ln1"])
            + attn(params["cross_attn"]) + ln(params["ln2"])
            + [params["ffn"]["w1"].astype(compute_dtype), params["ffn"]["b1"].astype(f32),
               params["ffn"]["w2"].astype(compute_dtype), params["ffn"]["b2"].astype(f32)]
            + ln(params["ln3"]))


def transformer_decoder_layer(tgt, memory, params, *, nhead, eps=1e-5,
                              q_block=None, compute_dtype=jnp.bfloat16):
    """norm_first=False path:
       x = norm1(x + SelfAttn(x)); x = norm2(x + CrossAttn(x, mem)); x = norm3(x + FFN(x))
       (all dropouts are identity at inference)."""
    B, St, D = tgt.shape
    Bm, Sm, Dm = memory.shape
    assert Bm == B and Dm == D and D % nhead == 0
    dh = D // nhead
    dim_ff = params["ffn"]["w1"].shape[1]

    vmem_cap = _tpu_vmem_capacity_bytes()
    if q_block is None:
        # Bigger q tiles when VMEM is plentiful (v5e/v6e: 128 MiB); smaller on v7x (64 MiB).
        target = 512 if vmem_cap >= 96 * 1024 * 1024 else 256
        q_block = _pick_q_block(St, target)
    assert St % q_block == 0, "q_block must divide the target sequence length"

    kp = _prepare_params(params, nhead, compute_dtype)
    kernel = functools.partial(_decoder_layer_kernel, nhead=nhead, q_block=q_block,
                               eps=eps, compute_dtype=compute_dtype)

    # Stream the two big operands in bf16: halves HBM traffic + resident VMEM blocks.
    tgt_c = tgt.astype(compute_dtype)
    mem_c = memory.astype(compute_dtype)

    in_specs = [
        pl.BlockSpec((1, St, D), lambda b, qi: (b, 0, 0)),   # full tgt (q tiles + self K/V)
        pl.BlockSpec((1, Sm, D), lambda b, qi: (b, 0, 0)),   # full memory (cross K/V)
    ] + [_const_spec(a) for a in kp]

    itemsize = jnp.dtype(compute_dtype).itemsize
    flops = 2 * B * (St * 4 * D * D              # self-attn q/k/v/o projections
                     + 2 * St * St * D           # self-attn scores + PV
                     + (St + Sm) * 2 * D * D     # cross-attn q/o (St) + k/v (Sm) projections
                     + 2 * St * Sm * D           # cross-attn scores + PV
                     + 2 * St * D * dim_ff)      # FFN
    cost = pl.CostEstimate(
        flops=int(flops),
        transcendentals=int(B * St * (St + Sm)),            # softmax exp count
        bytes_accessed=int(B * (St + Sm) * D * itemsize
                           + B * St * D * jnp.dtype(tgt.dtype).itemsize
                           + sum(a.size * a.dtype.itemsize for a in kp)),
    )

    return pl.pallas_call(
        kernel,
        out_shape=jax.ShapeDtypeStruct((B, St, D), tgt.dtype),
        grid=(B, St // q_block),
        in_specs=in_specs,
        out_specs=pl.BlockSpec((1, q_block, D), lambda b, qi: (b, qi, 0)),
        scratch_shapes=[
            pltpu.VMEM((nhead, St, dh), compute_dtype),   # self-attn K (head-major, bf16)
            pltpu.VMEM((nhead, St, dh), compute_dtype),   # self-attn V
            pltpu.VMEM((nhead, Sm, dh), compute_dtype),   # cross-attn K
            pltpu.VMEM((nhead, Sm, dh), compute_dtype),   # cross-attn V
            pltpu.VMEM((q_block, D), compute_dtype),      # per-tile attention context
        ],
        compiler_params=pltpu.CompilerParams(
            # batch axis parallel (megacore sharding); q-tile axis arbitrary so the K/V
            # scratch written at qi==0 stays valid for later tiles of the same batch row.
            dimension_semantics=("parallel", "arbitrary"),
            vmem_limit_bytes=int(vmem_cap * 7 // 8),      # per-generation, with headroom
        ),
        cost_estimate=cost,
    )(tgt_c, mem_c, *kp)


# ----------------------------------------------------------------------------
# Deterministic parameter init + pure-JAX reference (mirrors the bf16 MXU casts)
# ----------------------------------------------------------------------------
def init_params(key, d_model, dim_feedforward):
    def lin(k, fan_in, fan_out):
        kw, kb = jax.random.split(k)
        w = jax.random.normal(kw, (fan_in, fan_out), jnp.float32) * 0.05
        b = jax.random.normal(kb, (1, fan_out), jnp.float32) * 0.05
        return w, b

    keys = jax.random.split(key, 10)
    sa_wq, sa_bq = lin(keys[0], d_model, d_model)
    sa_wk, sa_bk = lin(keys[1], d_model, d_model)
    sa_wv, sa_bv = lin(keys[2], d_model, d_model)
    sa_wo, sa_bo = lin(keys[3], d_model, d_model)
    ca_wq, ca_bq = lin(keys[4], d_model, d_model)
    ca_wk, ca_bk = lin(keys[5], d_model, d_model)
    ca_wv, ca_bv = lin(keys[6], d_model, d_model)
    ca_wo, ca_bo = lin(keys[7], d_model, d_model)
    w1, b1 = lin(keys[8], d_model, dim_feedforward)
    w2, b2 = lin(keys[9], dim_feedforward, d_model)

    ln = lambda: {"gamma": jnp.ones((1, d_model), jnp.float32),
                  "beta": jnp.zeros((1, d_model), jnp.float32)}
    return {
        "self_attn": {"wq": sa_wq, "bq": sa_bq, "wk": sa_wk, "bk": sa_bk,
                      "wv": sa_wv, "bv": sa_bv, "wo": sa_wo, "bo": sa_bo},
        "cross_attn": {"wq": ca_wq, "bq": ca_bq, "wk": ca_wk, "bk": ca_bk,
                       "wv": ca_wv, "bv": ca_bv, "wo": ca_wo, "bo": ca_bo},
        "ffn": {"w1": w1, "b1": b1, "w2": w2, "b2": b2},
        "ln1": ln(), "ln2": ln(), "ln3": ln(),
    }


def _mm(a, w, cdt):
    return jnp.dot(a.astype(cdt), w.astype(cdt), preferred_element_type=jnp.float32)


def _ref_mha(x, kv, p, nhead, cdt):
    B, Sq, D = x.shape
    dh = D // nhead
    # Mirror the kernel's scale folding (mathematically identical to scores/sqrt(dh)).
    scale = 1.0 / math.sqrt(dh)
    q = _mm(x, p["wq"] * scale, cdt) + p["bq"] * scale
    k = _mm(kv, p["wk"], cdt) + p["bk"]
    v = _mm(kv, p["wv"], cdt) + p["bv"]

    def split(t):
        return t.reshape(B, -1, nhead, dh).transpose(0, 2, 1, 3)

    qh, kh, vh = split(q), split(k), split(v)
    scores = jnp.einsum("bhqd,bhkd->bhqk", qh.astype(cdt), kh.astype(cdt),
                        preferred_element_type=jnp.float32)
    probs = jax.nn.softmax(scores, axis=-1)
    out = jnp.einsum("bhqk,bhkd->bhqd", probs.astype(cdt), vh.astype(cdt),
                     preferred_element_type=jnp.float32)
    out = out.transpose(0, 2, 1, 3).reshape(B, Sq, D)
    return _mm(out, p["wo"], cdt) + p["bo"]


def _ref_ln(x, ln, eps):
    mean = x.mean(-1, keepdims=True)
    var = ((x - mean) ** 2).mean(-1, keepdims=True)
    return (x - mean) / jnp.sqrt(var + eps) * ln["gamma"] + ln["beta"]


def reference_forward(tgt, memory, params, nhead, eps=1e-5, cdt=jnp.bfloat16):
    # Mirror the kernel's boundary cast of the streaming operands to bf16.
    x = tgt.astype(cdt).astype(jnp.float32)
    mem = memory.astype(cdt).astype(jnp.float32)
    x = _ref_ln(x + _ref_mha(x, x, params["self_attn"], nhead, cdt), params["ln1"], eps)
    x = _ref_ln(x + _ref_mha(x, mem, params["cross_attn"], nhead, cdt), params["ln2"], eps)
    h = jnp.maximum(_mm(x, params["ffn"]["w1"], cdt) + params["ffn"]["b1"], 0.0)
    ff = _mm(h, params["ffn"]["w2"], cdt) + params["ffn"]["b2"]
    x = _ref_ln(x + ff, params["ln3"], eps)
    return x


# ----------------------------------------------------------------------------
# Main
# ----------------------------------------------------------------------------
if __name__ == "__main__":
    B, S_TGT, S_MEM = 2, 8, 8
    D_MODEL, NHEAD, DIM_FF = 128, 4, 256   # lane-dense demo dims (multiples of 128)

    key = jax.random.PRNGKey(0)
    k_tgt, k_mem, k_par = jax.random.split(key, 3)
    tgt = jax.random.normal(k_tgt, (B, S_TGT, D_MODEL), jnp.float32)
    memory = jax.random.normal(k_mem, (B, S_MEM, D_MODEL), jnp.float32)
    params = init_params(k_par, D_MODEL, DIM_FF)

    out = transformer_decoder_layer(tgt, memory, params, nhead=NHEAD, eps=1e-5)
    out = jax.block_until_ready(out)

    ref = reference_forward(tgt, memory, params, NHEAD, eps=1e-5)
    assert out.shape == (B, S_TGT, D_MODEL)
    # bf16 MXU operands (f32 accumulation) + EUP approx reciprocal in the kernel softmax
    # -> compare against a bf16-matmul reference with a loosened tolerance.
    assert jnp.allclose(out, ref, atol=2e-2, rtol=2e-2), "mismatch vs reference"

    print("KERNEL_OK")
</pallas_src>

<mosaic_0001>
module attributes {stable_mosaic.version = 11 : i64} {
  func.func @_decoder_layer_kernel(%arg0: i32, %arg1: i32, %arg2: memref<1x8x128xbf16, #tpu.memory_space<vmem>>, %arg3: memref<1x8x128xbf16, #tpu.memory_space<vmem>>, %arg4: memref<128x128xbf16, #tpu.memory_space<vmem>>, %arg5: memref<1x128xf32, #tpu.memory_space<vmem>>, %arg6: memref<128x128xbf16, #tpu.memory_space<vmem>>, %arg7: memref<1x128xf32, #tpu.memory_space<vmem>>, %arg8: memref<128x128xbf16, #tpu.memory_space<vmem>>, %arg9: memref<1x128xf32, #tpu.memory_space<vmem>>, %arg10: memref<128x128xbf16, #tpu.memory_space<vmem>>, %arg11: memref<1x128xf32, #tpu.memory_space<vmem>>, %arg12: memref<1x128xf32, #tpu.memory_space<vmem>>, %arg13: memref<1x128xf32, #tpu.memory_space<vmem>>, %arg14: memref<128x128xbf16, #tpu.memory_space<vmem>>, %arg15: memref<1x128xf32, #tpu.memory_space<vmem>>, %arg16: memref<128x128xbf16, #tpu.memory_space<vmem>>, %arg17: memref<1x128xf32, #tpu.memory_space<vmem>>, %arg18: memref<128x128xbf16, #tpu.memory_space<vmem>>, %arg19: memref<1x128xf32, #tpu.memory_space<vmem>>, %arg20: memref<128x128xbf16, #tpu.memory_space<vmem>>, %arg21: memref<1x128xf32, #tpu.memory_space<vmem>>, %arg22: memref<1x128xf32, #tpu.memory_space<vmem>>, %arg23: memref<1x128xf32, #tpu.memory_space<vmem>>, %arg24: memref<128x256xbf16, #tpu.memory_space<vmem>>, %arg25: memref<1x256xf32, #tpu.memory_space<vmem>>, %arg26: memref<256x128xbf16, #tpu.memory_space<vmem>>, %arg27: memref<1x128xf32, #tpu.memory_space<vmem>>, %arg28: memref<1x128xf32, #tpu.memory_space<vmem>>, %arg29: memref<1x128xf32, #tpu.memory_space<vmem>>, %arg30: memref<1x8x128xf32, #tpu.memory_space<vmem>>, %arg31: memref<4x8x32xbf16, #tpu.memory_space<vmem>>, %arg32: memref<4x8x32xbf16, #tpu.memory_space<vmem>>, %arg33: memref<4x8x32xbf16, #tpu.memory_space<vmem>>, %arg34: memref<4x8x32xbf16, #tpu.memory_space<vmem>>, %arg35: memref<8x128xbf16, #tpu.memory_space<vmem>>) attributes {dimension_semantics = [#tpu.dimension_semantics<parallel>, #tpu.dimension_semantics<arbitrary>], iteration_bounds = array<i64: 2, 1>, scalar_prefetch = 0 : i64, scratch_operands = 5 : i64, tpu.core_type = #tpu.core_type<tc>, window_params = [{transform_indices = @transform_0, window_bounds = array<i64: 1, 8, 128>}, {transform_indices = @transform_1, window_bounds = array<i64: 1, 8, 128>}, {pipeline_mode = #tpu.pipeline_mode<synchronous>, transform_indices = @transform_2, window_bounds = array<i64: 128, 128>}, {pipeline_mode = #tpu.pipeline_mode<synchronous>, transform_indices = @transform_3, window_bounds = array<i64: 1, 128>}, {pipeline_mode = #tpu.pipeline_mode<synchronous>, transform_indices = @transform_4, window_bounds = array<i64: 128, 128>}, {pipeline_mode = #tpu.pipeline_mode<synchronous>, transform_indices = @transform_5, window_bounds = array<i64: 1, 128>}, {pipeline_mode = #tpu.pipeline_mode<synchronous>, transform_indices = @transform_6, window_bounds = array<i64: 128, 128>}, {pipeline_mode = #tpu.pipeline_mode<synchronous>, transform_indices = @transform_7, window_bounds = array<i64: 1, 128>}, {pipeline_mode = #tpu.pipeline_mode<synchronous>, transform_indices = @transform_8, window_bounds = array<i64: 128, 128>}, {pipeline_mode = #tpu.pipeline_mode<synchronous>, transform_indices = @transform_9, window_bounds = array<i64: 1, 128>}, {pipeline_mode = #tpu.pipeline_mode<synchronous>, transform_indices = @transform_10, window_bounds = array<i64: 1, 128>}, {pipeline_mode = #tpu.pipeline_mode<synchronous>, transform_indices = @transform_11, window_bounds = array<i64: 1, 128>}, {pipeline_mode = #tpu.pipeline_mode<synchronous>, transform_indices = @transform_12, window_bounds = array<i64: 128, 128>}, {pipeline_mode = #tpu.pipeline_mode<synchronous>, transform_indices = @transform_13, window_bounds = array<i64: 1, 128>}, {pipeline_mode = #tpu.pipeline_mode<synchronous>, transform_indices = @transform_14, window_bounds = array<i64: 128, 128>}, {pipeline_mode = #tpu.pipeline_mode<synchronous>, transform_indices = @transform_15, window_bounds = array<i64: 1, 128>}, {pipeline_mode = #tpu.pipeline_mode<synchronous>, transform_indices = @transform_16, window_bounds = array<i64: 128, 128>}, {pipeline_mode = #tpu.pipeline_mode<synchronous>, transform_indices = @transform_17, window_bounds = array<i64: 1, 128>}, {pipeline_mode = #tpu.pipeline_mode<synchronous>, transform_indices = @transform_18, window_bounds = array<i64: 128, 128>}, {pipeline_mode = #tpu.pipeline_mode<synchronous>, transform_indices = @transform_19, window_bounds = array<i64: 1, 128>}, {pipeline_mode = #tpu.pipeline_mode<synchronous>, transform_indices = @transform_20, window_bounds = array<i64: 1, 128>}, {pipeline_mode = #tpu.pipeline_mode<synchronous>, transform_indices = @transform_21, window_bounds = array<i64: 1, 128>}, {pipeline_mode = #tpu.pipeline_mode<synchronous>, transform_indices = @transform_22, window_bounds = array<i64: 128, 256>}, {pipeline_mode = #tpu.pipeline_mode<synchronous>, transform_indices = @transform_23, window_bounds = array<i64: 1, 256>}, {pipeline_mode = #tpu.pipeline_mode<synchronous>, transform_indices = @transform_24, window_bounds = array<i64: 256, 128>}, {pipeline_mode = #tpu.pipeline_mode<synchronous>, transform_indices = @transform_25, window_bounds = array<i64: 1, 128>}, {pipeline_mode = #tpu.pipeline_mode<synchronous>, transform_indices = @transform_26, window_bounds = array<i64: 1, 128>}, {pipeline_mode = #tpu.pipeline_mode<synchronous>, transform_indices = @transform_27, window_bounds = array<i64: 1, 128>}, {transform_indices = @transform_28, window_bounds = array<i64: 1, 8, 128>}]} {
    %c0_i32 = arith.constant 0 : i32
    %0 = arith.cmpi eq, %arg1, %c0_i32 : i32
    %1 = arith.extui %0 : i1 to i32
    %c0_i32_0 = arith.constant 0 : i32
    %c0_i32_1 = arith.constant 0 : i32
    %c0_i32_2 = arith.constant 0 : i32
    %2 = arith.cmpi ne, %1, %c0_i32_2 : i32
    scf.if %2 {
      %282 = arith.index_cast %c0_i32_0 : i32 to index
      %c0_160 = arith.constant 0 : index
      %c0_161 = arith.constant 0 : index
      %283 = vector.load %arg2[%282, %c0_160, %c0_161] : memref<1x8x128xbf16, #tpu.memory_space<vmem>>, vector<1x8x128xbf16>
      %284 = vector.shape_cast %283 : vector<1x8x128xbf16> to vector<8x128xbf16>
      %c0_162 = arith.constant 0 : index
      %c0_163 = arith.constant 0 : index
      %285 = vector.load %arg6[%c0_162, %c0_163] : memref<128x128xbf16, #tpu.memory_space<vmem>>, vector<128x128xbf16>
      %cst_164 = arith.constant dense<0.000000e+00> : vector<8x128xf32>
      %286 = tpu.matmul %284, %285, %cst_164 {dimension_numbers = #tpu.dot_dimension_numbers<[1], [0], [0], [1], [0, 0, 1, 1], [], []>} : vector<8x128xbf16>, vector<128x128xbf16>, vector<8x128xf32> -> vector<8x128xf32>
      %c0_165 = arith.constant 0 : index
      %c0_166 = arith.constant 0 : index
      %287 = vector.load %arg7[%c0_165, %c0_166] : memref<1x128xf32, #tpu.memory_space<vmem>>, vector<1x128xf32>
      %288 = vector.broadcast %287 : vector<1x128xf32> to vector<8x128xf32>
      %289 = arith.addf %286, %288 : vector<8x128xf32>
      %290 = arith.index_cast %c0_i32_0 : i32 to index
      %c0_167 = arith.constant 0 : index
      %c0_168 = arith.constant 0 : index
      %291 = vector.load %arg2[%290, %c0_167, %c0_168] : memref<1x8x128xbf16, #tpu.memory_space<vmem>>, vector<1x8x128xbf16>
      %292 = vector.shape_cast %291 : vector<1x8x128xbf16> to vector<8x128xbf16>
      %c0_169 = arith.constant 0 : index
      %c0_170 = arith.constant 0 : index
      %293 = vector.load %arg8[%c0_169, %c0_170] : memref<128x128xbf16, #tpu.memory_space<vmem>>, vector<128x128xbf16>
      %cst_171 = arith.constant dense<0.000000e+00> : vector<8x128xf32>
      %294 = tpu.matmul %292, %293, %cst_171 {dimension_numbers = #tpu.dot_dimension_numbers<[1], [0], [0], [1], [0, 0, 1, 1], [], []>} : vector<8x128xbf16>, vector<128x128xbf16>, vector<8x128xf32> -> vector<8x128xf32>
      %c0_172 = arith.constant 0 : index
      %c0_173 = arith.constant 0 : index
      %295 = vector.load %arg9[%c0_172, %c0_173] : memref<1x128xf32, #tpu.memory_space<vmem>>, vector<1x128xf32>
      %296 = vector.broadcast %295 : vector<1x128xf32> to vector<8x128xf32>
      %297 = arith.addf %294, %296 : vector<8x128xf32>
      %298 = arith.index_cast %c0_i32_1 : i32 to index
      %c0_174 = arith.constant 0 : index
      %c0_175 = arith.constant 0 : index
      %299 = vector.load %arg3[%298, %c0_174, %c0_175] : memref<1x8x128xbf16, #tpu.memory_space<vmem>>, vector<1x8x128xbf16>
      %300 = vector.shape_cast %299 : vector<1x8x128xbf16> to vector<8x128xbf16>
      %c0_176 = arith.constant 0 : index
      %c0_177 = arith.constant 0 : index
      %301 = vector.load %arg16[%c0_176, %c0_177] : memref<128x128xbf16, #tpu.memory_space<vmem>>, vector<128x128xbf16>
      %cst_178 = arith.constant dense<0.000000e+00> : vector<8x128xf32>
      %302 = tpu.matmul %300, %301, %cst_178 {dimension_numbers = #tpu.dot_dimension_numbers<[1], [0], [0], [1], [0, 0, 1, 1], [], []>} : vector<8x128xbf16>, vector<128x128xbf16>, vector<8x128xf32> -> vector<8x128xf32>
      %c0_179 = arith.constant 0 : index
      %c0_180 = arith.constant 0 : index
      %303 = vector.load %arg17[%c0_179, %c0_180] : memref<1x128xf32, #tpu.memory_space<vmem>>, vector<1x128xf32>
      %304 = vector.broadcast %303 : vector<1x128xf32> to vector<8x128xf32>
      %305 = arith.addf %302, %304 : vector<8x128xf32>
      %306 = arith.index_cast %c0_i32_1 : i32 to index
      %c0_181 = arith.constant 0 : index
      %c0_182 = arith.constant 0 : index
      %307 = vector.load %arg3[%306, %c0_181, %c0_182] : memref<1x8x128xbf16, #tpu.memory_space<vmem>>, vector<1x8x128xbf16>
      %308 = vector.shape_cast %307 : vector<1x8x128xbf16> to vector<8x128xbf16>
      %c0_183 = arith.constant 0 : index
      %c0_184 = arith.constant 0 : index
      %309 = vector.load %arg18[%c0_183, %c0_184] : memref<128x128xbf16, #tpu.memory_space<vmem>>, vector<128x128xbf16>
      %cst_185 = arith.constant dense<0.000000e+00> : vector<8x128xf32>
      %310 = tpu.matmul %308, %309, %cst_185 {dimension_numbers = #tpu.dot_dimension_numbers<[1], [0], [0], [1], [0, 0, 1, 1], [], []>} : vector<8x128xbf16>, vector<128x128xbf16>, vector<8x128xf32> -> vector<8x128xf32>
      %c0_186 = arith.constant 0 : index
      %c0_187 = arith.constant 0 : index
      %311 = vector.load %arg19[%c0_186, %c0_187] : memref<1x128xf32, #tpu.memory_space<vmem>>, vector<1x128xf32>
      %312 = vector.broadcast %311 : vector<1x128xf32> to vector<8x128xf32>
      %313 = arith.addf %310, %312 : vector<8x128xf32>
      %314 = vector.extract_strided_slice %289 {offsets = [0, 0], sizes = [8, 32], strides = [1, 1]} : vector<8x128xf32> to vector<8x32xf32>
      %315 = arith.truncf %314 : vector<8x32xf32> to vector<8x32xbf16>
      %c0_188 = arith.constant 0 : index
      %c0_189 = arith.constant 0 : index
      %c0_190 = arith.constant 0 : index
      %316 = vector.load %arg31[%c0_188, %c0_189, %c0_190] : memref<4x8x32xbf16, #tpu.memory_space<vmem>>, vector<1x8x32xbf16>
      %317 = vector.shape_cast %316 : vector<1x8x32xbf16> to vector<8x32xbf16>
      %318 = vector.shape_cast %315 : vector<8x32xbf16> to vector<1x8x32xbf16>
      tpu.vector_store %arg31[%c0_188, %c0_189, %c0_190], %318 {strides = array<i32>} : memref<4x8x32xbf16, #tpu.memory_space<vmem>>, vector<1x8x32xbf16>,
      %319 = vector.extract_strided_slice %297 {offsets = [0, 0], sizes = [8, 32], strides = [1, 1]} : vector<8x128xf32> to vector<8x32xf32>
      %320 = arith.truncf %319 : vector<8x32xf32> to vector<8x32xbf16>
      %c0_191 = arith.constant 0 : index
      %c0_192 = arith.constant 0 : index
      %c0_193 = arith.constant 0 : index
      %321 = vector.load %arg32[%c0_191, %c0_192, %c0_193] : memref<4x8x32xbf16, #tpu.memory_space<vmem>>, vector<1x8x32xbf16>
      %322 = vector.shape_cast %321 : vector<1x8x32xbf16> to vector<8x32xbf16>
      %323 = vector.shape_cast %320 : vector<8x32xbf16> to vector<1x8x32xbf16>
      tpu.vector_store %arg32[%c0_191, %c0_192, %c0_193], %323 {strides = array<i32>} : memref<4x8x32xbf16, #tpu.memory_space<vmem>>, vector<1x8x32xbf16>,
      %324 = vector.extract_strided_slice %305 {offsets = [0, 0], sizes = [8, 32], strides = [1, 1]} : vector<8x128xf32> to vector<8x32xf32>
      %325 = arith.truncf %324 : vector<8x32xf32> to vector<8x32xbf16>
      %c0_194 = arith.constant 0 : index
      %c0_195 = arith.constant 0 : index
      %c0_196 = arith.constant 0 : index
      %326 = vector.load %arg33[%c0_194, %c0_195, %c0_196] : memref<4x8x32xbf16, #tpu.memory_space<vmem>>, vector<1x8x32xbf16>
      %327 = vector.shape_cast %326 : vector<1x8x32xbf16> to vector<8x32xbf16>
      %328 = vector.shape_cast %325 : vector<8x32xbf16> to vector<1x8x32xbf16>
      tpu.vector_store %arg33[%c0_194, %c0_195, %c0_196], %328 {strides = array<i32>} : memref<4x8x32xbf16, #tpu.memory_space<vmem>>, vector<1x8x32xbf16>,
      %329 = vector.extract_strided_slice %313 {offsets = [0, 0], sizes = [8, 32], strides = [1, 1]} : vector<8x128xf32> to vector<8x32xf32>
      %330 = arith.truncf %329 : vector<8x32xf32> to vector<8x32xbf16>
      %c0_197 = arith.constant 0 : index
      %c0_198 = arith.constant 0 : index
      %c0_199 = arith.constant 0 : index
      %331 = vector.load %arg34[%c0_197, %c0_198, %c0_199] : memref<4x8x32xbf16, #tpu.memory_space<vmem>>, vector<1x8x32xbf16>
      %332 = vector.shape_cast %331 : vector<1x8x32xbf16> to vector<8x32xbf16>
      %333 = vector.shape_cast %330 : vector<8x32xbf16> to vector<1x8x32xbf16>
      tpu.vector_store %arg34[%c0_197, %c0_198, %c0_199], %333 {strides = array<i32>} : memref<4x8x32xbf16, #tpu.memory_space<vmem>>, vector<1x8x32xbf16>,
      %334 = vector.extract_strided_slice %289 {offsets = [0, 32], sizes = [8, 32], strides = [1, 1]} : vector<8x128xf32> to vector<8x32xf32>
      %335 = arith.truncf %334 : vector<8x32xf32> to vector<8x32xbf16>
      %c1_200 = arith.constant 1 : index
      %c0_201 = arith.constant 0 : index
      %c0_202 = arith.constant 0 : index
      %336 = vector.load %arg31[%c1_200, %c0_201, %c0_202] : memref<4x8x32xbf16, #tpu.memory_space<vmem>>, vector<1x8x32xbf16>
      %337 = vector.shape_cast %336 : vector<1x8x32xbf16> to vector<8x32xbf16>
      %338 = vector.shape_cast %335 : vector<8x32xbf16> to vector<1x8x32xbf16>
      tpu.vector_store %arg31[%c1_200, %c0_201, %c0_202], %338 {strides = array<i32>} : memref<4x8x32xbf16, #tpu.memory_space<vmem>>, vector<1x8x32xbf16>,
      %339 = vector.extract_strided_slice %297 {offsets = [0, 32], sizes = [8, 32], strides = [1, 1]} : vector<8x128xf32> to vector<8x32xf32>
      %340 = arith.truncf %339 : vector<8x32xf32> to vector<8x32xbf16>
      %c1_203 = arith.constant 1 : index
      %c0_204 = arith.constant 0 : index
      %c0_205 = arith.constant 0 : index
      %341 = vector.load %arg32[%c1_203, %c0_204, %c0_205] : memref<4x8x32xbf16, #tpu.memory_space<vmem>>, vector<1x8x32xbf16>
      %342 = vector.shape_cast %341 : vector<1x8x32xbf16> to vector<8x32xbf16>
      %343 = vector.shape_cast %340 : vector<8x32xbf16> to vector<1x8x32xbf16>
      tpu.vector_store %arg32[%c1_203, %c0_204, %c0_205], %343 {strides = array<i32>} : memref<4x8x32xbf16, #tpu.memory_space<vmem>>, vector<1x8x32xbf16>,
      %344 = vector.extract_strided_slice %305 {offsets = [0, 32], sizes = [8, 32], strides = [1, 1]} : vector<8x128xf32> to vector<8x32xf32>
      %345 = arith.truncf %344 : vector<8x32xf32> to vector<8x32xbf16>
      %c1_206 = arith.constant 1 : index
      %c0_207 = arith.constant 0 : index
      %c0_208 = arith.constant 0 : index
      %346 = vector.load %arg33[%c1_206, %c0_207, %c0_208] : memref<4x8x32xbf16, #tpu.memory_space<vmem>>, vector<1x8x32xbf16>
      %347 = vector.shape_cast %346 : vector<1x8x32xbf16> to vector<8x32xbf16>
      %348 = vector.shape_cast %345 : vector<8x32xbf16> to vector<1x8x32xbf16>
      tpu.vector_store %arg33[%c1_206, %c0_207, %c0_208], %348 {strides = array<i32>} : memref<4x8x32xbf16, #tpu.memory_space<vmem>>, vector<1x8x32xbf16>,
      %349 = vector.extract_strided_slice %313 {offsets = [0, 32], sizes = [8, 32], strides = [1, 1]} : vector<8x128xf32> to vector<8x32xf32>
      %350 = arith.truncf %349 : vector<8x32xf32> to vector<8x32xbf16>
      %c1_209 = arith.constant 1 : index
      %c0_210 = arith.constant 0 : index
      %c0_211 = arith.constant 0 : index
      %351 = vector.load %arg34[%c1_209, %c0_210, %c0_211] : memref<4x8x32xbf16, #tpu.memory_space<vmem>>, vector<1x8x32xbf16>
      %352 = vector.shape_cast %351 : vector<1x8x32xbf16> to vector<8x32xbf16>
      %353 = vector.shape_cast %350 : vector<8x32xbf16> to vector<1x8x32xbf16>
      tpu.vector_store %arg34[%c1_209, %c0_210, %c0_211], %353 {strides = array<i32>} : memref<4x8x32xbf16, #tpu.memory_space<vmem>>, vector<1x8x32xbf16>,
      %354 = vector.extract_strided_slice %289 {offsets = [0, 64], sizes = [8, 32], strides = [1, 1]} : vector<8x128xf32> to vector<8x32xf32>
      %355 = arith.truncf %354 : vector<8x32xf32> to vector<8x32xbf16>
      %c2_212 = arith.constant 2 : index
      %c0_213 = arith.constant 0 : index
      %c0_214 = arith.constant 0 : index
      %356 = vector.load %arg31[%c2_212, %c0_213, %c0_214] : memref<4x8x32xbf16, #tpu.memory_space<vmem>>, vector<1x8x32xbf16>
      %357 = vector.shape_cast %356 : vector<1x8x32xbf16> to vector<8x32xbf16>
      %358 = vector.shape_cast %355 : vector<8x32xbf16> to vector<1x8x32xbf16>
      tpu.vector_store %arg31[%c2_212, %c0_213, %c0_214], %358 {strides = array<i32>} : memref<4x8x32xbf16, #tpu.memory_space<vmem>>, vector<1x8x32xbf16>,
      %359 = vector.extract_strided_slice %297 {offsets = [0, 64], sizes = [8, 32], strides = [1, 1]} : vector<8x128xf32> to vector<8x32xf32>
      %360 = arith.truncf %359 : vector<8x32xf32> to vector<8x32xbf16>
      %c2_215 = arith.constant 2 : index
      %c0_216 = arith.constant 0 : index
      %c0_217 = arith.constant 0 : index
      %361 = vector.load %arg32[%c2_215, %c0_216, %c0_217] : memref<4x8x32xbf16, #tpu.memory_space<vmem>>, vector<1x8x32xbf16>
      %362 = vector.shape_cast %361 : vector<1x8x32xbf16> to vector<8x32xbf16>
      %363 = vector.shape_cast %360 : vector<8x32xbf16> to vector<1x8x32xbf16>
      tpu.vector_store %arg32[%c2_215, %c0_216, %c0_217], %363 {strides = array<i32>} : memref<4x8x32xbf16, #tpu.memory_space<vmem>>, vector<1x8x32xbf16>,
      %364 = vector.extract_strided_slice %305 {offsets = [0, 64], sizes = [8, 32], strides = [1, 1]} : vector<8x128xf32> to vector<8x32xf32>
      %365 = arith.truncf %364 : vector<8x32xf32> to vector<8x32xbf16>
      %c2_218 = arith.constant 2 : index
      %c0_219 = arith.constant 0 : index
      %c0_220 = arith.constant 0 : index
      %366 = vector.load %arg33[%c2_218, %c0_219, %c0_220] : memref<4x8x32xbf16, #tpu.memory_space<vmem>>, vector<1x8x32xbf16>
      %367 = vector.shape_cast %366 : vector<1x8x32xbf16> to vector<8x32xbf16>
      %368 = vector.shape_cast %365 : vector<8x32xbf16> to vector<1x8x32xbf16>
      tpu.vector_store %arg33[%c2_218, %c0_219, %c0_220], %368 {strides = array<i32>} : memref<4x8x32xbf16, #tpu.memory_space<vmem>>, vector<1x8x32xbf16>,
      %369 = vector.extract_strided_slice %313 {offsets = [0, 64], sizes = [8, 32], strides = [1, 1]} : vector<8x128xf32> to vector<8x32xf32>
      %370 = arith.truncf %369 : vector<8x32xf32> to vector<8x32xbf16>
      %c2_221 = arith.constant 2 : index
      %c0_222 = arith.constant 0 : index
      %c0_223 = arith.constant 0 : index
      %371 = vector.load %arg34[%c2_221, %c0_222, %c0_223] : memref<4x8x32xbf16, #tpu.memory_space<vmem>>, vector<1x8x32xbf16>
      %372 = vector.shape_cast %371 : vector<1x8x32xbf16> to vector<8x32xbf16>
      %373 = vector.shape_cast %370 : vector<8x32xbf16> to vector<1x8x32xbf16>
      tpu.vector_store %arg34[%c2_221, %c0_222, %c0_223], %373 {strides = array<i32>} : memref<4x8x32xbf16, #tpu.memory_space<vmem>>, vector<1x8x32xbf16>,
      %374 = vector.extract_strided_slice %289 {offsets = [0, 96], sizes = [8, 32], strides = [1, 1]} : vector<8x128xf32> to vector<8x32xf32>
      %375 = arith.truncf %374 : vector<8x32xf32> to vector<8x32xbf16>
      %c3_224 = arith.constant 3 : index
      %c0_225 = arith.constant 0 : index
      %c0_226 = arith.constant 0 : index
      %376 = vector.load %arg31[%c3_224, %c0_225, %c0_226] : memref<4x8x32xbf16, #tpu.memory_space<vmem>>, vector<1x8x32xbf16>
      %377 = vector.shape_cast %376 : vector<1x8x32xbf16> to vector<8x32xbf16>
      %378 = vector.shape_cast %375 : vector<8x32xbf16> to vector<1x8x32xbf16>
      tpu.vector_store %arg31[%c3_224, %c0_225, %c0_226], %378 {strides = array<i32>} : memref<4x8x32xbf16, #tpu.memory_space<vmem>>, vector<1x8x32xbf16>,
      %379 = vector.extract_strided_slice %297 {offsets = [0, 96], sizes = [8, 32], strides = [1, 1]} : vector<8x128xf32> to vector<8x32xf32>
      %380 = arith.truncf %379 : vector<8x32xf32> to vector<8x32xbf16>
      %c3_227 = arith.constant 3 : index
      %c0_228 = arith.constant 0 : index
      %c0_229 = arith.constant 0 : index
      %381 = vector.load %arg32[%c3_227, %c0_228, %c0_229] : memref<4x8x32xbf16, #tpu.memory_space<vmem>>, vector<1x8x32xbf16>
      %382 = vector.shape_cast %381 : vector<1x8x32xbf16> to vector<8x32xbf16>
      %383 = vector.shape_cast %380 : vector<8x32xbf16> to vector<1x8x32xbf16>
      tpu.vector_store %arg32[%c3_227, %c0_228, %c0_229], %383 {strides = array<i32>} : memref<4x8x32xbf16, #tpu.memory_space<vmem>>, vector<1x8x32xbf16>,
      %384 = vector.extract_strided_slice %305 {offsets = [0, 96], sizes = [8, 32], strides = [1, 1]} : vector<8x128xf32> to vector<8x32xf32>
      %385 = arith.truncf %384 : vector<8x32xf32> to vector<8x32xbf16>
      %c3_230 = arith.constant 3 : index
      %c0_231 = arith.constant 0 : index
      %c0_232 = arith.constant 0 : index
      %386 = vector.load %arg33[%c3_230, %c0_231, %c0_232] : memref<4x8x32xbf16, #tpu.memory_space<vmem>>, vector<1x8x32xbf16>
      %387 = vector.shape_cast %386 : vector<1x8x32xbf16> to vector<8x32xbf16>
      %388 = vector.shape_cast %385 : vector<8x32xbf16> to vector<1x8x32xbf16>
      tpu.vector_store %arg33[%c3_230, %c0_231, %c0_232], %388 {strides = array<i32>} : memref<4x8x32xbf16, #tpu.memory_space<vmem>>, vector<1x8x32xbf16>,
      %389 = vector.extract_strided_slice %313 {offsets = [0, 96], sizes = [8, 32], strides = [1, 1]} : vector<8x128xf32> to vector<8x32xf32>
      %390 = arith.truncf %389 : vector<8x32xf32> to vector<8x32xbf16>
      %c3_233 = arith.constant 3 : index
      %c0_234 = arith.constant 0 : index
      %c0_235 = arith.constant 0 : index
      %391 = vector.load %arg34[%c3_233, %c0_234, %c0_235] : memref<4x8x32xbf16, #tpu.memory_space<vmem>>, vector<1x8x32xbf16>
      %392 = vector.shape_cast %391 : vector<1x8x32xbf16> to vector<8x32xbf16>
      %393 = vector.shape_cast %390 : vector<8x32xbf16> to vector<1x8x32xbf16>
      tpu.vector_store %arg34[%c3_233, %c0_234, %c0_235], %393 {strides = array<i32>} : memref<4x8x32xbf16, #tpu.memory_space<vmem>>, vector<1x8x32xbf16>,
    } else {
    }
    %c8_i32 = arith.constant 8 : i32
    %3 = arith.muli %arg1, %c8_i32 : i32
    %4 = tpu.assume_multiple %3, 8 : i32
    %c0_i32_3 = arith.constant 0 : i32
    %c0_i32_4 = arith.constant 0 : i32
    %c0_i32_5 = arith.constant 0 : i32
    %5 = tpu.memref_slice %arg2[%c0_i32_3, %c0_i32_4, %c0_i32_5] : memref<1x8x128xbf16, #tpu.memory_space<vmem>> -> memref<1x8x128xbf16, #tpu.memory_space<vmem>>
    %6 = tpu.memref_squeeze %5 : memref<1x8x128xbf16, #tpu.memory_space<vmem>> -> memref<8x128xbf16, #tpu.memory_space<vmem>>
    %7 = arith.index_cast %4 : i32 to index
    %c0 = arith.constant 0 : index
    %8 = vector.load %6[%7, %c0] : memref<8x128xbf16, #tpu.memory_space<vmem>>, vector<8x128xbf16>
    %9 = arith.extf %8 : vector<8x128xbf16> to vector<8x128xf32>
    %10 = arith.truncf %9 : vector<8x128xf32> to vector<8x128xbf16>
    %c0_6 = arith.constant 0 : index
    %c0_7 = arith.constant 0 : index
    %11 = vector.load %arg4[%c0_6, %c0_7] : memref<128x128xbf16, #tpu.memory_space<vmem>>, vector<128x128xbf16>
    %cst = arith.constant dense<0.000000e+00> : vector<8x128xf32>
    %12 = tpu.matmul %10, %11, %cst {dimension_numbers = #tpu.dot_dimension_numbers<[1], [0], [0], [1], [0, 0, 1, 1], [], []>} : vector<8x128xbf16>, vector<128x128xbf16>, vector<8x128xf32> -> vector<8x128xf32>
    %c0_8 = arith.constant 0 : index
    %c0_9 = arith.constant 0 : index
    %13 = vector.load %arg5[%c0_8, %c0_9] : memref<1x128xf32, #tpu.memory_space<vmem>>, vector<1x128xf32>
    %14 = vector.broadcast %13 : vector<1x128xf32> to vector<8x128xf32>
    %15 = arith.addf %12, %14 : vector<8x128xf32>
    %16 = arith.truncf %15 : vector<8x128xf32> to vector<8x128xbf16>
    %17 = vector.extract_strided_slice %16 {offsets = [0, 0], sizes = [8, 32], strides = [1, 1]} : vector<8x128xbf16> to vector<8x32xbf16>
    %c0_10 = arith.constant 0 : index
    %c0_11 = arith.constant 0 : index
    %c0_12 = arith.constant 0 : index
    %18 = vector.load %arg31[%c0_10, %c0_11, %c0_12] : memref<4x8x32xbf16, #tpu.memory_space<vmem>>, vector<1x8x32xbf16>
    %19 = vector.shape_cast %18 : vector<1x8x32xbf16> to vector<8x32xbf16>
    %cst_13 = arith.constant dense<0.000000e+00> : vector<8x8xf32>
    %20 = tpu.matmul %17, %19, %cst_13 {dimension_numbers = #tpu.dot_dimension_numbers<[1], [1], [0], [0], [0, 0, 1, 0], [], []>} : vector<8x32xbf16>, vector<8x32xbf16>, vector<8x8xf32> -> vector<8x8xf32>
    %cst_14 = arith.constant dense<0xFF800000> : vector<8xf32>
    %21 = vector.multi_reduction <maximumf>, %20, %cst_14 [1] : vector<8x8xf32> to vector<8xf32>
    %22 = vector.shape_cast %21 : vector<8xf32> to vector<8x1xf32>
    %23 = vector.broadcast %22 : vector<8x1xf32> to vector<8x8xf32>
    %24 = arith.subf %20, %23 : vector<8x8xf32>
    %25 = math.exp %24 : vector<8x8xf32>
    %cst_15 = arith.constant dense<0.000000e+00> : vector<8xf32>
    %26 = vector.multi_reduction <add>, %25, %cst_15 [1] : vector<8x8xf32> to vector<8xf32>
    %27 = vector.shape_cast %26 : vector<8xf32> to vector<8x1xf32>
    %28 = tpu.reciprocal %27 {approx = true} : vector<8x1xf32> -> vector<8x1xf32>
    %29 = vector.broadcast %28 : vector<8x1xf32> to vector<8x8xf32>
    %30 = arith.mulf %25, %29 : vector<8x8xf32>
    %31 = arith.truncf %30 : vector<8x8xf32> to vector<8x8xbf16>
    %c0_16 = arith.constant 0 : index
    %c0_17 = arith.constant 0 : index
    %c0_18 = arith.constant 0 : index
    %32 = vector.load %arg32[%c0_16, %c0_17, %c0_18] : memref<4x8x32xbf16, #tpu.memory_space<vmem>>, vector<1x8x32xbf16>
    %33 = vector.shape_cast %32 : vector<1x8x32xbf16> to vector<8x32xbf16>
    %cst_19 = arith.constant dense<0.000000e+00> : vector<8x32xf32>
    %34 = tpu.matmul %31, %33, %cst_19 {dimension_numbers = #tpu.dot_dimension_numbers<[1], [0], [0], [1], [0, 0, 1, 1], [], []>} : vector<8x8xbf16>, vector<8x32xbf16>, vector<8x32xf32> -> vector<8x32xf32>
    %35 = arith.truncf %34 : vector<8x32xf32> to vector<8x32xbf16>
    %c0_20 = arith.constant 0 : index
    %c0_21 = arith.constant 0 : index
    %36 = vector.load %arg35[%c0_20, %c0_21] : memref<8x128xbf16, #tpu.memory_space<vmem>>, vector<8x32xbf16>
    tpu.vector_store %arg35[%c0_20, %c0_21], %35 {strides = array<i32>} : memref<8x128xbf16, #tpu.memory_space<vmem>>, vector<8x32xbf16>,
    %37 = vector.extract_strided_slice %16 {offsets = [0, 32], sizes = [8, 32], strides = [1, 1]} : vector<8x128xbf16> to vector<8x32xbf16>
    %c1 = arith.constant 1 : index
    %c0_22 = arith.constant 0 : index
    %c0_23 = arith.constant 0 : index
    %38 = vector.load %arg31[%c1, %c0_22, %c0_23] : memref<4x8x32xbf16, #tpu.memory_space<vmem>>, vector<1x8x32xbf16>
    %39 = vector.shape_cast %38 : vector<1x8x32xbf16> to vector<8x32xbf16>
    %cst_24 = arith.constant dense<0.000000e+00> : vector<8x8xf32>
    %40 = tpu.matmul %37, %39, %cst_24 {dimension_numbers = #tpu.dot_dimension_numbers<[1], [1], [0], [0], [0, 0, 1, 0], [], []>} : vector<8x32xbf16>, vector<8x32xbf16>, vector<8x8xf32> -> vector<8x8xf32>
    %cst_25 = arith.constant dense<0xFF800000> : vector<8xf32>
    %41 = vector.multi_reduction <maximumf>, %40, %cst_25 [1] : vector<8x8xf32> to vector<8xf32>
    %42 = vector.shape_cast %41 : vector<8xf32> to vector<8x1xf32>
    %43 = vector.broadcast %42 : vector<8x1xf32> to vector<8x8xf32>
    %44 = arith.subf %40, %43 : vector<8x8xf32>
    %45 = math.exp %44 : vector<8x8xf32>
    %cst_26 = arith.constant dense<0.000000e+00> : vector<8xf32>
    %46 = vector.multi_reduction <add>, %45, %cst_26 [1] : vector<8x8xf32> to vector<8xf32>
    %47 = vector.shape_cast %46 : vector<8xf32> to vector<8x1xf32>
    %48 = tpu.reciprocal %47 {approx = true} : vector<8x1xf32> -> vector<8x1xf32>
    %49 = vector.broadcast %48 : vector<8x1xf32> to vector<8x8xf32>
    %50 = arith.mulf %45, %49 : vector<8x8xf32>
    %51 = arith.truncf %50 : vector<8x8xf32> to vector<8x8xbf16>
    %c1_27 = arith.constant 1 : index
    %c0_28 = arith.constant 0 : index
    %c0_29 = arith.constant 0 : index
    %52 = vector.load %arg32[%c1_27, %c0_28, %c0_29] : memref<4x8x32xbf16, #tpu.memory_space<vmem>>, vector<1x8x32xbf16>
    %53 = vector.shape_cast %52 : vector<1x8x32xbf16> to vector<8x32xbf16>
    %cst_30 = arith.constant dense<0.000000e+00> : vector<8x32xf32>
    %54 = tpu.matmul %51, %53, %cst_30 {dimension_numbers = #tpu.dot_dimension_numbers<[1], [0], [0], [1], [0, 0, 1, 1], [], []>} : vector<8x8xbf16>, vector<8x32xbf16>, vector<8x32xf32> -> vector<8x32xf32>
    %55 = arith.truncf %54 : vector<8x32xf32> to vector<8x32xbf16>
    %c0_31 = arith.constant 0 : index
    %c32 = arith.constant 32 : index
    %56 = vector.load %arg35[%c0_31, %c32] : memref<8x128xbf16, #tpu.memory_space<vmem>>, vector<8x32xbf16>
    tpu.vector_store %arg35[%c0_31, %c32], %55 {strides = array<i32>} : memref<8x128xbf16, #tpu.memory_space<vmem>>, vector<8x32xbf16>,
    %57 = vector.extract_strided_slice %16 {offsets = [0, 64], sizes = [8, 32], strides = [1, 1]} : vector<8x128xbf16> to vector<8x32xbf16>
    %c2 = arith.constant 2 : index
    %c0_32 = arith.constant 0 : index
    %c0_33 = arith.constant 0 : index
    %58 = vector.load %arg31[%c2, %c0_32, %c0_33] : memref<4x8x32xbf16, #tpu.memory_space<vmem>>, vector<1x8x32xbf16>
    %59 = vector.shape_cast %58 : vector<1x8x32xbf16> to vector<8x32xbf16>
    %cst_34 = arith.constant dense<0.000000e+00> : vector<8x8xf32>
    %60 = tpu.matmul %57, %59, %cst_34 {dimension_numbers = #tpu.dot_dimension_numbers<[1], [1], [0], [0], [0, 0, 1, 0], [], []>} : vector<8x32xbf16>, vector<8x32xbf16>, vector<8x8xf32> -> vector<8x8xf32>
    %cst_35 = arith.constant dense<0xFF800000> : vector<8xf32>
    %61 = vector.multi_reduction <maximumf>, %60, %cst_35 [1] : vector<8x8xf32> to vector<8xf32>
    %62 = vector.shape_cast %61 : vector<8xf32> to vector<8x1xf32>
    %63 = vector.broadcast %62 : vector<8x1xf32> to vector<8x8xf32>
    %64 = arith.subf %60, %63 : vector<8x8xf32>
    %65 = math.exp %64 : vector<8x8xf32>
    %cst_36 = arith.constant dense<0.000000e+00> : vector<8xf32>
    %66 = vector.multi_reduction <add>, %65, %cst_36 [1] : vector<8x8xf32> to vector<8xf32>
    %67 = vector.shape_cast %66 : vector<8xf32> to vector<8x1xf32>
    %68 = tpu.reciprocal %67 {approx = true} : vector<8x1xf32> -> vector<8x1xf32>
    %69 = vector.broadcast %68 : vector<8x1xf32> to vector<8x8xf32>
    %70 = arith.mulf %65, %69 : vector<8x8xf32>
    %71 = arith.truncf %70 : vector<8x8xf32> to vector<8x8xbf16>
    %c2_37 = arith.constant 2 : index
    %c0_38 = arith.constant 0 : index
    %c0_39 = arith.constant 0 : index
    %72 = vector.load %arg32[%c2_37, %c0_38, %c0_39] : memref<4x8x32xbf16, #tpu.memory_space<vmem>>, vector<1x8x32xbf16>
    %73 = vector.shape_cast %72 : vector<1x8x32xbf16> to vector<8x32xbf16>
    %cst_40 = arith.constant dense<0.000000e+00> : vector<8x32xf32>
    %74 = tpu.matmul %71, %73, %cst_40 {dimension_numbers = #tpu.dot_dimension_numbers<[1], [0], [0], [1], [0, 0, 1, 1], [], []>} : vector<8x8xbf16>, vector<8x32xbf16>, vector<8x32xf32> -> vector<8x32xf32>
    %75 = arith.truncf %74 : vector<8x32xf32> to vector<8x32xbf16>
    %c0_41 = arith.constant 0 : index
    %c64 = arith.constant 64 : index
    %76 = vector.load %arg35[%c0_41, %c64] : memref<8x128xbf16, #tpu.memory_space<vmem>>, vector<8x32xbf16>
    tpu.vector_store %arg35[%c0_41, %c64], %75 {strides = array<i32>} : memref<8x128xbf16, #tpu.memory_space<vmem>>, vector<8x32xbf16>,
    %77 = vector.extract_strided_slice %16 {offsets = [0, 96], sizes = [8, 32], strides = [1, 1]} : vector<8x128xbf16> to vector<8x32xbf16>
    %c3 = arith.constant 3 : index
    %c0_42 = arith.constant 0 : index
    %c0_43 = arith.constant 0 : index
    %78 = vector.load %arg31[%c3, %c0_42, %c0_43] : memref<4x8x32xbf16, #tpu.memory_space<vmem>>, vector<1x8x32xbf16>
    %79 = vector.shape_cast %78 : vector<1x8x32xbf16> to vector<8x32xbf16>
    %cst_44 = arith.constant dense<0.000000e+00> : vector<8x8xf32>
    %80 = tpu.matmul %77, %79, %cst_44 {dimension_numbers = #tpu.dot_dimension_numbers<[1], [1], [0], [0], [0, 0, 1, 0], [], []>} : vector<8x32xbf16>, vector<8x32xbf16>, vector<8x8xf32> -> vector<8x8xf32>
    %cst_45 = arith.constant dense<0xFF800000> : vector<8xf32>
    %81 = vector.multi_reduction <maximumf>, %80, %cst_45 [1] : vector<8x8xf32> to vector<8xf32>
    %82 = vector.shape_cast %81 : vector<8xf32> to vector<8x1xf32>
    %83 = vector.broadcast %82 : vector<8x1xf32> to vector<8x8xf32>
    %84 = arith.subf %80, %83 : vector<8x8xf32>
    %85 = math.exp %84 : vector<8x8xf32>
    %cst_46 = arith.constant dense<0.000000e+00> : vector<8xf32>
    %86 = vector.multi_reduction <add>, %85, %cst_46 [1] : vector<8x8xf32> to vector<8xf32>
    %87 = vector.shape_cast %86 : vector<8xf32> to vector<8x1xf32>
    %88 = tpu.reciprocal %87 {approx = true} : vector<8x1xf32> -> vector<8x1xf32>
    %89 = vector.broadcast %88 : vector<8x1xf32> to vector<8x8xf32>
    %90 = arith.mulf %85, %89 : vector<8x8xf32>
    %91 = arith.truncf %90 : vector<8x8xf32> to vector<8x8xbf16>
    %c3_47 = arith.constant 3 : index
    %c0_48 = arith.constant 0 : index
    %c0_49 = arith.constant 0 : index
    %92 = vector.load %arg32[%c3_47, %c0_48, %c0_49] : memref<4x8x32xbf16, #tpu.memory_space<vmem>>, vector<1x8x32xbf16>
    %93 = vector.shape_cast %92 : vector<1x8x32xbf16> to vector<8x32xbf16>
    %cst_50 = arith.constant dense<0.000000e+00> : vector<8x32xf32>
    %94 = tpu.matmul %91, %93, %cst_50 {dimension_numbers = #tpu.dot_dimension_numbers<[1], [0], [0], [1], [0, 0, 1, 1], [], []>} : vector<8x8xbf16>, vector<8x32xbf16>, vector<8x32xf32> -> vector<8x32xf32>
    %95 = arith.truncf %94 : vector<8x32xf32> to vector<8x32xbf16>
    %c0_51 = arith.constant 0 : index
    %c96 = arith.constant 96 : index
    %96 = vector.load %arg35[%c0_51, %c96] : memref<8x128xbf16, #tpu.memory_space<vmem>>, vector<8x32xbf16>
    tpu.vector_store %arg35[%c0_51, %c96], %95 {strides = array<i32>} : memref<8x128xbf16, #tpu.memory_space<vmem>>, vector<8x32xbf16>,
    %c0_52 = arith.constant 0 : index
    %c0_53 = arith.constant 0 : index
    %97 = vector.load %arg35[%c0_52, %c0_53] : memref<8x128xbf16, #tpu.memory_space<vmem>>, vector<8x128xbf16>
    %c0_54 = arith.constant 0 : index
    %c0_55 = arith.constant 0 : index
    %98 = vector.load %arg10[%c0_54, %c0_55] : memref<128x128xbf16, #tpu.memory_space<vmem>>, vector<128x128xbf16>
    %cst_56 = arith.constant dense<0.000000e+00> : vector<8x128xf32>
    %99 = tpu.matmul %97, %98, %cst_56 {dimension_numbers = #tpu.dot_dimension_numbers<[1], [0], [0], [1], [0, 0, 1, 1], [], []>} : vector<8x128xbf16>, vector<128x128xbf16>, vector<8x128xf32> -> vector<8x128xf32>
    %c0_57 = arith.constant 0 : index
    %c0_58 = arith.constant 0 : index
    %100 = vector.load %arg11[%c0_57, %c0_58] : memref<1x128xf32, #tpu.memory_space<vmem>>, vector<1x128xf32>
    %101 = vector.broadcast %100 : vector<1x128xf32> to vector<8x128xf32>
    %102 = arith.addf %99, %101 : vector<8x128xf32>
    %103 = arith.addf %9, %102 : vector<8x128xf32>
    %cst_59 = arith.constant dense<0.000000e+00> : vector<8xf32>
    %104 = vector.multi_reduction <add>, %103, %cst_59 [1] : vector<8x128xf32> to vector<8xf32>
    %105 = vector.shape_cast %104 : vector<8xf32> to vector<8x1xf32>
    %cst_60 = arith.constant 1.280000e+02 : f32
    %106 = vector.broadcast %cst_60 : f32 to vector<8x1xf32>
    %107 = arith.divf %105, %106 : vector<8x1xf32>
    %108 = vector.broadcast %107 : vector<8x1xf32> to vector<8x128xf32>
    %109 = arith.subf %103, %108 : vector<8x128xf32>
    %110 = arith.mulf %109, %109 : vector<8x128xf32>
    %cst_61 = arith.constant dense<0.000000e+00> : vector<8xf32>
    %111 = vector.multi_reduction <add>, %110, %cst_61 [1] : vector<8x128xf32> to vector<8xf32>
    %112 = vector.shape_cast %111 : vector<8xf32> to vector<8x1xf32>
    %cst_62 = arith.constant 1.280000e+02 : f32
    %113 = vector.broadcast %cst_62 : f32 to vector<8x1xf32>
    %114 = arith.divf %112, %113 : vector<8x1xf32>
    %cst_63 = arith.constant 9.99999974E-6 : f32
    %115 = vector.broadcast %cst_63 : f32 to vector<8x1xf32>
    %116 = arith.addf %114, %115 : vector<8x1xf32>
    %117 = math.rsqrt %116 : vector<8x1xf32>
    %118 = vector.broadcast %117 : vector<8x1xf32> to vector<8x128xf32>
    %119 = arith.mulf %109, %118 : vector<8x128xf32>
    %c0_64 = arith.constant 0 : index
    %c0_65 = arith.constant 0 : index
    %120 = vector.load %arg12[%c0_64, %c0_65] : memref<1x128xf32, #tpu.memory_space<vmem>>, vector<1x128xf32>
    %121 = vector.broadcast %120 : vector<1x128xf32> to vector<8x128xf32>
    %122 = arith.mulf %119, %121 : vector<8x128xf32>
    %c0_66 = arith.constant 0 : index
    %c0_67 = arith.constant 0 : index
    %123 = vector.load %arg13[%c0_66, %c0_67] : memref<1x128xf32, #tpu.memory_space<vmem>>, vector<1x128xf32>
    %124 = vector.broadcast %123 : vector<1x128xf32> to vector<8x128xf32>
    %125 = arith.addf %122, %124 : vector<8x128xf32>
    %126 = arith.truncf %125 : vector<8x128xf32> to vector<8x128xbf16>
    %c0_68 = arith.constant 0 : index
    %c0_69 = arith.constant 0 : index
    %127 = vector.load %arg14[%c0_68, %c0_69] : memref<128x128xbf16, #tpu.memory_space<vmem>>, vector<128x128xbf16>
    %cst_70 = arith.constant dense<0.000000e+00> : vector<8x128xf32>
    %128 = tpu.matmul %126, %127, %cst_70 {dimension_numbers = #tpu.dot_dimension_numbers<[1], [0], [0], [1], [0, 0, 1, 1], [], []>} : vector<8x128xbf16>, vector<128x128xbf16>, vector<8x128xf32> -> vector<8x128xf32>
    %c0_71 = arith.constant 0 : index
    %c0_72 = arith.constant 0 : index
    %129 = vector.load %arg15[%c0_71, %c0_72] : memref<1x128xf32, #tpu.memory_space<vmem>>, vector<1x128xf32>
    %130 = vector.broadcast %129 : vector<1x128xf32> to vector<8x128xf32>
    %131 = arith.addf %128, %130 : vector<8x128xf32>
    %132 = arith.truncf %131 : vector<8x128xf32> to vector<8x128xbf16>
    %133 = vector.extract_strided_slice %132 {offsets = [0, 0], sizes = [8, 32], strides = [1, 1]} : vector<8x128xbf16> to vector<8x32xbf16>
    %c0_73 = arith.constant 0 : index
    %c0_74 = arith.constant 0 : index
    %c0_75 = arith.constant 0 : index
    %134 = vector.load %arg33[%c0_73, %c0_74, %c0_75] : memref<4x8x32xbf16, #tpu.memory_space<vmem>>, vector<1x8x32xbf16>
    %135 = vector.shape_cast %134 : vector<1x8x32xbf16> to vector<8x32xbf16>
    %cst_76 = arith.constant dense<0.000000e+00> : vector<8x8xf32>
    %136 = tpu.matmul %133, %135, %cst_76 {dimension_numbers = #tpu.dot_dimension_numbers<[1], [1], [0], [0], [0, 0, 1, 0], [], []>} : vector<8x32xbf16>, vector<8x32xbf16>, vector<8x8xf32> -> vector<8x8xf32>
    %cst_77 = arith.constant dense<0xFF800000> : vector<8xf32>
    %137 = vector.multi_reduction <maximumf>, %136, %cst_77 [1] : vector<8x8xf32> to vector<8xf32>
    %138 = vector.shape_cast %137 : vector<8xf32> to vector<8x1xf32>
    %139 = vector.broadcast %138 : vector<8x1xf32> to vector<8x8xf32>
    %140 = arith.subf %136, %139 : vector<8x8xf32>
    %141 = math.exp %140 : vector<8x8xf32>
    %cst_78 = arith.constant dense<0.000000e+00> : vector<8xf32>
    %142 = vector.multi_reduction <add>, %141, %cst_78 [1] : vector<8x8xf32> to vector<8xf32>
    %143 = vector.shape_cast %142 : vector<8xf32> to vector<8x1xf32>
    %144 = tpu.reciprocal %143 {approx = true} : vector<8x1xf32> -> vector<8x1xf32>
    %145 = vector.broadcast %144 : vector<8x1xf32> to vector<8x8xf32>
    %146 = arith.mulf %141, %145 : vector<8x8xf32>
    %147 = arith.truncf %146 : vector<8x8xf32> to vector<8x8xbf16>
    %c0_79 = arith.constant 0 : index
    %c0_80 = arith.constant 0 : index
    %c0_81 = arith.constant 0 : index
    %148 = vector.load %arg34[%c0_79, %c0_80, %c0_81] : memref<4x8x32xbf16, #tpu.memory_space<vmem>>, vector<1x8x32xbf16>
    %149 = vector.shape_cast %148 : vector<1x8x32xbf16> to vector<8x32xbf16>
    %cst_82 = arith.constant dense<0.000000e+00> : vector<8x32xf32>
    %150 = tpu.matmul %147, %149, %cst_82 {dimension_numbers = #tpu.dot_dimension_numbers<[1], [0], [0], [1], [0, 0, 1, 1], [], []>} : vector<8x8xbf16>, vector<8x32xbf16>, vector<8x32xf32> -> vector<8x32xf32>
    %151 = arith.truncf %150 : vector<8x32xf32> to vector<8x32xbf16>
    %c0_83 = arith.constant 0 : index
    %c0_84 = arith.constant 0 : index
    %152 = vector.load %arg35[%c0_83, %c0_84] : memref<8x128xbf16, #tpu.memory_space<vmem>>, vector<8x32xbf16>
    tpu.vector_store %arg35[%c0_83, %c0_84], %151 {strides = array<i32>} : memref<8x128xbf16, #tpu.memory_space<vmem>>, vector<8x32xbf16>,
    %153 = vector.extract_strided_slice %132 {offsets = [0, 32], sizes = [8, 32], strides = [1, 1]} : vector<8x128xbf16> to vector<8x32xbf16>
    %c1_85 = arith.constant 1 : index
    %c0_86 = arith.constant 0 : index
    %c0_87 = arith.constant 0 : index
    %154 = vector.load %arg33[%c1_85, %c0_86, %c0_87] : memref<4x8x32xbf16, #tpu.memory_space<vmem>>, vector<1x8x32xbf16>
    %155 = vector.shape_cast %154 : vector<1x8x32xbf16> to vector<8x32xbf16>
    %cst_88 = arith.constant dense<0.000000e+00> : vector<8x8xf32>
    %156 = tpu.matmul %153, %155, %cst_88 {dimension_numbers = #tpu.dot_dimension_numbers<[1], [1], [0], [0], [0, 0, 1, 0], [], []>} : vector<8x32xbf16>, vector<8x32xbf16>, vector<8x8xf32> -> vector<8x8xf32>
    %cst_89 = arith.constant dense<0xFF800000> : vector<8xf32>
    %157 = vector.multi_reduction <maximumf>, %156, %cst_89 [1] : vector<8x8xf32> to vector<8xf32>
    %158 = vector.shape_cast %157 : vector<8xf32> to vector<8x1xf32>
    %159 = vector.broadcast %158 : vector<8x1xf32> to vector<8x8xf32>
    %160 = arith.subf %156, %159 : vector<8x8xf32>
    %161 = math.exp %160 : vector<8x8xf32>
    %cst_90 = arith.constant dense<0.000000e+00> : vector<8xf32>
    %162 = vector.multi_reduction <add>, %161, %cst_90 [1] : vector<8x8xf32> to vector<8xf32>
    %163 = vector.shape_cast %162 : vector<8xf32> to vector<8x1xf32>
    %164 = tpu.reciprocal %163 {approx = true} : vector<8x1xf32> -> vector<8x1xf32>
    %165 = vector.broadcast %164 : vector<8x1xf32> to vector<8x8xf32>
    %166 = arith.mulf %161, %165 : vector<8x8xf32>
    %167 = arith.truncf %166 : vector<8x8xf32> to vector<8x8xbf16>
    %c1_91 = arith.constant 1 : index
    %c0_92 = arith.constant 0 : index
    %c0_93 = arith.constant 0 : index
    %168 = vector.load %arg34[%c1_91, %c0_92, %c0_93] : memref<4x8x32xbf16, #tpu.memory_space<vmem>>, vector<1x8x32xbf16>
    %169 = vector.shape_cast %168 : vector<1x8x32xbf16> to vector<8x32xbf16>
    %cst_94 = arith.constant dense<0.000000e+00> : vector<8x32xf32>
    %170 = tpu.matmul %167, %169, %cst_94 {dimension_numbers = #tpu.dot_dimension_numbers<[1], [0], [0], [1], [0, 0, 1, 1], [], []>} : vector<8x8xbf16>, vector<8x32xbf16>, vector<8x32xf32> -> vector<8x32xf32>
    %171 = arith.truncf %170 : vector<8x32xf32> to vector<8x32xbf16>
    %c0_95 = arith.constant 0 : index
    %c32_96 = arith.constant 32 : index
    %172 = vector.load %arg35[%c0_95, %c32_96] : memref<8x128xbf16, #tpu.memory_space<vmem>>, vector<8x32xbf16>
    tpu.vector_store %arg35[%c0_95, %c32_96], %171 {strides = array<i32>} : memref<8x128xbf16, #tpu.memory_space<vmem>>, vector<8x32xbf16>,
    %173 = vector.extract_strided_slice %132 {offsets = [0, 64], sizes = [8, 32], strides = [1, 1]} : vector<8x128xbf16> to vector<8x32xbf16>
    %c2_97 = arith.constant 2 : index
    %c0_98 = arith.constant 0 : index
    %c0_99 = arith.constant 0 : index
    %174 = vector.load %arg33[%c2_97, %c0_98, %c0_99] : memref<4x8x32xbf16, #tpu.memory_space<vmem>>, vector<1x8x32xbf16>
    %175 = vector.shape_cast %174 : vector<1x8x32xbf16> to vector<8x32xbf16>
    %cst_100 = arith.constant dense<0.000000e+00> : vector<8x8xf32>
    %176 = tpu.matmul %173, %175, %cst_100 {dimension_numbers = #tpu.dot_dimension_numbers<[1], [1], [0], [0], [0, 0, 1, 0], [], []>} : vector<8x32xbf16>, vector<8x32xbf16>, vector<8x8xf32> -> vector<8x8xf32>
    %cst_101 = arith.constant dense<0xFF800000> : vector<8xf32>
    %177 = vector.multi_reduction <maximumf>, %176, %cst_101 [1] : vector<8x8xf32> to vector<8xf32>
    %178 = vector.shape_cast %177 : vector<8xf32> to vector<8x1xf32>
    %179 = vector.broadcast %178 : vector<8x1xf32> to vector<8x8xf32>
    %180 = arith.subf %176, %179 : vector<8x8xf32>
    %181 = math.exp %180 : vector<8x8xf32>
    %cst_102 = arith.constant dense<0.000000e+00> : vector<8xf32>
    %182 = vector.multi_reduction <add>, %181, %cst_102 [1] : vector<8x8xf32> to vector<8xf32>
    %183 = vector.shape_cast %182 : vector<8xf32> to vector<8x1xf32>
    %184 = tpu.reciprocal %183 {approx = true} : vector<8x1xf32> -> vector<8x1xf32>
    %185 = vector.broadcast %184 : vector<8x1xf32> to vector<8x8xf32>
    %186 = arith.mulf %181, %185 : vector<8x8xf32>
    %187 = arith.truncf %186 : vector<8x8xf32> to vector<8x8xbf16>
    %c2_103 = arith.constant 2 : index
    %c0_104 = arith.constant 0 : index
    %c0_105 = arith.constant 0 : index
    %188 = vector.load %arg34[%c2_103, %c0_104, %c0_105] : memref<4x8x32xbf16, #tpu.memory_space<vmem>>, vector<1x8x32xbf16>
    %189 = vector.shape_cast %188 : vector<1x8x32xbf16> to vector<8x32xbf16>
    %cst_106 = arith.constant dense<0.000000e+00> : vector<8x32xf32>
    %190 = tpu.matmul %187, %189, %cst_106 {dimension_numbers = #tpu.dot_dimension_numbers<[1], [0], [0], [1], [0, 0, 1, 1], [], []>} : vector<8x8xbf16>, vector<8x32xbf16>, vector<8x32xf32> -> vector<8x32xf32>
    %191 = arith.truncf %190 : vector<8x32xf32> to vector<8x32xbf16>
    %c0_107 = arith.constant 0 : index
    %c64_108 = arith.constant 64 : index
    %192 = vector.load %arg35[%c0_107, %c64_108] : memref<8x128xbf16, #tpu.memory_space<vmem>>, vector<8x32xbf16>
    tpu.vector_store %arg35[%c0_107, %c64_108], %191 {strides = array<i32>} : memref<8x128xbf16, #tpu.memory_space<vmem>>, vector<8x32xbf16>,
    %193 = vector.extract_strided_slice %132 {offsets = [0, 96], sizes = [8, 32], strides = [1, 1]} : vector<8x128xbf16> to vector<8x32xbf16>
    %c3_109 = arith.constant 3 : index
    %c0_110 = arith.constant 0 : index
    %c0_111 = arith.constant 0 : index
    %194 = vector.load %arg33[%c3_109, %c0_110, %c0_111] : memref<4x8x32xbf16, #tpu.memory_space<vmem>>, vector<1x8x32xbf16>
    %195 = vector.shape_cast %194 : vector<1x8x32xbf16> to vector<8x32xbf16>
    %cst_112 = arith.constant dense<0.000000e+00> : vector<8x8xf32>
    %196 = tpu.matmul %193, %195, %cst_112 {dimension_numbers = #tpu.dot_dimension_numbers<[1], [1], [0], [0], [0, 0, 1, 0], [], []>} : vector<8x32xbf16>, vector<8x32xbf16>, vector<8x8xf32> -> vector<8x8xf32>
    %cst_113 = arith.constant dense<0xFF800000> : vector<8xf32>
    %197 = vector.multi_reduction <maximumf>, %196, %cst_113 [1] : vector<8x8xf32> to vector<8xf32>
    %198 = vector.shape_cast %197 : vector<8xf32> to vector<8x1xf32>
    %199 = vector.broadcast %198 : vector<8x1xf32> to vector<8x8xf32>
    %200 = arith.subf %196, %199 : vector<8x8xf32>
    %201 = math.exp %200 : vector<8x8xf32>
    %cst_114 = arith.constant dense<0.000000e+00> : vector<8xf32>
    %202 = vector.multi_reduction <add>, %201, %cst_114 [1] : vector<8x8xf32> to vector<8xf32>
    %203 = vector.shape_cast %202 : vector<8xf32> to vector<8x1xf32>
    %204 = tpu.reciprocal %203 {approx = true} : vector<8x1xf32> -> vector<8x1xf32>
    %205 = vector.broadcast %204 : vector<8x1xf32> to vector<8x8xf32>
    %206 = arith.mulf %201, %205 : vector<8x8xf32>
    %207 = arith.truncf %206 : vector<8x8xf32> to vector<8x8xbf16>
    %c3_115 = arith.constant 3 : index
    %c0_116 = arith.constant 0 : index
    %c0_117 = arith.constant 0 : index
    %208 = vector.load %arg34[%c3_115, %c0_116, %c0_117] : memref<4x8x32xbf16, #tpu.memory_space<vmem>>, vector<1x8x32xbf16>
    %209 = vector.shape_cast %208 : vector<1x8x32xbf16> to vector<8x32xbf16>
    %cst_118 = arith.constant dense<0.000000e+00> : vector<8x32xf32>
    %210 = tpu.matmul %207, %209, %cst_118 {dimension_numbers = #tpu.dot_dimension_numbers<[1], [0], [0], [1], [0, 0, 1, 1], [], []>} : vector<8x8xbf16>, vector<8x32xbf16>, vector<8x32xf32> -> vector<8x32xf32>
    %211 = arith.truncf %210 : vector<8x32xf32> to vector<8x32xbf16>
    %c0_119 = arith.constant 0 : index
    %c96_120 = arith.constant 96 : index
    %212 = vector.load %arg35[%c0_119, %c96_120] : memref<8x128xbf16, #tpu.memory_space<vmem>>, vector<8x32xbf16>
    tpu.vector_store %arg35[%c0_119, %c96_120], %211 {strides = array<i32>} : memref<8x128xbf16, #tpu.memory_space<vmem>>, vector<8x32xbf16>,
    %c0_121 = arith.constant 0 : index
    %c0_122 = arith.constant 0 : index
    %213 = vector.load %arg35[%c0_121, %c0_122] : memref<8x128xbf16, #tpu.memory_space<vmem>>, vector<8x128xbf16>
    %c0_123 = arith.constant 0 : index
    %c0_124 = arith.constant 0 : index
    %214 = vector.load %arg20[%c0_123, %c0_124] : memref<128x128xbf16, #tpu.memory_space<vmem>>, vector<128x128xbf16>
    %cst_125 = arith.constant dense<0.000000e+00> : vector<8x128xf32>
    %215 = tpu.matmul %213, %214, %cst_125 {dimension_numbers = #tpu.dot_dimension_numbers<[1], [0], [0], [1], [0, 0, 1, 1], [], []>} : vector<8x128xbf16>, vector<128x128xbf16>, vector<8x128xf32> -> vector<8x128xf32>
    %c0_126 = arith.constant 0 : index
    %c0_127 = arith.constant 0 : index
    %216 = vector.load %arg21[%c0_126, %c0_127] : memref<1x128xf32, #tpu.memory_space<vmem>>, vector<1x128xf32>
    %217 = vector.broadcast %216 : vector<1x128xf32> to vector<8x128xf32>
    %218 = arith.addf %215, %217 : vector<8x128xf32>
    %219 = arith.addf %125, %218 : vector<8x128xf32>
    %cst_128 = arith.constant dense<0.000000e+00> : vector<8xf32>
    %220 = vector.multi_reduction <add>, %219, %cst_128 [1] : vector<8x128xf32> to vector<8xf32>
    %221 = vector.shape_cast %220 : vector<8xf32> to vector<8x1xf32>
    %cst_129 = arith.constant 1.280000e+02 : f32
    %222 = vector.broadcast %cst_129 : f32 to vector<8x1xf32>
    %223 = arith.divf %221, %222 : vector<8x1xf32>
    %224 = vector.broadcast %223 : vector<8x1xf32> to vector<8x128xf32>
    %225 = arith.subf %219, %224 : vector<8x128xf32>
    %226 = arith.mulf %225, %225 : vector<8x128xf32>
    %cst_130 = arith.constant dense<0.000000e+00> : vector<8xf32>
    %227 = vector.multi_reduction <add>, %226, %cst_130 [1] : vector<8x128xf32> to vector<8xf32>
    %228 = vector.shape_cast %227 : vector<8xf32> to vector<8x1xf32>
    %cst_131 = arith.constant 1.280000e+02 : f32
    %229 = vector.broadcast %cst_131 : f32 to vector<8x1xf32>
    %230 = arith.divf %228, %229 : vector<8x1xf32>
    %cst_132 = arith.constant 9.99999974E-6 : f32
    %231 = vector.broadcast %cst_132 : f32 to vector<8x1xf32>
    %232 = arith.addf %230, %231 : vector<8x1xf32>
    %233 = math.rsqrt %232 : vector<8x1xf32>
    %234 = vector.broadcast %233 : vector<8x1xf32> to vector<8x128xf32>
    %235 = arith.mulf %225, %234 : vector<8x128xf32>
    %c0_133 = arith.constant 0 : index
    %c0_134 = arith.constant 0 : index
    %236 = vector.load %arg22[%c0_133, %c0_134] : memref<1x128xf32, #tpu.memory_space<vmem>>, vector<1x128xf32>
    %237 = vector.broadcast %236 : vector<1x128xf32> to vector<8x128xf32>
    %238 = arith.mulf %235, %237 : vector<8x128xf32>
    %c0_135 = arith.constant 0 : index
    %c0_136 = arith.constant 0 : index
    %239 = vector.load %arg23[%c0_135, %c0_136] : memref<1x128xf32, #tpu.memory_space<vmem>>, vector<1x128xf32>
    %240 = vector.broadcast %239 : vector<1x128xf32> to vector<8x128xf32>
    %241 = arith.addf %238, %240 : vector<8x128xf32>
    %242 = arith.truncf %241 : vector<8x128xf32> to vector<8x128xbf16>
    %c0_137 = arith.constant 0 : index
    %c0_138 = arith.constant 0 : index
    %243 = vector.load %arg24[%c0_137, %c0_138] : memref<128x256xbf16, #tpu.memory_space<vmem>>, vector<128x256xbf16>
    %cst_139 = arith.constant dense<0.000000e+00> : vector<8x256xf32>
    %244 = tpu.matmul %242, %243, %cst_139 {dimension_numbers = #tpu.dot_dimension_numbers<[1], [0], [0], [1], [0, 0, 1, 1], [], []>} : vector<8x128xbf16>, vector<128x256xbf16>, vector<8x256xf32> -> vector<8x256xf32>
    %c0_140 = arith.constant 0 : index
    %c0_141 = arith.constant 0 : index
    %245 = vector.load %arg25[%c0_140, %c0_141] : memref<1x256xf32, #tpu.memory_space<vmem>>, vector<1x256xf32>
    %246 = vector.broadcast %245 : vector<1x256xf32> to vector<8x256xf32>
    %247 = arith.addf %244, %246 : vector<8x256xf32>
    %cst_142 = arith.constant 0.000000e+00 : f32
    %248 = vector.broadcast %cst_142 : f32 to vector<8x256xf32>
    %249 = arith.maximumf %247, %248 : vector<8x256xf32>
    %250 = arith.truncf %249 : vector<8x256xf32> to vector<8x256xbf16>
    %c0_143 = arith.constant 0 : index
    %c0_144 = arith.constant 0 : index
    %251 = vector.load %arg26[%c0_143, %c0_144] : memref<256x128xbf16, #tpu.memory_space<vmem>>, vector<256x128xbf16>
    %cst_145 = arith.constant dense<0.000000e+00> : vector<8x128xf32>
    %252 = tpu.matmul %250, %251, %cst_145 {dimension_numbers = #tpu.dot_dimension_numbers<[1], [0], [0], [1], [0, 0, 1, 1], [], []>} : vector<8x256xbf16>, vector<256x128xbf16>, vector<8x128xf32> -> vector<8x128xf32>
    %c0_146 = arith.constant 0 : index
    %c0_147 = arith.constant 0 : index
    %253 = vector.load %arg27[%c0_146, %c0_147] : memref<1x128xf32, #tpu.memory_space<vmem>>, vector<1x128xf32>
    %254 = vector.broadcast %253 : vector<1x128xf32> to vector<8x128xf32>
    %255 = arith.addf %252, %254 : vector<8x128xf32>
    %256 = arith.addf %241, %255 : vector<8x128xf32>
    %cst_148 = arith.constant dense<0.000000e+00> : vector<8xf32>
    %257 = vector.multi_reduction <add>, %256, %cst_148 [1] : vector<8x128xf32> to vector<8xf32>
    %258 = vector.shape_cast %257 : vector<8xf32> to vector<8x1xf32>
    %cst_149 = arith.constant 1.280000e+02 : f32
    %259 = vector.broadcast %cst_149 : f32 to vector<8x1xf32>
    %260 = arith.divf %258, %259 : vector<8x1xf32>
    %261 = vector.broadcast %260 : vector<8x1xf32> to vector<8x128xf32>
    %262 = arith.subf %256, %261 : vector<8x128xf32>
    %263 = arith.mulf %262, %262 : vector<8x128xf32>
    %cst_150 = arith.constant dense<0.000000e+00> : vector<8xf32>
    %264 = vector.multi_reduction <add>, %263, %cst_150 [1] : vector<8x128xf32> to vector<8xf32>
    %265 = vector.shape_cast %264 : vector<8xf32> to vector<8x1xf32>
    %cst_151 = arith.constant 1.280000e+02 : f32
    %266 = vector.broadcast %cst_151 : f32 to vector<8x1xf32>
    %267 = arith.divf %265, %266 : vector<8x1xf32>
    %cst_152 = arith.constant 9.99999974E-6 : f32
    %268 = vector.broadcast %cst_152 : f32 to vector<8x1xf32>
    %269 = arith.addf %267, %268 : vector<8x1xf32>
    %270 = math.rsqrt %269 : vector<8x1xf32>
    %271 = vector.broadcast %270 : vector<8x1xf32> to vector<8x128xf32>
    %272 = arith.mulf %262, %271 : vector<8x128xf32>
    %c0_153 = arith.constant 0 : index
    %c0_154 = arith.constant 0 : index
    %273 = vector.load %arg28[%c0_153, %c0_154] : memref<1x128xf32, #tpu.memory_space<vmem>>, vector<1x128xf32>
    %274 = vector.broadcast %273 : vector<1x128xf32> to vector<8x128xf32>
    %275 = arith.mulf %272, %274 : vector<8x128xf32>
    %c0_155 = arith.constant 0 : index
    %c0_156 = arith.constant 0 : index
    %276 = vector.load %arg29[%c0_155, %c0_156] : memref<1x128xf32, #tpu.memory_space<vmem>>, vector<1x128xf32>
    %277 = vector.broadcast %276 : vector<1x128xf32> to vector<8x128xf32>
    %278 = arith.addf %275, %277 : vector<8x128xf32>
    %c0_157 = arith.constant 0 : index
    %c0_158 = arith.constant 0 : index
    %c0_159 = arith.constant 0 : index
    %279 = vector.load %arg30[%c0_157, %c0_158, %c0_159] : memref<1x8x128xf32, #tpu.memory_space<vmem>>, vector<1x8x128xf32>
    %280 = vector.shape_cast %279 : vector<1x8x128xf32> to vector<8x128xf32>
    %281 = vector.shape_cast %278 : vector<8x128xf32> to vector<1x8x128xf32>
    tpu.vector_store %arg30[%c0_157, %c0_158, %c0_159], %281 {strides = array<i32>} : memref<1x8x128xf32, #tpu.memory_space<vmem>>, vector<1x8x128xf32>,
    return
  }
  func.func @transform_0(%arg0: i32, %arg1: i32) -> (i32, i32, i32) {
    %c0_i32 = arith.constant 0 : i32
    %c0_i32_0 = arith.constant 0 : i32
    %c0_i32_1 = arith.constant 0 : i32
    return %arg0, %c0_i32, %c0_i32_0 : i32, i32, i32
  }
  func.func @transform_1(%arg0: i32, %arg1: i32) -> (i32, i32, i32) {
    %c0_i32 = arith.constant 0 : i32
    %c0_i32_0 = arith.constant 0 : i32
    %c0_i32_1 = arith.constant 0 : i32
    return %arg0, %c0_i32, %c0_i32_0 : i32, i32, i32
  }
  func.func @transform_2(%arg0: i32, %arg1: i32) -> (i32, i32) {
    %c0_i32 = arith.constant 0 : i32
    %c0_i32_0 = arith.constant 0 : i32
    %c0_i32_1 = arith.constant 0 : i32
    return %c0_i32, %c0_i32_0 : i32, i32
  }
  func.func @transform_3(%arg0: i32, %arg1: i32) -> (i32, i32) {
    %c0_i32 = arith.constant 0 : i32
    %c0_i32_0 = arith.constant 0 : i32
    %c0_i32_1 = arith.constant 0 : i32
    return %c0_i32, %c0_i32_0 : i32, i32
  }
  func.func @transform_4(%arg0: i32, %arg1: i32) -> (i32, i32) {
    %c0_i32 = arith.constant 0 : i32
    %c0_i32_0 = arith.constant 0 : i32
    %c0_i32_1 = arith.constant 0 : i32
    return %c0_i32, %c0_i32_0 : i32, i32
  }
  func.func @transform_5(%arg0: i32, %arg1: i32) -> (i32, i32) {
    %c0_i32 = arith.constant 0 : i32
    %c0_i32_0 = arith.constant 0 : i32
    %c0_i32_1 = arith.constant 0 : i32
    return %c0_i32, %c0_i32_0 : i32, i32
  }
  func.func @transform_6(%arg0: i32, %arg1: i32) -> (i32, i32) {
    %c0_i32 = arith.constant 0 : i32
    %c0_i32_0 = arith.constant 0 : i32
    %c0_i32_1 = arith.constant 0 : i32
    return %c0_i32, %c0_i32_0 : i32, i32
  }
  func.func @transform_7(%arg0: i32, %arg1: i32) -> (i32, i32) {
    %c0_i32 = arith.constant 0 : i32
    %c0_i32_0 = arith.constant 0 : i32
    %c0_i32_1 = arith.constant 0 : i32
    return %c0_i32, %c0_i32_0 : i32, i32
  }
  func.func @transform_8(%arg0: i32, %arg1: i32) -> (i32, i32) {
    %c0_i32 = arith.constant 0 : i32
    %c0_i32_0 = arith.constant 0 : i32
    %c0_i32_1 = arith.constant 0 : i32
    return %c0_i32, %c0_i32_0 : i32, i32
  }
  func.func @transform_9(%arg0: i32, %arg1: i32) -> (i32, i32) {
    %c0_i32 = arith.constant 0 : i32
    %c0_i32_0 = arith.constant 0 : i32
    %c0_i32_1 = arith.constant 0 : i32
    return %c0_i32, %c0_i32_0 : i32, i32
  }
  func.func @transform_10(%arg0: i32, %arg1: i32) -> (i32, i32) {
    %c0_i32 = arith.constant 0 : i32
    %c0_i32_0 = arith.constant 0 : i32
    %c0_i32_1 = arith.constant 0 : i32
    return %c0_i32, %c0_i32_0 : i32, i32
  }
  func.func @transform_11(%arg0: i32, %arg1: i32) -> (i32, i32) {
    %c0_i32 = arith.constant 0 : i32
    %c0_i32_0 = arith.constant 0 : i32
    %c0_i32_1 = arith.constant 0 : i32
    return %c0_i32, %c0_i32_0 : i32, i32
  }
  func.func @transform_12(%arg0: i32, %arg1: i32) -> (i32, i32) {
    %c0_i32 = arith.constant 0 : i32
    %c0_i32_0 = arith.constant 0 : i32
    %c0_i32_1 = arith.constant 0 : i32
    return %c0_i32, %c0_i32_0 : i32, i32
  }
  func.func @transform_13(%arg0: i32, %arg1: i32) -> (i32, i32) {
    %c0_i32 = arith.constant 0 : i32
    %c0_i32_0 = arith.constant 0 : i32
    %c0_i32_1 = arith.constant 0 : i32
    return %c0_i32, %c0_i32_0 : i32, i32
  }
  func.func @transform_14(%arg0: i32, %arg1: i32) -> (i32, i32) {
    %c0_i32 = arith.constant 0 : i32
    %c0_i32_0 = arith.constant 0 : i32
    %c0_i32_1 = arith.constant 0 : i32
    return %c0_i32, %c0_i32_0 : i32, i32
  }
  func.func @transform_15(%arg0: i32, %arg1: i32) -> (i32, i32) {
    %c0_i32 = arith.constant 0 : i32
    %c0_i32_0 = arith.constant 0 : i32
    %c0_i32_1 = arith.constant 0 : i32
    return %c0_i32, %c0_i32_0 : i32, i32
  }
  func.func @transform_16(%arg0: i32, %arg1: i32) -> (i32, i32) {
    %c0_i32 = arith.constant 0 : i32
    %c0_i32_0 = arith.constant 0 : i32
    %c0_i32_1 = arith.constant 0 : i32
    return %c0_i32, %c0_i32_0 : i32, i32
  }
  func.func @transform_17(%arg0: i32, %arg1: i32) -> (i32, i32) {
    %c0_i32 = arith.constant 0 : i32
    %c0_i32_0 = arith.constant 0 : i32
    %c0_i32_1 = arith.constant 0 : i32
    return %c0_i32, %c0_i32_0 : i32, i32
  }
  func.func @transform_18(%arg0: i32, %arg1: i32) -> (i32, i32) {
    %c0_i32 = arith.constant 0 : i32
    %c0_i32_0 = arith.constant 0 : i32
    %c0_i32_1 = arith.constant 0 : i32
    return %c0_i32, %c0_i32_0 : i32, i32
  }
  func.func @transform_19(%arg0: i32, %arg1: i32) -> (i32, i32) {
    %c0_i32 = arith.constant 0 : i32
    %c0_i32_0 = arith.constant 0 : i32
    %c0_i32_1 = arith.constant 0 : i32
    return %c0_i32, %c0_i32_0 : i32, i32
  }
  func.func @transform_20(%arg0: i32, %arg1: i32) -> (i32, i32) {
    %c0_i32 = arith.constant 0 : i32
    %c0_i32_0 = arith.constant 0 : i32
    %c0_i32_1 = arith.constant 0 : i32
    return %c0_i32, %c0_i32_0 : i32, i32
  }
  func.func @transform_21(%arg0: i32, %arg1: i32) -> (i32, i32) {
    %c0_i32 = arith.constant 0 : i32
    %c0_i32_0 = arith.constant 0 : i32
    %c0_i32_1 = arith.constant 0 : i32
    return %c0_i32, %c0_i32_0 : i32, i32
  }
  func.func @transform_22(%arg0: i32, %arg1: i32) -> (i32, i32) {
    %c0_i32 = arith.constant 0 : i32
    %c0_i32_0 = arith.constant 0 : i32
    %c0_i32_1 = arith.constant 0 : i32
    return %c0_i32, %c0_i32_0 : i32, i32
  }
  func.func @transform_23(%arg0: i32, %arg1: i32) -> (i32, i32) {
    %c0_i32 = arith.constant 0 : i32
    %c0_i32_0 = arith.constant 0 : i32
    %c0_i32_1 = arith.constant 0 : i32
    return %c0_i32, %c0_i32_0 : i32, i32
  }
  func.func @transform_24(%arg0: i32, %arg1: i32) -> (i32, i32) {
    %c0_i32 = arith.constant 0 : i32
    %c0_i32_0 = arith.constant 0 : i32
    %c0_i32_1 = arith.constant 0 : i32
    return %c0_i32, %c0_i32_0 : i32, i32
  }
  func.func @transform_25(%arg0: i32, %arg1: i32) -> (i32, i32) {
    %c0_i32 = arith.constant 0 : i32
    %c0_i32_0 = arith.constant 0 : i32
    %c0_i32_1 = arith.constant 0 : i32
    return %c0_i32, %c0_i32_0 : i32, i32
  }
  func.func @transform_26(%arg0: i32, %arg1: i32) -> (i32, i32) {
    %c0_i32 = arith.constant 0 : i32
    %c0_i32_0 = arith.constant 0 : i32
    %c0_i32_1 = arith.constant 0 : i32
    return %c0_i32, %c0_i32_0 : i32, i32
  }
  func.func @transform_27(%arg0: i32, %arg1: i32) -> (i32, i32) {
    %c0_i32 = arith.constant 0 : i32
    %c0_i32_0 = arith.constant 0 : i32
    %c0_i32_1 = arith.constant 0 : i32
    return %c0_i32, %c0_i32_0 : i32, i32
  }
  func.func @transform_28(%arg0: i32, %arg1: i32) -> (i32, i32, i32) {
    %c0_i32 = arith.constant 0 : i32
    %c0_i32_0 = arith.constant 0 : i32
    return %arg0, %arg1, %c0_i32 : i32, i32, i32
  }
}

</mosaic_0001>

<bundles_post_ra>
// kernel: tpu_custom_call.1
= control target key start
LH: loop header
LB: loop body
LE: loop exit
PB: predicated region body
PF: predicated region fallthrough
CT: control target
= control target key end

     0   :  { %s6415_s0 = inlined_call_operand.hbm [shape: bf16[2,8,128], index: 0, kind: input, shape index: {}]   ;;  %s6416_s1 = inlined_call_operand.hbm [shape: bf16[2,8,128], index: 1, kind: input, shape index: {}]   ;;  %s6417_s2 = inlined_call_operand.hbm [shape: bf16[128,128], index: 2, kind: input, shape index: {}]   ;;  %s6418_s3 = inlined_call_operand.vmem [shape: f32[1,128], index: 3, kind: input, shape index: {}]   ;;  %s6419_s4 = inlined_call_operand.hbm [shape: bf16[128,128], index: 4, kind: input, shape index: {}]   ;;  %s6420_s5 = inlined_call_operand.vmem [shape: f32[1,128], index: 5, kind: input, shape index: {}]   ;;  %s6421_s6 = inlined_call_operand.hbm [shape: bf16[128,128], index: 6, kind: input, shape index: {}]   ;;  %s6422_s7 = inlined_call_operand.hbm [shape: f32[1,128], index: 7, kind: input, shape index: {}]   ;;  %s6423_s8 = inlined_call_operand.hbm [shape: bf16[128,128], index: 8, kind: input, shape index: {}]   ;;  %s6424_s9 = inlined_call_operand.hbm [shape: f32[1,128], index: 9, kind: input, shape index: {}]   ;;  %s6425_s10 = inlined_call_operand.hbm [shape: f32[1,128], index: 10, kind: input, shape index: {}]   ;;  %s6426_s11 = inlined_call_operand.hbm [shape: f32[1,128], index: 11, kind: input, shape index: {}]   ;;  %s6427_s12 = inlined_call_operand.hbm [shape: bf16[128,128], index: 12, kind: input, shape index: {}]   ;;  %s6428_s13 = inlined_call_operand.hbm [shape: f32[1,128], index: 13, kind: input, shape index: {}]   ;;  %s6429_s14 = inlined_call_operand.hbm [shape: bf16[128,128], index: 14, kind: input, shape index: {}]   ;;  %s6430_s15 = inlined_call_operand.hbm [shape: f32[1,128], index: 15, kind: input, shape index: {}]   ;;  %s6431_s16 = inlined_call_operand.hbm [shape: bf16[128,128], index: 16, kind: input, shape index: {}]   ;;  %s6432_s17 = inlined_call_operand.hbm [shape: f32[1,128], index: 17, kind: input, shape index: {}]   ;;  %s6433_s18 = inlined_call_operand.vmem [shape: bf16[128,128], index: 18, kind: input, shape index: {}]   ;;  %s6434_s19 = inlined_call_operand.vmem [shape: f32[1,128], index: 19, kind: input, shape index: {}]   ;;  %s6435_s20 = inlined_call_operand.vmem [shape: f32[1,128], index: 20, kind: input, shape index: {}]   ;;  %s6436_s21 = inlined_call_operand.vmem [shape: f32[1,128], index: 21, kind: input, shape index: {}]   ;;  %s6437_s22 = inlined_call_operand.hbm [shape: bf16[128,256], index: 22, kind: input, shape index: {}]   ;;  %s6438_s23 = inlined_call_operand.vmem [shape: f32[1,256], index: 23, kind: input, shape index: {}]   ;;  %s6439_s24 = inlined_call_operand.hbm [shape: bf16[256,128], index: 24, kind: input, shape index: {}]   ;;  %s6440_s25 = inlined_call_operand.vmem [shape: f32[1,128], index: 25, kind: input, shape index: {}]   ;;  %s6441_s26 = inlined_call_operand.vmem [shape: f32[1,128], index: 26, kind: input, shape index: {}]   ;;  %s6442_s27 = inlined_call_operand.vmem [shape: f32[1,128], index: 27, kind: input, shape index: {}]   ;;  %s6443_s28 = inlined_call_operand.hbm [shape: f32[2,8,128], index: 28, kind: output, shape index: {}]  }
   0x1   :  { %6473 = sst [smem:[#allocation51_spill]] %s6415_s0 }
   0x2   :  { %6474 = sst [smem:[#allocation52_spill]] %s6416_s1 }
   0x3   :  { %6475 = sst [smem:[#allocation53_spill]] %s6417_s2 }
   0x4   :  { %6476 = sst [smem:[#allocation54_spill]] %s6418_s3 }
   0x5   :  { %6477 = sst [smem:[#allocation55_spill]] %s6419_s4 }
   0x6   :  { %6478 = sst [smem:[#allocation56_spill]] %s6420_s5 }
   0x7   :  { %6479 = sst [smem:[#allocation57_spill]] %s6421_s6 }
   0x8   :  { %6480 = sst [smem:[#allocation58_spill]] %s6422_s7 }
   0x9   :  { %6481 = sst [smem:[#allocation59_spill]] %s6423_s8 }
   0xa   :  { %6482 = sst [smem:[#allocation60_spill]] %s6424_s9 }
   0xb   :  { %6483 = sst [smem:[#allocation61_spill]] %s6425_s10 }
   0xc   :  { %6484 = sst [smem:[#allocation62_spill]] %s6426_s11 }
   0xd   :  { %6485 = sst [smem:[#allocation63_spill]] %s6427_s12 }
   0xe   :  { %6486 = sst [smem:[#allocation64_spill]] %s6428_s13 }
   0xf   :  { %6487 = sst [smem:[#allocation65_spill]] %s6429_s14 }
  0x10   :  { %6488 = sst [smem:[#allocation66_spill]] %s6430_s15 }
  0x11   :  { %6489 = sst [smem:[#allocation67_spill]] %s6431_s16 }
  0x12   :  { %6490 = sst [smem:[#allocation68_spill]] %s6432_s17 }
  0x13   :  { %6491 = sst [smem:[#allocation69_spill]] %s6433_s18 }
  0x14   :  { %6492 = sst [smem:[#allocation70_spill]] %s6434_s19 }
  0x15   :  { %6493 = sst [smem:[#allocation71_spill]] %s6435_s20 }
  0x16   :  { %6494 = sst [smem:[#allocation72_spill]] %s6436_s21 }
  0x17   :  { %6495 = sst [smem:[#allocation73_spill]] %s6437_s22 }
  0x18   :  { %6496 = sst [smem:[#allocation74_spill]] %s6438_s23 }
  0x19   :  { %6497 = sst [smem:[#allocation75_spill]] %s6439_s24 }
  0x1a   :  { %6498 = sst [smem:[#allocation76_spill]] %s6440_s25 }
  0x1b   :  { %6499 = sst [smem:[#allocation77_spill]] %s6441_s26 }
  0x1c   :  { %6500 = sst [smem:[#allocation78_spill]] %s6442_s27 }
  0x1d   :  { %6501 = sst [smem:[#allocation79_spill]] %s6443_s28 }
  0x1e   :  { %33 = vsyncpa [#allocation8], 0 }
  0x1f   :  { %35 = vsyncpa [#allocation8 + $0x1], 0 }
  0x20   :  { %36 = vsyncpa [#allocation11], 0 }
  0x21   :  { %38 = vsyncpa [#allocation11 + $0x1], 0 }
  0x22   :  { %39 = vsyncpa [#allocation14], 0 }
  0x23   :  { %40 = vsyncpa [#allocation17], 0 }
  0x24   :  { %41 = vsyncpa [#allocation20], 0 }
  0x25   :  { %42 = vsyncpa [#allocation23], 0 }
  0x26   :  { %43 = vsyncpa [#allocation26], 0 }
  0x27   :  { %44 = vsyncpa [#allocation29], 0 }
  0x28   :  { %45 = vsyncpa [#allocation32], 0 }
  0x29   :  { %46 = vsyncpa [#allocation35], 0 }
  0x2a   :  { %47 = vsyncpa [#allocation9], 0 }
  0x2b   :  { %49 = vsyncpa [#allocation9 + $0x1], 0  ;;  %s5500_s8 = smov 0   ;;  %s5502_s5 = smov 0  }
  0x2c   :  { %s5504_s9 = smov 0   ;;  %s5506_s30 = smov 0  }
  0x2d   :  { %s5508_s3 = smov 0   ;;  %s5510_s6 = smov 0  }
  0x2e LB: > { %6502 = sst [smem:[#allocation49_spill]] %s5316_s30  ;;  %s5531_s10 = sadd.s32 4294967295, %s5324_s6   ;;  %s5324_s6 = sphi %s5510_s6, %s55_s6   ;;  %s5320_s3 = sphi %s5508_s3, %s6574_s3   ;;  %s5316_s30 = sphi %s5506_s30, %s6573_s30   ;;  %s5312_s9 = sphi %s5504_s9, %s6572_s9   ;;  %s5308_s5 = sphi %s5502_s5, %s6571_s5   ;;  %s5304_s8 = sphi %s5500_s8, %s6570_s8  }
  0x2f   : > { %p3739_p0 = scmp.ge.s32.totalorder %s5324_s6, 1  ;;  %p6459_p1 = scmp.eq.s32.totalorder %s5531_s10, 0 }
  0x30   : > { %p698_p2 = scmp.lt.s32.totalorder %s5324_s6, 3  ;;  %s5326_s11 = smov [#allocation12]  }
  0x31   : > { %s710_s29 = sshll.u32 %s5326_s11, 4  ;;  %s5327_s7 = smov [#allocation13]   ;;  %s5540_s29 = int_to_ptr.vmem [resolvable:$true] %s710_s29 }
  0x32   : > { %p5536_p3 = pnand %p3739_p0, %p698_p2  ;;  %s726_s12 = sshll.u32 %s5327_s7, 4  ;;  %s5551_s12 = int_to_ptr.vmem [resolvable:$true] %s726_s12 }
  0x33   : > { %s5328_s1 = smov [#allocation16]   ;;  %s6506_s27 = sld [smem:[#allocation53_spill]] }
  0x34   : > { %s6503_s0 = scalar_select %p5536_p3, 1, 0 }
  0x35   : > { %p4384_p4 = pneg %p5536_p3  ;;  %s5553_s4 = sshll.u32 %s5328_s1, 4  ;;  %s757_s4 = int_to_ptr.vmem [resolvable:$true] %s5553_s4 }
  0x36   : > { %6504 = sst [smem:[#allocation50_spill]] %s6503_s0 }
  0x37   : > { %p5547_p6 = pnand %p4384_p4, %p6459_p1 }
  0x39   : > { %s4694_s26 = scalar_lea.hbm %s6506_s27, 1024  ;;  %p5563_p8 = pneg %p5547_p6 }
  0x3a   : > { %p4695_p7 = scmp.ne.s32.totalorder %s6506_s27, %s4694_s26  ;;  %p4701_p11 = scmp.lt.u32.totalorder %s4694_s26, %s6506_s27 }
  0x3c   : > { %p4697_p9 = pnand %p5563_p8, %p4695_p7 }
  0x3e   : > { %p4698_p10 = pneg %p4697_p9 }
  0x40   : > { %p4703_p12 = pnand %p4701_p11, %p4698_p10 }
  0x42   : > { %4706 = shalt.err (!%p4703_p12)
}
  0x43   : > { %s4707_s25 = scalar_lea.vmem %s5540_s29, 1024  ;;  %p4715_p4 = scmp.lt.s32.totalorder %s5540_s29, %s5540_s29 }
  0x44   : > { %p4708_p13 = scmp.ne.s32.totalorder %s5540_s29, %s4707_s25  ;;  %p4716_p5 = scmp.lt.s32.totalorder %s4707_s25, %s4707_s25 }
  0x46   : > { %p4710_p0 = pnand %p4708_p13, %p5563_p8  ;;  %p4717_p7 = por %p4716_p5, %p4715_p4 }
  0x48   : > { %p4711_p2 = pneg %p4710_p0 }
  0x4a   : > { %p4718_p9 = pnand %p4717_p7, %p4711_p2 }
  0x4c   : > { %4721 = shalt.err (!%p4718_p9)
}
  0x4d   : > { %s6461_s28 = smov 64   ;;  %s6463_s26 = smov 4  }
  0x4e   : > { %4387 = dma.hbm_to_vmem [thread:$0]  (!%p5547_p6), %s6506_s27, 1024, %s5540_s29, [#allocation11], %s6461_s28, %s6461_s28, %s6463_s26  }
  0x4f   : > { %s6508_s21 = sld [smem:[#allocation55_spill]] }
  0x55   : > { %s4722_s25 = scalar_lea.hbm %s6508_s21, 1024 }
  0x56   : > { %p4723_p5 = scmp.ne.s32.totalorder %s6508_s21, %s4722_s25  ;;  %p4729_p12 = scmp.lt.u32.totalorder %s4722_s25, %s6508_s21 }
  0x58   : > { %p4725_p10 = pnand %p4723_p5, %p5563_p8 }
  0x5a   : > { %p4726_p11 = pneg %p4725_p10 }
  0x5c   : > { %p4731_p13 = pnand %p4729_p12, %p4726_p11 }
  0x5e   : > { %4734 = shalt.err (!%p4731_p13)
}
  0x5f   : > { %s4735_s29 = scalar_lea.vmem %s5551_s12, 1024  ;;  %p4743_p7 = scmp.lt.s32.totalorder %s5551_s12, %s5551_s12 }
  0x60   : > { %p4736_p0 = scmp.ne.s32.totalorder %s5551_s12, %s4735_s29  ;;  %p4744_p9 = scmp.lt.s32.totalorder %s4735_s29, %s4735_s29 }
  0x62   : > { %p4738_p2 = pnand %p4736_p0, %p5563_p8  ;;  %p4745_p5 = por %p4744_p9, %p4743_p7 }
  0x64   : > { %p4739_p4 = pneg %p4738_p2 }
  0x66   : > { %p4746_p10 = pnand %p4745_p5, %p4739_p4 }
  0x68   : > { %4749 = shalt.err (!%p4746_p10)
}
  0x69   : > { %4390 = dma.hbm_to_vmem [thread:$0]  (!%p5547_p6), %s6508_s21, 1024, %s5551_s12, [#allocation14], %s6461_s28, %s6461_s28, %s6463_s26  }
  0x6a   : > { %s6509_s30 = sld [smem:[#allocation58_spill]] }
  0x70   : > { %s6510_s11 = smov %s6509_s30  ;;  %s4750_s7 = scalar_lea.hbm %s6509_s30, 16 }
  0x71   : > { %p4751_p11 = scmp.ne.s32.totalorder %s6510_s11, %s4750_s7  ;;  %p4757_p0 = scmp.lt.u32.totalorder %s4750_s7, %s6510_s11 }
  0x73   : > { %p4753_p12 = pnand %p4751_p11, %p5563_p8 }
  0x75   : > { %p4754_p13 = pneg %p4753_p12 }
  0x77   : > { %p4759_p2 = pnand %p4757_p0, %p4754_p13 }
  0x79   : > { %4762 = shalt.err (!%p4759_p2)
}
  0x7a   : > { %s4763_s18 = scalar_lea.vmem %s757_s4, 16  ;;  %s4770_s12 = scalar_lea.vmem %s757_s4, 32 }
  0x7b   : > { %p4764_p4 = scmp.ne.s32.totalorder %s757_s4, %s4763_s18  ;;  %p4771_p5 = scmp.lt.s32.totalorder %s757_s4, %s757_s4 }
  0x7c   : > { %p4772_p10 = scmp.lt.s32.totalorder %s4770_s12, %s4763_s18 }
  0x7d   : > { %p4766_p7 = pnand %p4764_p4, %p5563_p8 }
  0x7e   : > { %p4773_p1 = por %p4772_p10, %p4771_p5 }
  0x7f   : > { %p4767_p9 = pneg %p4766_p7 }
  0x81   : > { %p4774_p3 = pnand %p4773_p1, %p4767_p9 }
  0x83   : > { %4777 = shalt.err (!%p4774_p3)
}
  0x84   : > { %4396 = dma.hbm_to_vmem [thread:$0]  (!%p5547_p6), %s6510_s11, 16, %s757_s4, [#allocation17]  }
  0x85   : > { %s5331_s27 = smov [#allocation19]   ;;  %s5332_s30 = smov [#allocation22]  }
  0x86   : > { %s780_s0 = sshll.u32 %s5331_s27, 4  ;;  %s802_s7 = sshll.u32 %s5332_s30, 4  ;;  %s781_s0 = int_to_ptr.vmem [resolvable:$true] %s780_s0  ;;  %s803_s7 = int_to_ptr.vmem [resolvable:$true] %s802_s7 }
  0x87   : > { %s6511_s29 = sld [smem:[#allocation60_spill]] }
  0x8d   : > { %s4778_s28 = scalar_lea.hbm %s6511_s29, 16 }
  0x8e   : > { %p4779_p1 = scmp.ne.s32.totalorder %s6511_s29, %s4778_s28  ;;  %p4785_p12 = scmp.lt.u32.totalorder %s4778_s28, %s6511_s29 }
  0x90   : > { %p4781_p3 = pnand %p4779_p1, %p5563_p8 }
  0x92   : > { %p4782_p11 = pneg %p4781_p3 }
  0x94   : > { %p4787_p13 = pnand %p4785_p12, %p4782_p11 }
  0x96   : > { %4790 = shalt.err (!%p4787_p13)
}
  0x97   : > { %s4791_s4 = scalar_lea.vmem %s781_s0, 16  ;;  %s4798_s20 = scalar_lea.vmem %s781_s0, 32 }
  0x98   : > { %p4792_p0 = scmp.ne.s32.totalorder %s781_s0, %s4791_s4  ;;  %p4799_p7 = scmp.lt.s32.totalorder %s781_s0, %s781_s0 }
  0x99   : > { %p4800_p9 = scmp.lt.s32.totalorder %s4798_s20, %s4791_s4 }
  0x9a   : > { %p4794_p2 = pnand %p4792_p0, %p5563_p8 }
  0x9b   : > { %p4801_p5 = por %p4800_p9, %p4799_p7 }
  0x9c   : > { %p4795_p4 = pneg %p4794_p2 }
  0x9e   : > { %p4802_p10 = pnand %p4801_p5, %p4795_p4 }
  0xa0   : > { %4805 = shalt.err (!%p4802_p10)
}
  0xa1   : > { %4402 = dma.hbm_to_vmem [thread:$0]  (!%p5547_p6), %s6511_s29, 16, %s781_s0, [#allocation20]  }
  0xa2   : > { %s6512_s1 = sld [smem:[#allocation62_spill]] }
  0xa8   : > { %s4806_s25 = scalar_lea.hbm %s6512_s1, 16 }
  0xa9   : > { %p4807_p1 = scmp.ne.s32.totalorder %s6512_s1, %s4806_s25  ;;  %p4813_p12 = scmp.lt.u32.totalorder %s4806_s25, %s6512_s1 }
  0xab   : > { %p4809_p3 = pnand %p4807_p1, %p5563_p8 }
  0xad   : > { %p4810_p11 = pneg %p4809_p3 }
  0xaf   : > { %p4815_p13 = pnand %p4813_p12, %p4810_p11 }
  0xb1   : > { %4818 = shalt.err (!%p4815_p13)
}
  0xb2   : > { %s4819_s20 = scalar_lea.vmem %s803_s7, 16  ;;  %s4826_s0 = scalar_lea.vmem %s803_s7, 32 }
  0xb3   : > { %p4820_p0 = scmp.ne.s32.totalorder %s803_s7, %s4819_s20  ;;  %p4827_p7 = scmp.lt.s32.totalorder %s803_s7, %s803_s7 }
  0xb4   : > { %p4828_p9 = scmp.lt.s32.totalorder %s4826_s0, %s4819_s20 }
  0xb5   : > { %p4822_p2 = pnand %p4820_p0, %p5563_p8 }
  0xb6   : > { %p4829_p5 = por %p4828_p9, %p4827_p7 }
  0xb7   : > { %p4823_p4 = pneg %p4822_p2 }
  0xb9   : > { %p4830_p10 = pnand %p4829_p5, %p4823_p4 }
  0xbb   : > { %4833 = shalt.err (!%p4830_p10)
}
  0xbc   : > { %4408 = dma.hbm_to_vmem [thread:$0]  (!%p5547_p6), %s6512_s1, 16, %s803_s7, [#allocation23]  }
  0xbd   : > { %s5333_s28 = smov [#allocation25]   ;;  %s5334_s25 = smov [#allocation28]  }
  0xbe   : > { %s826_s26 = sshll.u32 %s5333_s28, 4  ;;  %s850_s18 = sshll.u32 %s5334_s25, 4  ;;  %s827_s26 = int_to_ptr.vmem [resolvable:$true] %s826_s26  ;;  %s851_s18 = int_to_ptr.vmem [resolvable:$true] %s850_s18 }
  0xbf   : > { %s6513_s13 = sld [smem:[#allocation64_spill]] }
  0xc5   : > { %s4834_s4 = scalar_lea.hbm %s6513_s13, 16 }
  0xc6   : > { %p4835_p1 = scmp.ne.s32.totalorder %s6513_s13, %s4834_s4  ;;  %p4841_p12 = scmp.lt.u32.totalorder %s4834_s4, %s6513_s13 }
  0xc8   : > { %p4837_p3 = pnand %p4835_p1, %p5563_p8 }
  0xca   : > { %p4838_p11 = pneg %p4837_p3 }
  0xcc   : > { %p4843_p13 = pnand %p4841_p12, %p4838_p11 }
  0xce   : > { %4846 = shalt.err (!%p4843_p13)
}
  0xcf   : > { %s4847_s7 = scalar_lea.vmem %s827_s26, 16  ;;  %s4854_s30 = scalar_lea.vmem %s827_s26, 32 }
  0xd0   : > { %p4848_p0 = scmp.ne.s32.totalorder %s827_s26, %s4847_s7  ;;  %p4855_p7 = scmp.lt.s32.totalorder %s827_s26, %s827_s26 }
  0xd1   : > { %p4856_p9 = scmp.lt.s32.totalorder %s4854_s30, %s4847_s7 }
  0xd2   : > { %p4850_p2 = pnand %p4848_p0, %p5563_p8 }
  0xd3   : > { %p4857_p5 = por %p4856_p9, %p4855_p7 }
  0xd4   : > { %p4851_p4 = pneg %p4850_p2 }
  0xd6   : > { %p4858_p10 = pnand %p4857_p5, %p4851_p4 }
  0xd8   : > { %4861 = shalt.err (!%p4858_p10)
}
  0xd9   : > { %4414 = dma.hbm_to_vmem [thread:$0]  (!%p5547_p6), %s6513_s13, 16, %s827_s26, [#allocation26]  }
  0xda   : > { %s6514_s15 = sld [smem:[#allocation66_spill]] }
  0xe0   : > { %s4862_s19 = scalar_lea.hbm %s6514_s15, 16 }
  0xe1   : > { %p4863_p1 = scmp.ne.s32.totalorder %s6514_s15, %s4862_s19  ;;  %p4869_p12 = scmp.lt.u32.totalorder %s4862_s19, %s6514_s15 }
  0xe3   : > { %p4865_p3 = pnand %p4863_p1, %p5563_p8 }
  0xe5   : > { %p4866_p11 = pneg %p4865_p3 }
  0xe7   : > { %p4871_p13 = pnand %p4869_p12, %p4866_p11 }
  0xe9   : > { %4874 = shalt.err (!%p4871_p13)
}
  0xea   : > { %s4875_s7 = scalar_lea.vmem %s851_s18, 16  ;;  %s4882_s26 = scalar_lea.vmem %s851_s18, 32 }
  0xeb   : > { %p4876_p0 = scmp.ne.s32.totalorder %s851_s18, %s4875_s7  ;;  %p4883_p7 = scmp.lt.s32.totalorder %s851_s18, %s851_s18 }
  0xec   : > { %p4884_p9 = scmp.lt.s32.totalorder %s4882_s26, %s4875_s7 }
  0xed   : > { %p4878_p2 = pnand %p4876_p0, %p5563_p8 }
  0xee   : > { %p4885_p5 = por %p4884_p9, %p4883_p7 }
  0xef   : > { %p4879_p4 = pneg %p4878_p2 }
  0xf1   : > { %p4886_p10 = pnand %p4885_p5, %p4879_p4 }
  0xf3   : > { %4889 = shalt.err (!%p4886_p10)
}
  0xf4   : > { %4420 = dma.hbm_to_vmem [thread:$0]  (!%p5547_p6), %s6514_s15, 16, %s851_s18, [#allocation29]  }
  0xf5   : > { %s5335_s25 = smov [#allocation31]   ;;  %s5336_s12 = smov [#allocation15]  }
  0xf6   : > { %s874_s11 = sshll.u32 %s5335_s25, 4  ;;  %s742_s19 = sshll.u32 %s5336_s12, 4  ;;  %s875_s11 = int_to_ptr.vmem [resolvable:$true] %s874_s11  ;;  %s743_s19 = int_to_ptr.vmem [resolvable:$true] %s742_s19 }
  0xf7   : > { %s6515_s17 = sld [smem:[#allocation68_spill]] }
  0xfd   : > { %s4890_s0 = scalar_lea.hbm %s6515_s17, 16 }
  0xfe   : > { %p4891_p1 = scmp.ne.s32.totalorder %s6515_s17, %s4890_s0  ;;  %p4897_p12 = scmp.lt.u32.totalorder %s4890_s0, %s6515_s17 }
 0x100   : > { %p4893_p3 = pnand %p4891_p1, %p5563_p8 }
 0x102   : > { %p4894_p11 = pneg %p4893_p3 }
 0x104   : > { %p4899_p13 = pnand %p4897_p12, %p4894_p11 }
 0x106   : > { %4902 = shalt.err (!%p4899_p13)
}
 0x107   : > { %s4903_s18 = scalar_lea.vmem %s875_s11, 16  ;;  %s4910_s28 = scalar_lea.vmem %s875_s11, 32 }
 0x108   : > { %p4904_p0 = scmp.ne.s32.totalorder %s875_s11, %s4903_s18  ;;  %p4911_p7 = scmp.lt.s32.totalorder %s875_s11, %s875_s11 }
 0x109   : > { %p4912_p9 = scmp.lt.s32.totalorder %s4910_s28, %s4903_s18 }
 0x10a   : > { %p4906_p2 = pnand %p4904_p0, %p5563_p8 }
 0x10b   : > { %p4913_p5 = por %p4912_p9, %p4911_p7 }
 0x10c   : > { %p4907_p4 = pneg %p4906_p2 }
 0x10e   : > { %p4914_p10 = pnand %p4913_p5, %p4907_p4 }
 0x110   : > { %4917 = shalt.err (!%p4914_p10)
}
 0x111   : > { %4426 = dma.hbm_to_vmem [thread:$0]  (!%p5547_p6), %s6515_s17, 16, %s875_s11, [#allocation32]  }
 0x112   : > { %s6516_s0 = sld [smem:[#allocation57_spill]] }
 0x118   : > { %s4918_s27 = scalar_lea.hbm %s6516_s0, 1024 }
 0x119   : > { %p4919_p1 = scmp.ne.s32.totalorder %s6516_s0, %s4918_s27  ;;  %p4925_p12 = scmp.lt.u32.totalorder %s4918_s27, %s6516_s0 }
 0x11b   : > { %p4921_p3 = pnand %p4919_p1, %p5563_p8 }
 0x11d   : > { %p4922_p11 = pneg %p4921_p3 }
 0x11f   : > { %p4927_p13 = pnand %p4925_p12, %p4922_p11 }
 0x121   : > { %4930 = shalt.err (!%p4927_p13)
}
 0x122   : > { %s4931_s28 = scalar_lea.vmem %s743_s19, 1024  ;;  %p4939_p7 = scmp.lt.s32.totalorder %s743_s19, %s743_s19 }
 0x123   : > { %p4932_p0 = scmp.ne.s32.totalorder %s743_s19, %s4931_s28  ;;  %p4940_p9 = scmp.lt.s32.totalorder %s4931_s28, %s4931_s28 }
 0x125   : > { %p4934_p2 = pnand %p4932_p0, %p5563_p8  ;;  %p4941_p5 = por %p4940_p9, %p4939_p7 }
 0x127   : > { %p4935_p4 = pneg %p4934_p2 }
 0x129   : > { %p4942_p10 = pnand %p4941_p5, %p4935_p4 }
 0x12b   : > { %4945 = shalt.err (!%p4942_p10)
}
 0x12c   : > { %s6517_s11 = smov 4   ;;  %s6518_s25 = smov 64  }
 0x12d   : > { %4393 = dma.hbm_to_vmem [thread:$0]  (!%p5547_p6), %s6516_s0, 1024, %s743_s19, [#allocation14], %s6518_s25, %s6518_s25, %s6517_s11  }
 0x12e   : > { %s5337_s20 = smov [#allocation18]   ;;  %s5338_s7 = smov [#allocation21]  }
 0x12f   : > { %s766_s27 = sshll.u32 %s5337_s20, 4  ;;  %s791_s26 = sshll.u32 %s5338_s7, 4  ;;  %s767_s27 = int_to_ptr.vmem [resolvable:$true] %s766_s27  ;;  %s792_s26 = int_to_ptr.vmem [resolvable:$true] %s791_s26 }
 0x130   : > { %s6519_s28 = sld [smem:[#allocation59_spill]] }
 0x136   : > { %s4946_s1 = scalar_lea.hbm %s6519_s28, 1024 }
 0x137   : > { %p4947_p1 = scmp.ne.s32.totalorder %s6519_s28, %s4946_s1  ;;  %p4953_p12 = scmp.lt.u32.totalorder %s4946_s1, %s6519_s28 }
 0x139   : > { %p4949_p3 = pnand %p4947_p1, %p5563_p8 }
 0x13b   : > { %p4950_p11 = pneg %p4949_p3 }
 0x13d   : > { %p4955_p13 = pnand %p4953_p12, %p4950_p11 }
 0x13f   : > { %4958 = shalt.err (!%p4955_p13)
}
 0x140   : > { %s4959_s19 = scalar_lea.vmem %s767_s27, 1024  ;;  %p4967_p7 = scmp.lt.s32.totalorder %s767_s27, %s767_s27 }
 0x141   : > { %p4960_p0 = scmp.ne.s32.totalorder %s767_s27, %s4959_s19  ;;  %p4968_p9 = scmp.lt.s32.totalorder %s4959_s19, %s4959_s19 }
 0x143   : > { %p4962_p2 = pnand %p4960_p0, %p5563_p8  ;;  %p4969_p5 = por %p4968_p9, %p4967_p7 }
 0x145   : > { %p4963_p4 = pneg %p4962_p2 }
 0x147   : > { %p4970_p10 = pnand %p4969_p5, %p4963_p4 }
 0x149   : > { %4973 = shalt.err (!%p4970_p10)
}
 0x14a   : > { %4399 = dma.hbm_to_vmem [thread:$0]  (!%p5547_p6), %s6519_s28, 1024, %s767_s27, [#allocation17], %s6518_s25, %s6518_s25, %s6517_s11  }
 0x14b   : > { %s6520_s4 = sld [smem:[#allocation61_spill]] }
 0x151   : > { %s4974_s20 = scalar_lea.hbm %s6520_s4, 16 }
 0x152   : > { %p4975_p1 = scmp.ne.s32.totalorder %s6520_s4, %s4974_s20  ;;  %p4981_p12 = scmp.lt.u32.totalorder %s4974_s20, %s6520_s4 }
 0x154   : > { %p4977_p3 = pnand %p4975_p1, %p5563_p8 }
 0x156   : > { %p4978_p11 = pneg %p4977_p3 }
 0x158   : > { %p4983_p13 = pnand %p4981_p12, %p4978_p11 }
 0x15a   : > { %4986 = shalt.err (!%p4983_p13)
}
 0x15b   : > { %s4987_s19 = scalar_lea.vmem %s792_s26, 16  ;;  %s4994_s27 = scalar_lea.vmem %s792_s26, 32 }
 0x15c   : > { %p4988_p0 = scmp.ne.s32.totalorder %s792_s26, %s4987_s19  ;;  %p4995_p7 = scmp.lt.s32.totalorder %s792_s26, %s792_s26 }
 0x15d   : > { %p4996_p9 = scmp.lt.s32.totalorder %s4994_s27, %s4987_s19 }
 0x15e   : > { %p4990_p2 = pnand %p4988_p0, %p5563_p8 }
 0x15f   : > { %p4997_p5 = por %p4996_p9, %p4995_p7 }
 0x160   : > { %p4991_p4 = pneg %p4990_p2 }
 0x162   : > { %p4998_p10 = pnand %p4997_p5, %p4991_p4 }
 0x164   : > { %5001 = shalt.err (!%p4998_p10)
}
 0x165   : > { %4405 = dma.hbm_to_vmem [thread:$0]  (!%p5547_p6), %s6520_s4, 16, %s792_s26, [#allocation20]  }
 0x166   : > { %s5339_s17 = smov [#allocation24]   ;;  %s5340_s20 = smov [#allocation27]  }
 0x167   : > { %s812_s1 = sshll.u32 %s5339_s17, 4  ;;  %s836_s7 = sshll.u32 %s5340_s20, 4  ;;  %s813_s1 = int_to_ptr.vmem [resolvable:$true] %s812_s1  ;;  %s837_s7 = int_to_ptr.vmem [resolvable:$true] %s836_s7 }
 0x168   : > { %s6521_s12 = sld [smem:[#allocation63_spill]] }
 0x16e   : > { %s5002_s0 = scalar_lea.hbm %s6521_s12, 1024 }
 0x16f   : > { %p5003_p1 = scmp.ne.s32.totalorder %s6521_s12, %s5002_s0  ;;  %p5009_p12 = scmp.lt.u32.totalorder %s5002_s0, %s6521_s12 }
 0x171   : > { %p5005_p3 = pnand %p5003_p1, %p5563_p8 }
 0x173   : > { %p5006_p11 = pneg %p5005_p3 }
 0x175   : > { %p5011_p13 = pnand %p5009_p12, %p5006_p11 }
 0x177   : > { %5014 = shalt.err (!%p5011_p13)
}
 0x178   : > { %s5015_s26 = scalar_lea.vmem %s813_s1, 1024  ;;  %p5023_p7 = scmp.lt.s32.totalorder %s813_s1, %s813_s1 }
 0x179   : > { %p5016_p0 = scmp.ne.s32.totalorder %s813_s1, %s5015_s26  ;;  %p5024_p9 = scmp.lt.s32.totalorder %s5015_s26, %s5015_s26 }
 0x17b   : > { %p5018_p2 = pnand %p5016_p0, %p5563_p8  ;;  %p5025_p5 = por %p5024_p9, %p5023_p7 }
 0x17d   : > { %p5019_p4 = pneg %p5018_p2 }
 0x17f   : > { %p5026_p10 = pnand %p5025_p5, %p5019_p4 }
 0x181   : > { %5029 = shalt.err (!%p5026_p10)
}
 0x182   : > { %4411 = dma.hbm_to_vmem [thread:$0]  (!%p5547_p6), %s6521_s12, 1024, %s813_s1, [#allocation23], %s6518_s25, %s6518_s25, %s6517_s11  }
 0x183   : > { %s6522_s14 = sld [smem:[#allocation65_spill]] }
 0x189   : > { %s5030_s20 = scalar_lea.hbm %s6522_s14, 1024 }
 0x18a   : > { %p5031_p1 = scmp.ne.s32.totalorder %s6522_s14, %s5030_s20  ;;  %p5037_p12 = scmp.lt.u32.totalorder %s5030_s20, %s6522_s14 }
 0x18c   : > { %p5033_p3 = pnand %p5031_p1, %p5563_p8 }
 0x18e   : > { %p5034_p11 = pneg %p5033_p3 }
 0x190   : > { %p5039_p13 = pnand %p5037_p12, %p5034_p11 }
 0x192   : > { %5042 = shalt.err (!%p5039_p13)
}
 0x193   : > { %s5043_s13 = scalar_lea.vmem %s837_s7, 1024  ;;  %p5051_p7 = scmp.lt.s32.totalorder %s837_s7, %s837_s7 }
 0x194   : > { %p5044_p0 = scmp.ne.s32.totalorder %s837_s7, %s5043_s13  ;;  %p5052_p9 = scmp.lt.s32.totalorder %s5043_s13, %s5043_s13 }
 0x196   : > { %p5046_p2 = pnand %p5044_p0, %p5563_p8  ;;  %p5053_p5 = por %p5052_p9, %p5051_p7 }
 0x198   : > { %p5047_p4 = pneg %p5046_p2 }
 0x19a   : > { %p5054_p10 = pnand %p5053_p5, %p5047_p4 }
 0x19c   : > { %5057 = shalt.err (!%p5054_p10)
}
 0x19d   : > { %4417 = dma.hbm_to_vmem [thread:$0]  (!%p5547_p6), %s6522_s14, 1024, %s837_s7, [#allocation26], %s6518_s25, %s6518_s25, %s6517_s11  }
 0x19e   : > { %s5341_s21 = smov [#allocation30]   ;;  %s5342_s15 = smov [#allocation33]  }
 0x19f   : > { %s860_s0 = sshll.u32 %s5341_s21, 4  ;;  %s896_s17 = sshll.u32 %s5342_s15, 4  ;;  %s861_s0 = int_to_ptr.vmem [resolvable:$true] %s860_s0  ;;  %s897_s17 = int_to_ptr.vmem [resolvable:$true] %s896_s17 }
 0x1a0   : > { %s6523_s16 = sld [smem:[#allocation67_spill]] }
 0x1a6   : > { %s5058_s18 = scalar_lea.hbm %s6523_s16, 1024 }
 0x1a7   : > { %p5059_p1 = scmp.ne.s32.totalorder %s6523_s16, %s5058_s18  ;;  %p5065_p12 = scmp.lt.u32.totalorder %s5058_s18, %s6523_s16 }
 0x1a9   : > { %p5061_p3 = pnand %p5059_p1, %p5563_p8 }
 0x1ab   : > { %p5062_p11 = pneg %p5061_p3 }
 0x1ad   : > { %p5067_p13 = pnand %p5065_p12, %p5062_p11 }
 0x1af   : > { %5070 = shalt.err (!%p5067_p13)
}
 0x1b0   : > { %s5071_s7 = scalar_lea.vmem %s861_s0, 1024  ;;  %p5079_p7 = scmp.lt.s32.totalorder %s861_s0, %s861_s0 }
 0x1b1   : > { %p5072_p0 = scmp.ne.s32.totalorder %s861_s0, %s5071_s7  ;;  %p5080_p9 = scmp.lt.s32.totalorder %s5071_s7, %s5071_s7 }
 0x1b3   : > { %p5074_p2 = pnand %p5072_p0, %p5563_p8  ;;  %p5081_p5 = por %p5080_p9, %p5079_p7 }
 0x1b5   : > { %p5075_p4 = pneg %p5074_p2 }
 0x1b7   : > { %p5082_p10 = pnand %p5081_p5, %p5075_p4 }
 0x1b9   : > { %5085 = shalt.err (!%p5082_p10)
}
 0x1ba   : > { %4423 = dma.hbm_to_vmem [thread:$0]  (!%p5547_p6), %s6523_s16, 1024, %s861_s0, [#allocation29], %s6518_s25, %s6518_s25, %s6517_s11  }
 0x1bb   : > { %s6524_s22 = sld [smem:[#allocation73_spill]] }
 0x1c1   : > { %s5086_s30 = scalar_lea.hbm %s6524_s22, 2048 }
 0x1c2   : > { %p5087_p1 = scmp.ne.s32.totalorder %s6524_s22, %s5086_s30  ;;  %p5093_p12 = scmp.lt.u32.totalorder %s5086_s30, %s6524_s22 }
 0x1c4   : > { %p5089_p3 = pnand %p5087_p1, %p5563_p8 }
 0x1c6   : > { %p5090_p11 = pneg %p5089_p3 }
 0x1c8   : > { %p5095_p13 = pnand %p5093_p12, %p5090_p11 }
 0x1ca   : > { %5098 = shalt.err (!%p5095_p13)
}
 0x1cb   : > { %s5099_s1 = scalar_lea.vmem %s897_s17, 2048  ;;  %p5107_p7 = scmp.lt.s32.totalorder %s897_s17, %s897_s17 }
 0x1cc   : > { %p5100_p0 = scmp.ne.s32.totalorder %s897_s17, %s5099_s1  ;;  %p5108_p9 = scmp.lt.s32.totalorder %s5099_s1, %s5099_s1 }
 0x1ce   : > { %p5102_p2 = pnand %p5100_p0, %p5563_p8  ;;  %p5109_p5 = por %p5108_p9, %p5107_p7 }
 0x1d0   : > { %p5103_p4 = pneg %p5102_p2 }
 0x1d2   : > { %p5110_p10 = pnand %p5109_p5, %p5103_p4 }
 0x1d4   : > { %5113 = shalt.err (!%p5110_p10)
}
 0x1d5   : > { %s5343_s0 = smov 128   ;;  %s5344_s7 = smov 8  }
 0x1d6   : > { %4429 = dma.hbm_to_vmem [thread:$0]  (!%p5547_p6), %s6524_s22, 2048, %s897_s17, [#allocation32], %s5343_s0, %s5343_s0, %s5344_s7  }
 0x1d7   : > { %s5345_s15 = smov [#allocation34]   ;;  %s6525_s24 = sld [smem:[#allocation75_spill]] }
 0x1d8   : > { %s912_s20 = sshll.u32 %s5345_s15, 4  ;;  %s913_s20 = int_to_ptr.vmem [resolvable:$true] %s912_s20 }
 0x1dd   : > { %s5114_s19 = scalar_lea.hbm %s6525_s24, 2048 }
 0x1de   : > { %p5115_p1 = scmp.ne.s32.totalorder %s6525_s24, %s5114_s19  ;;  %p5121_p12 = scmp.lt.u32.totalorder %s5114_s19, %s6525_s24 }
 0x1e0   : > { %p5117_p3 = pnand %p5115_p1, %p5563_p8 }
 0x1e2   : > { %p5118_p11 = pneg %p5117_p3 }
 0x1e4   : > { %p5123_p13 = pnand %p5121_p12, %p5118_p11 }
 0x1e6   : > { %5126 = shalt.err (!%p5123_p13)
}
 0x1e7   : > { %s5127_s17 = scalar_lea.vmem %s913_s20, 2048  ;;  %p5135_p7 = scmp.lt.s32.totalorder %s913_s20, %s913_s20 }
 0x1e8   : > { %p5128_p0 = scmp.ne.s32.totalorder %s913_s20, %s5127_s17  ;;  %p5136_p9 = scmp.lt.s32.totalorder %s5127_s17, %s5127_s17 }
 0x1ea   : > { %p5130_p2 = pnand %p5128_p0, %p5563_p8  ;;  %p5137_p5 = por %p5136_p9, %p5135_p7 }
 0x1ec   : > { %p5131_p4 = pneg %p5130_p2 }
 0x1ee   : > { %p5138_p10 = pnand %p5137_p5, %p5131_p4 }
 0x1f0   : > { %5141 = shalt.err (!%p5138_p10)
}
 0x1f1   : > { %4432 = dma.hbm_to_vmem [thread:$0]  (!%p5547_p6), %s6525_s24, 2048, %s913_s20, [#allocation35], %s6518_s25, %s6518_s25, %s6517_s11  }
 0x1f2   : > { %s3738_s23 = sadd.s32 4294967294, %s5324_s6   ;;  %s67_s2 = sadd.s32 1, %s5320_s3 }
 0x1f3   : > { %p69_p8 = scmp.ge.s32.totalorder %s67_s2, 2  ;;  %s74_s7 = sadd.s32 1, %s5312_s9 }
 0x1f4   : > { %p81_p1 = scmp.ne.s32.totalorder %s5312_s9, %s5308_s5  ;;  %p82_p3 = scmp.eq.s32.totalorder %s5324_s6, 0 }
 0x1f5   : > { %s6576_s2 = smov (%p69_p8, %s67_s2), 0  ;;  %p87_p12 = scmp.ne.s32.totalorder %s5308_s5, %s5304_s8 }
 0x1f6   : > { %p5892_p11 = por %p82_p3, %p81_p1  ;;  %s71_s11 = ssub.s32 %s5320_s3, %s6576_s2 }
 0x1f7   : > { %p685_p6 = scmp.eq.s32.totalorder %s5531_s10, 1  ;;  %p72_p13 = scmp.eq.s32.totalorder %s71_s11, 0 }
 0x1f8   : > { %p6527_p0 = scmp.eq.s32.totalorder %s5531_s10, 0  ;;  %p691_p7 = scmp.eq.s32.totalorder %s3738_s23, 1 }
 0x1f9   : > { %p5907_p4 = por %p685_p6, %p81_p1  ;;  %p4460_p5 = scmp.lt.s32.totalorder %s5324_s6, 2 }
 0x1fa   : > { %p5903_p2 = por %p6527_p0, %p87_p12  ;;  %p5914_p9 = por %p691_p7, %p87_p12 }
 0x1fb   : > { %s6529_s21 = scalar_select %p5907_p4, 1, 0 }
 0x1fc   : > { %s6528_s25 = scalar_select %p5903_p2, 1, 0 }
 0x1fd   : > { %s5912_s15 = scalar_select %p72_p13, %s5312_s9, %s74_s7  }
 0x1fe   : > { %s6530_s20 = scalar_select %p5914_p9, 1, 0 }
 0x1ff   : > { %s935_s30 = sand.u32 1, %s5312_s9   ;;  %s3758_s18 = sshll.u32 %s5320_s3, 6 }
 0x200   : > { %s5921_s19 = sshll.u32 %s935_s30, 2  ;;  %s6531_s1 = sld [smem:[#allocation51_spill]] }
 0x201   : > { %s939_s4 = scalar_lea.vmem [#allocation7], %s5921_s19  ;;  %p5931_p10 = pnand %p4460_p5, %p5892_p11 }
 0x202   : > { %s946_s0 = sshll.u32 %s939_s4, 4  ;;  %s6533_s27 = sld [smem:[#allocation52_spill]]  ;;  %s5935_s0 = int_to_ptr.vmem [resolvable:$true] %s946_s0 }
 0x203   : > { %s936_s12 = scalar_lea.sflag [#allocation8], %s935_s30  ;;  %p5144_p1 = pneg %p5931_p10 }
 0x206   : > { %s5926_s17 = scalar_lea.hbm %s6531_s1, %s3758_s18  ;;  %s5147_s16 = scalar_lea.hbm %s6531_s1, 128 }
 0x207   : > { %s5142_s14 = scalar_lea.hbm %s5926_s17, 64  ;;  %p5148_p12 = scmp.lt.u32.totalorder %s5926_s17, %s6531_s1 }
 0x208   : > { %s5940_s13 = scalar_lea.hbm %s6533_s27, %s3758_s18  ;;  %p5143_p8 = scmp.ne.s32.totalorder %s5926_s17, %s5142_s14 }
 0x209   : > { %p5149_p6 = scmp.lt.u32.totalorder %s5147_s16, %s5142_s14  ;;  %p5151_p0 = scmp.lt.u32.totalorder %s5142_s14, %s5926_s17 }
 0x20a   : > { %p5145_p3 = pnand %p5144_p1, %p5143_p8 }
 0x20b   : > { %p5150_p13 = por %p5149_p6, %p5148_p12 }
 0x20c   : > { %p5146_p11 = pneg %p5145_p3 }
 0x20d   : > { %p5152_p7 = por %p5151_p0, %p5150_p13 }
 0x20f   : > { %p5153_p5 = pnand %p5152_p7, %p5146_p11 }
 0x211   : > { %5156 = shalt.err (!%p5153_p5)
}
 0x212   : > { %s5157_s30 = scalar_lea.vmem %s5935_s0, 64  ;;  %s5346_s18 = smov [#allocation7]  }
 0x213   : > { %p5158_p8 = scmp.ne.s32.totalorder %s5935_s0, %s5157_s30  ;;  %s5162_s7 = sshll.u32 %s5346_s18, 4  ;;  %s5163_s7 = int_to_ptr.vmem [resolvable:$false] %s5162_s7 }
 0x214   : > { %s5164_s22 = scalar_lea.vmem %s5163_s7, 128  ;;  %p5165_p4 = scmp.lt.s32.totalorder %s5935_s0, %s5163_s7 }
 0x215   : > { %p5160_p3 = pnand %p5158_p8, %p5144_p1  ;;  %p5166_p12 = scmp.lt.s32.totalorder %s5164_s22, %s5157_s30 }
 0x217   : > { %p5161_p9 = pneg %p5160_p3  ;;  %p5167_p6 = por %p5166_p12, %p5165_p4 }
 0x219   : > { %p5168_p13 = pnand %p5167_p6, %p5161_p9 }
 0x21b   : > { %5171 = shalt.err (!%p5168_p13)
}
 0x21c   : > { %4436 = dma.hbm_to_vmem [thread:$0]  (!%p5931_p10), %s5926_s17, 64, %s5935_s0, %s936_s12  }
 0x21d   : > { %s953_s14 = sand.u32 1, %s5324_s6   ;;  %s957_s16 = scalar_lea.vmem [#allocation10], %s5921_s19 }
 0x21e   : > { %s964_s24 = sshll.u32 %s957_s16, 4  ;;  %s954_s11 = scalar_lea.sflag [#allocation11], %s953_s14  ;;  %s965_s24 = int_to_ptr.vmem [resolvable:$true] %s964_s24 }
 0x21f   : > { %s5172_s26 = scalar_lea.hbm %s5940_s13, 64  ;;  %s5177_s18 = scalar_lea.hbm %s6533_s27, 128 }
 0x220   : > { %p5173_p4 = scmp.ne.s32.totalorder %s5940_s13, %s5172_s26  ;;  %p5178_p0 = scmp.lt.u32.totalorder %s5940_s13, %s6533_s27 }
 0x221   : > { %p5179_p7 = scmp.lt.u32.totalorder %s5177_s18, %s5172_s26  ;;  %p5181_p8 = scmp.lt.u32.totalorder %s5172_s26, %s5940_s13 }
 0x222   : > { %p5175_p9 = pnand %p5173_p4, %p5144_p1 }
 0x223   : > { %p5180_p5 = por %p5179_p7, %p5178_p0 }
 0x224   : > { %p5176_p11 = pneg %p5175_p9 }
 0x225   : > { %p5182_p3 = por %p5181_p8, %p5180_p5 }
 0x227   : > { %p5183_p12 = pnand %p5182_p3, %p5176_p11 }
 0x229   : > { %5186 = shalt.err (!%p5183_p12)
}
 0x22a   : > { %s5187_s12 = scalar_lea.vmem %s965_s24, 64  ;;  %s5347_s19 = smov [#allocation10]  }
 0x22b   : > { %p5188_p6 = scmp.ne.s32.totalorder %s965_s24, %s5187_s12  ;;  %s5192_s17 = sshll.u32 %s5347_s19, 4  ;;  %s5193_s17 = int_to_ptr.vmem [resolvable:$false] %s5192_s17 }
 0x22c   : > { %s5194_s0 = scalar_lea.vmem %s5193_s17, 128  ;;  %p5195_p9 = scmp.lt.s32.totalorder %s965_s24, %s5193_s17 }
 0x22d   : > { %p5190_p13 = pnand %p5188_p6, %p5144_p1  ;;  %p5196_p2 = scmp.lt.s32.totalorder %s5194_s0, %s5187_s12 }
 0x22f   : > { %p5191_p4 = pneg %p5190_p13  ;;  %p5197_p0 = por %p5196_p2, %p5195_p9 }
 0x231   : > { %p5198_p7 = pnand %p5197_p0, %p5191_p4 }
 0x233   : > { %5201 = shalt.err (!%p5198_p7)
}
 0x234   : > { %4439 = dma.hbm_to_vmem [thread:$0]  (!%p5931_p10), %s5940_s13, 64, %s965_s24, %s954_s11  }
 0x235   : > { %s6534_s14 = sld [smem:[#allocation50_spill]] }
 0x23b   : > { %p6535_p11 = scmp.ne.s32.totalorder %s6534_s14, 0 }
 0x23c   : > { %s5991_s16 = sand.u32 (!%p6535_p11), 1, %s5308_s5   ;;  %p6536_p2 = scmp.ne.s32.totalorder (!%p6535_p11), %s6528_s25, 0 }
 0x23d   : > { %973 = sbr.rel (%p6535_p11) target bundleno = 6471 (0x1947), region = 132  ;;  %s3762_s26 = sshll.u32 (!%p6535_p11), %s5991_s16, 2 }
 0x23e   : > { %s976_s4 = scalar_lea.sflag (!%p6535_p11), [#allocation8], %s5991_s16  ;;  %s5995_s30 = scalar_lea.vmem (!%p6535_p11), [#allocation7], %s3762_s26 }
 0x244   : > { %5255 = dma.done.wait (%p6536_p2), %s976_s4, 64  }
 0x245   : > { %5257 = vsyncadd (%p6536_p2), %s976_s4, 4294967232  ;;  %s984_s23 = sand.u32 1, %s5531_s10   ;;  %s6002_s24 = scalar_lea.vmem [#allocation10], %s3762_s26 }
 0x246   : > { %s985_s13 = scalar_lea.sflag [#allocation11], %s984_s23 }
 0x247   : > { %5259 = dma.done.wait (%p6536_p2), %s985_s13, 64  }
 0x248   : > { %5261 = vsyncadd (%p6536_p2), %s985_s13, 4294967232  ;;  %p6537_p10 = scmp.eq.s32.totalorder %s5531_s10, 0 }
 0x24a   : > { %5263 = dma.done.wait (%p6537_p10), [#allocation11], 1024   ;;  %p6538_p1 = pmov %p6537_p10 }
 0x24c   : > { %5265 = vsyncadd (%p6538_p1), [#allocation11], 4294966272  ;;  %p6539_p5 = pmov %p6538_p1 }
 0x24d   : > { %p6540_p8 = pmov %p6538_p1 }
 0x24e   : > { %5267 = dma.done.wait (%p6539_p5), [#allocation14], 2048  }
 0x24f   : > { %5269 = vsyncadd (%p6540_p8), [#allocation14], 4294965248  ;;  %p6541_p3 = pmov %p6538_p1 }
 0x250   : > { %p6542_p12 = pmov %p6538_p1 }
 0x251   : > { %5271 = dma.done.wait (%p6541_p3), [#allocation17], 1040  }
 0x252   : > { %5273 = vsyncadd (%p6542_p12), [#allocation17], 4294966256  ;;  %p6543_p6 = pmov %p6538_p1 }
 0x253   : > { %p6544_p13 = pmov %p6538_p1 }
 0x254   : > { %5275 = dma.done.wait (%p6543_p6), [#allocation20], 32  }
 0x255   : > { %5277 = vsyncadd (%p6544_p13), [#allocation20], 4294967264  ;;  %p6545_p4 = pmov %p6538_p1 }
 0x256   : > { %p6546_p9 = pmov %p6538_p1 }
 0x257   : > { %5279 = dma.done.wait (%p6545_p4), [#allocation23], 1040  }
 0x258   : > { %5281 = vsyncadd (%p6546_p9), [#allocation23], 4294966256  ;;  %p6547_p0 = pmov %p6538_p1 }
 0x25a   : > { %5283 = dma.done.wait (%p6547_p0), [#allocation26], 1040   ;;  %p6548_p7 = pmov %p6547_p0 }
 0x25b   : > { %p6549_p11 = pmov %p6547_p0 }
 0x25c   : > { %5285 = vsyncadd (%p6548_p7), [#allocation26], 4294966256 }
 0x25d   : > { %5287 = dma.done.wait (%p6549_p11), [#allocation29], 1040   ;;  %p6550_p2 = pmov %p6547_p0 }
 0x25e   : > { %p6551_p10 = pmov %p6547_p0 }
 0x25f   : > { %5289 = vsyncadd (%p6550_p2), [#allocation29], 4294966256 }
 0x260   : > { %5291 = dma.done.wait (%p6551_p10), [#allocation32], 2064   ;;  %p6552_p1 = pmov %p6547_p0 }
 0x261   : > { %p6553_p5 = pmov %p6547_p0 }
 0x262   : > { %5293 = vsyncadd (%p6552_p1), [#allocation32], 4294965232 }
 0x263   : > { %5295 = dma.done.wait (%p6553_p5), [#allocation35], 2048   ;;  %p6554_p8 = pmov %p6547_p0 }
 0x264   : > { %v5348_v0 = vmov 0.0   ;;  %vm5349_vm0 = vmmov 0   ;;  %v4552_v1 = vld [vmem:[#allocation13] sm:$0xff]   ;;  %v4553_v2 = vld [vmem:[#allocation13 + $0x8] sm:$0xff]   ;;  %v4554_v3 = vld [vmem:[#allocation13 + $0x10] sm:$0xff]   ;;  %s6555_s11 = sld [smem:[#allocation56_spill]] }
 0x265   : > { %5297 = vsyncadd (%p6554_p8), [#allocation35], 4294965248  ;;  %4058 = vmatprep.subr.bf16.mxu0 %v5348_v0  ;;  %4074 = vmatprep.mubr.msk.bf16.mxu0 %vm5349_vm0, %v5348_v0  ;;  %v4555_v4 = vld [vmem:[#allocation13 + $0x18] sm:$0xff]   ;;  %v4556_v5 = vld [vmem:[#allocation13 + $0x20] sm:$0xff]   ;;  %vm1582_vm1 = vcmask 257024   ;;  %s5350_s18 = smov 96  }
 0x266   : > { %4078 = vmatprep.subr.bf16.mxu1 %v5348_v0  ;;  %4094 = vmatprep.mubr.msk.bf16.mxu1 %vm5349_vm0, %v5348_v0  ;;  %v4557_v6 = vld [vmem:[#allocation13 + $0x28] sm:$0xff]   ;;  %v4558_v7 = vld [vmem:[#allocation13 + $0x30] sm:$0xff]   ;;  %v4576_v8 = vld [vmem:[#allocation15] sm:$0xff]   ;;  %vm1782_vm2 = vcmask 261120   ;;  %s6556_s12 = sld [smem:[#allocation54_spill]]  ;;  %vm1846_vm3 = vcmask 1043456  }
 0x267   : > { %4059 = vmatpush3.bf16.msra.mxu0 %v4552_v1  ;;  %v4559_v9 = vld [vmem:[#allocation13 + $0x38] sm:$0xff]   ;;  %4079 = vmatpush3.bf16.msra.mxu1 %v4576_v8  ;;  %v4577_v10 = vld [vmem:[#allocation15 + $0x8] sm:$0xff]   ;;  %v1135_v11 = vld [vmem:[%s5995_s30] sm:$0xf]  ;;  %vm1829_vm4 = vcmask 64512   ;;  %s5351_s19 = smov 64  }
 0x268   : > { %4060 = vmatprep.subr.bf16.mxu0 %v5348_v0  ;;  %4080 = vmatprep.subr.bf16.mxu1 %v5348_v0  ;;  %v4560_v12 = vld [vmem:[#allocation27] sm:$0xff]   ;;  %v4561_v14 = vld [vmem:[#allocation27 + $0x8] sm:$0xff]   ;;  %v4562_v16 = vld [vmem:[#allocation27 + $0x10] sm:$0xff]   ;;  %s5352_s17 = smov 32   ;;  %vm2011_vm5 = vcmask 519424   ;;  %vm2130_vm6 = vcmask 781824  }
 0x269   : > { %v4578_v13 = vld [vmem:[#allocation15 + $0x10] sm:$0xff]   ;;  %v4579_v15 = vld [vmem:[#allocation15 + $0x18] sm:$0xff]   ;;  %v4580_v17 = vld [vmem:[#allocation15 + $0x20] sm:$0xff]   ;;  %vm2249_vm7 = vcmask 1044224   ;;  %s6557_s26 = sld [smem:[#allocation69_spill]]  ;;  %s6559_s13 = sld [smem:[#allocation71_spill]] }
 0x26a   : > { %v4563_v18 = vld [vmem:[#allocation27 + $0x18] sm:$0xff]   ;;  %v4564_v20 = vld [vmem:[#allocation27 + $0x20] sm:$0xff]   ;;  %v4565_v22 = vld [vmem:[#allocation27 + $0x28] sm:$0xff]   ;;  %s6560_s25 = sld [smem:[#allocation72_spill]]  ;;  %s6561_s22 = sld [smem:[#allocation74_spill]] }
 0x26b   : > { %4061 = vmatpush3.bf16.msra.mxu0 %v4553_v2  ;;  %4081 = vmatpush3.bf16.msra.mxu1 %v4577_v10  ;;  %v4581_v19 = vld [vmem:[#allocation15 + $0x28] sm:$0xff]   ;;  %v4582_v21 = vld [vmem:[#allocation15 + $0x30] sm:$0xff]   ;;  %v4583_v23 = vld [vmem:[#allocation15 + $0x38] sm:$0xff]   ;;  %s6563_s0 = sld [smem:[#allocation49_spill]]  ;;  %s3780_s14 = sshll.u32 %s5991_s16, 3 }
 0x26c   : > { %4062 = vmatprep.subr.bf16.mxu0 %v5348_v0  ;;  %4082 = vmatprep.subr.bf16.mxu1 %v5348_v0  ;;  %v4566_v24 = vld [vmem:[#allocation27 + $0x30] sm:$0xff]   ;;  %v4584_v25 = vld [vmem:[#allocation30] sm:$0xff]   ;;  %v4567_v26 = vld [vmem:[#allocation27 + $0x38] sm:$0xff]   ;;  %p6567_p12 = scmp.ne.s32.totalorder %s6529_s21, 0 }
 0x26d   : > { %v4585_v27 = vld [vmem:[#allocation30 + $0x8] sm:$0xff]   ;;  %v4568_v29 = vld [vmem:[#allocation12] sm:$0xff]   ;;  %v4569_v31 = vld [vmem:[#allocation12 + $0x8] sm:$0xff]  }
 0x26e   : > { %v1358_v28 = vld [vmem:[%s6002_s24] sm:$0xf]  ;;  %v4587_v32 = vld [vmem:[#allocation30 + $0x18] sm:$0xff]   ;;  %v4570_v33 = vld [vmem:[#allocation12 + $0x10] sm:$0xff]   ;;  %s6565_s24 = sld [smem:[#allocation78_spill]] }
 0x26f   : > { %4063 = vmatpush3.bf16.msra.mxu0 %v4554_v3  ;;  %4083 = vmatpush3.bf16.msra.mxu1 %v4578_v13  ;;  %v4586_v30 = vld [vmem:[#allocation30 + $0x10] sm:$0xff]   ;;  %v4588_v34 = vld [vmem:[#allocation30 + $0x20] sm:$0xff]   ;;  %v4589_v36 = vld [vmem:[#allocation30 + $0x28] sm:$0xff]  }
 0x270   : > { %4064 = vmatprep.subr.bf16.mxu0 %v5348_v0  ;;  %4084 = vmatprep.subr.bf16.mxu1 %v5348_v0  ;;  %v4571_v35 = vld [vmem:[#allocation12 + $0x18] sm:$0xff]   ;;  %v4572_v37 = vld [vmem:[#allocation12 + $0x20] sm:$0xff]   ;;  %v4573_v38 = vld [vmem:[#allocation12 + $0x28] sm:$0xff]  }
 0x271   : > { %v4574_v39 = vld [vmem:[#allocation12 + $0x30] sm:$0xff]   ;;  %v4575_v40 = vld [vmem:[#allocation12 + $0x38] sm:$0xff]   ;;  %v4591_v43 = vld [vmem:[#allocation30 + $0x38] sm:$0xff]   ;;  %s3919_s10 = sshll.u32 %s6563_s0, 7  ;;  %s5354_s0 = smov [#allocation36]  }
 0x272   : > { %v6096_v41 = vld [vmem:[%s5995_s30] sm:$0xf]  ;;  %v4590_v42 = vld [vmem:[#allocation30 + $0x30] sm:$0xff]   ;;  %v3781_v44 = vld [vmem:[%s6555_s11] ss:$0 sm:$0xff]  ;;  %s6558_s30 = sld [smem:[#allocation70_spill]] }
 0x273   : > { %4065 = vmatpush3.bf16.msra.mxu0 %v4555_v4  ;;  %4085 = vmatpush3.bf16.msra.mxu1 %v4579_v15  ;;  %v3799_v53 = vld [vmem:[#allocation28] ss:$0 sm:$0xff]  ;;  %v3790_v60 = vld [vmem:[#allocation16] ss:$0 sm:$0xff]  ;;  %v3821_v4 = vld [vmem:[%s6556_s12] ss:$0 sm:$0xff] }
 0x274   : > { %4066 = vmatprep.subr.bf16.mxu0 %v5348_v0  ;;  %4086 = vmatprep.subr.bf16.mxu1 %v5348_v0  ;;  %v3808_v13 = vld [vmem:[#allocation31] ss:$0 sm:$0xff]  ;;  %s6566_s12 = sld [smem:[#allocation79_spill]] }
 0x277   : > { %4067 = vmatpush3.bf16.msra.mxu0 %v4556_v5  ;;  %4087 = vmatpush3.bf16.msra.mxu1 %v4580_v17 }
 0x278   : > { %4068 = vmatprep.subr.bf16.mxu0 %v5348_v0  ;;  %4088 = vmatprep.subr.bf16.mxu1 %v5348_v0 }
 0x27b   : > { %4069 = vmatpush3.bf16.msra.mxu0 %v4557_v6  ;;  %4089 = vmatpush3.bf16.msra.mxu1 %v4581_v19 }
 0x27c   : > { %4070 = vmatprep.subr.bf16.mxu0 %v5348_v0  ;;  %4090 = vmatprep.subr.bf16.mxu1 %v5348_v0 }
 0x27f   : > { %4071 = vmatpush3.bf16.msra.mxu0 %v4558_v7  ;;  %4091 = vmatpush3.bf16.msra.mxu1 %v4582_v21 }
 0x280   : > { %4072 = vmatprep.subr.bf16.mxu0 %v5348_v0  ;;  %4092 = vmatprep.subr.bf16.mxu1 %v5348_v0 }
 0x283   : > { %4073 = vmatpush3.bf16.msra.mxu0 %v4559_v9  ;;  %4093 = vmatpush3.bf16.msra.mxu1 %v4583_v23 }
 0x284   : > { %4098 = vmatprep.subr.bf16.mxu0 %v5348_v0  ;;  %4118 = vmatprep.subr.bf16.mxu1 %v5348_v0 }
 0x286   : > { %4075 = vmatmul.mubr.bf16.vlgmr.msra.gmra.mrb[0].mxu0 %v1135_v11  ;;  %4095 = vmatmul.mubr.bf16.vlgmr.msra.gmra.mrb[0].mxu1 %v1135_v11 }
 0x287   : > { %4099 = vmatpush3.bf16.msra.mxu0 %v4560_v12  ;;  %4114 = vmatprep.mubr.msk.bf16.mxu0 %vm5349_vm0, %v5348_v0 }
 0x288   : > { %4100 = vmatprep.subr.bf16.mxu0 %v5348_v0  ;;  %4119 = vmatpush3.bf16.msra.mxu1 %v4584_v25 }
 0x289   : > { %4120 = vmatprep.subr.bf16.mxu1 %v5348_v0  ;;  %4134 = vmatprep.mubr.msk.bf16.mxu1 %vm5349_vm0, %v5348_v0 }
 0x28b   : > { %4101 = vmatpush3.bf16.msra.mxu0 %v4561_v14 }
 0x28c   : > { %4102 = vmatprep.subr.bf16.mxu0 %v5348_v0  ;;  %4121 = vmatpush3.bf16.msra.mxu1 %v4585_v27 }
 0x28d   : > { %4122 = vmatprep.subr.bf16.mxu1 %v5348_v0 }
 0x28f   : > { %4103 = vmatpush3.bf16.msra.mxu0 %v4562_v16 }
 0x290   : > { %4104 = vmatprep.subr.bf16.mxu0 %v5348_v0  ;;  %4123 = vmatpush3.bf16.msra.mxu1 %v4586_v30 }
 0x291   : > { %4124 = vmatprep.subr.bf16.mxu1 %v5348_v0 }
 0x293   : > { %4105 = vmatpush3.bf16.msra.mxu0 %v4563_v18 }
 0x294   : > { %4106 = vmatprep.subr.bf16.mxu0 %v5348_v0  ;;  %4125 = vmatpush3.bf16.msra.mxu1 %v4587_v32 }
 0x295   : > { %4126 = vmatprep.subr.bf16.mxu1 %v5348_v0 }
 0x297   : > { %4107 = vmatpush3.bf16.msra.mxu0 %v4564_v20 }
 0x298   : > { %4108 = vmatprep.subr.bf16.mxu0 %v5348_v0  ;;  %4127 = vmatpush3.bf16.msra.mxu1 %v4588_v34 }
 0x299   : > { %4128 = vmatprep.subr.bf16.mxu1 %v5348_v0 }
 0x29b   : > { %4109 = vmatpush3.bf16.msra.mxu0 %v4565_v22 }
 0x29c   : > { %4110 = vmatprep.subr.bf16.mxu0 %v5348_v0  ;;  %4129 = vmatpush3.bf16.msra.mxu1 %v4589_v36 }
 0x29d   : > { %4130 = vmatprep.subr.bf16.mxu1 %v5348_v0 }
 0x29f   : > { %4111 = vmatpush3.bf16.msra.mxu0 %v4566_v24 }
 0x2a0   : > { %4112 = vmatprep.subr.bf16.mxu0 %v5348_v0  ;;  %4131 = vmatpush3.bf16.msra.mxu1 %v4590_v42 }
 0x2a1   : > { %4132 = vmatprep.subr.bf16.mxu1 %v5348_v0 }
 0x2a3   : > { %4113 = vmatpush3.bf16.msra.mxu0 %v4567_v26 }
 0x2a4   : > { %4138 = vmatprep.subr.bf16.mxu0 %v5348_v0  ;;  %4133 = vmatpush3.bf16.msra.mxu1 %v4591_v43 }
 0x2a5   : > { %4158 = vmatprep.subr.bf16.mxu1 %v5348_v0 }
 0x2a6   : > { %4115 = vmatmul.mubr.bf16.vlgmr.msra.gmra.mrb[4].mxu0 %v1358_v28 }
 0x2a7   : > { %4139 = vmatpush3.bf16.msra.mxu0 %v4568_v29  ;;  %4154 = vmatprep.mubr.msk.bf16.mxu0 %vm5349_vm0, %v5348_v0 }
 0x2a8   : > { %4140 = vmatprep.subr.bf16.mxu0 %v5348_v0  ;;  %4135 = vmatmul.mubr.bf16.vlgmr.msra.gmra.mrb[4].mxu1 %v1358_v28 }
 0x2a9   : > { %4160 = vmatprep.mubr.msk.bf16.mxu1 %vm5349_vm0, %v5348_v0 }
 0x2ab   : > { %4141 = vmatpush3.bf16.msra.mxu0 %v4569_v31 }
 0x2ac   : > { %4142 = vmatprep.subr.bf16.mxu0 %v5348_v0 }
 0x2af   : > { %4143 = vmatpush3.bf16.msra.mxu0 %v4570_v33 }
 0x2b0   : > { %4144 = vmatprep.subr.bf16.mxu0 %v5348_v0 }
 0x2b3   : > { %4145 = vmatpush3.bf16.msra.mxu0 %v4571_v35 }
 0x2b4   : > { %4146 = vmatprep.subr.bf16.mxu0 %v5348_v0 }
 0x2b7   : > { %4147 = vmatpush3.bf16.msra.mxu0 %v4572_v37 }
 0x2b8   : > { %4148 = vmatprep.subr.bf16.mxu0 %v5348_v0 }
 0x2bb   : > { %4149 = vmatpush3.bf16.msra.mxu0 %v4573_v38 }
 0x2bc   : > { %4150 = vmatprep.subr.bf16.mxu0 %v5348_v0 }
 0x2bf   : > { %4151 = vmatpush3.bf16.msra.mxu0 %v4574_v39 }
 0x2c0   : > { %4152 = vmatprep.subr.bf16.mxu0 %v5348_v0 }
 0x2c3   : > { %4153 = vmatpush3.bf16.msra.mxu0 %v4575_v40 }
 0x2c4   : > { %4206 = vmatprep.subr.bf16.mxu0 %v5348_v0 }
 0x2c6   : > { %4155 = vmatmul.mubr.bf16.vlgmr.msra.gmra.mrb[8].mxu0 %v6096_v41 }
 0x2c7   : > { %4222 = vmatprep.mubr.msk.bf16.mxu0 %vm5349_vm0, %v5348_v0 }
 0x359   : > { %v1241_v45 = vpop.f32.mrb[0].mxu0  ;;  %v1352_v61 = vpop.f32.mrb[0].mxu1 }
 0x35a   : > { %v1242_v46 = vadd.f32 %v3781_v44, %v1241_v45  ;;  %v4076_v47 = vpop.f32.mrb[1].mxu0  ;;  %v1353_v62 = vadd.f32 %v3790_v60, %v1352_v61  ;;  %v4096_v63 = vpop.f32.mrb[1].mxu1 }
 0x35b   : > { %v1244_v48 = vpop.f32.mrb[2].mxu0  ;;  %v1355_v1 = vpop.f32.mrb[2].mxu1 }
 0x35c   : > { %v6109_v49 = vpack.c.bf16 %v1242_v46, %v1242_v46  ;;  %v4077_v50 = vpop.f32.mrb[3].mxu0  ;;  %v6121_v2 = vpack.c.bf16 %v1353_v62, %v1353_v62  ;;  %v4097_v3 = vpop.f32.mrb[3].mxu1 }
 0x35e   : > { %1583 = vst.msk [vmem:[#allocation2] sm:$0xf] %vm1582_vm1, %v6109_v49  ;;  %1593 = vrot.lane.b32.xlu1 %v6109_v49, %s5350_s18  ;;  %1585 = vst.msk [vmem:[#allocation3] sm:$0xf] %vm1582_vm1, %v6121_v2 }
 0x365   : > { %v1781_v51 = vld [vmem:[#allocation2] sm:$0xf]  ;;  %v1842_v11 = vld [vmem:[#allocation3] sm:$0xf] }
 0x366   : > { %v1787_v52 = vsel %vm1782_vm2, %v1781_v51, 0  ;;  %v1848_v12 = vsel %vm1846_vm3, %v1842_v11, 0 }
 0x367   : > { %4159 = vmatpush3.bf16.xpose.msra.mxu1 %v1787_v52 }
 0x368   : > { %4164 = vmatprep.subr.bf16.mxu1 %v5348_v0 }
 0x379   : > { %v1464_v54 = vpop.f32.mrb[4].mxu0 }
 0x37a   : > { %v1465_v55 = vadd.f32 %v3799_v53, %v1464_v54  ;;  %v4116_v56 = vpop.f32.mrb[5].mxu0 }
 0x37b   : > { %v1467_v57 = vpop.f32.mrb[6].mxu0  ;;  %v1575_v14 = vpop.f32.mrb[4].mxu1 }
 0x37c   : > { %v6117_v58 = vpack.c.bf16 %v1465_v55, %v1465_v55  ;;  %v4117_v59 = vpop.f32.mrb[7].mxu0  ;;  %v1576_v15 = vadd.f32 %v3808_v13, %v1575_v14  ;;  %v4136_v16 = vpop.f32.mrb[5].mxu1 }
 0x37d   : > { %v1578_v17 = vpop.f32.mrb[6].mxu1 }
 0x37e   : > { %1587 = vst.msk [vmem:[#allocation4] sm:$0xf] %vm1582_vm1, %v6117_v58  ;;  %v6138_v18 = vpack.c.bf16 %v1576_v15, %v1576_v15  ;;  %v4137_v19 = vpop.f32.mrb[7].mxu1 }
 0x380   : > { %1589 = vst.msk [vmem:[#allocation5] sm:$0xf] %vm1582_vm1, %v6138_v18 }
 0x399   : > { %v1774_v5 = vpop.f32.mrb[8].mxu0 }
 0x39a   : > { %v1775_v6 = vadd.f32 %v3821_v4, %v1774_v5  ;;  %v4156_v7 = vpop.f32.mrb[9].mxu0 }
 0x39b   : > { %v1777_v8 = vpop.f32.mrb[10].mxu0 }
 0x39c   : > { %v6128_v9 = vpack.c.bf16 %v1775_v6, %v1775_v6  ;;  %v4157_v10 = vpop.f32.mrb[11].mxu0 }
 0x39e   : > { %1896 = vrot.lane.b32.xlu1 %v6128_v9, %s5350_s18  ;;  %4161 = vmatmul.mubr.msk.bf16.vlgmr.msra.gmra.mrb[8].mxu1 %vm1782_vm2, %v6128_v9 }
 0x39f   : > { %4165 = vmatpush3.bf16.msra.mxu1 %v1848_v12  ;;  %4166 = vmatprep.mubr.msk.bf16.mxu1 %vm5349_vm0, %v5348_v0 }
 0x3a0   : > { %4170 = vmatprep.subr.bf16.mxu1 %v5348_v0 }
 0x3d0   : > { %v1594_v20 = vpop.permute.xlu1 %1593 }
 0x3d1   : > { %1597 = vst.msk [vmem:[#allocation2 + $0x4] sm:$0xf] %vm1582_vm1, %v1594_v20 }
 0x3d8   : > { %v1894_v34 = vld [vmem:[#allocation2 + $0x4] sm:$0xf] }
 0x3d9   : > { %v1902_v36 = vsel %vm1782_vm2, %v1894_v34, 0 }
 0x410   : > { %v1897_v37 = vpop.permute.xlu1 %1896 }
 0x471   : > { %v1823_v21 = vpop.f32.mrb[8].mxu1 }
 0x472   : > { %v4162_v22 = vpop.f32.mrb[9].mxu1  ;;  %v1830_v23 = vsel %vm1829_vm4, %v1823_v21, -inf }
 0x473   : > { %1831 = vmax.xlane.f32.xlu0 %v1830_v23  ;;  %v1826_v24 = vpop.f32.mrb[10].mxu1 }
 0x474   : > { %v4163_v25 = vpop.f32.mrb[11].mxu1 }
 0x500   : > { %v1832_v26 = vpop.xlane.xlu0 %1831 }
 0x501   : > { %v1833_v27 = vsub.f32 %v1823_v21, %v1832_v26 }
 0x503   : > { %v1834_v28 = vmul.f32 1.442695, %v1833_v27 }
 0x505   : > { %4656 = vpow2.f32 %v1834_v28 }
 0x50f   : > { %v4657_v29 = vpop.eup %4656 }
 0x510   : > { %v1836_v30 = vsel %vm1829_vm4, %v4657_v29, 0.0 }
 0x511   : > { %1837 = vadd.xlane.f32.xlu0 %v1836_v30 }
 0x59e   : > { %v1838_v31 = vpop.xlane.xlu0 %1837 }
 0x59f   : > { %4658 = vrcp.f32 %v1838_v31 }
 0x5a9   : > { %v4659_v32 = vpop.eup %4658 }
 0x5aa   : > { %v1840_v33 = vmul.f32 %v4659_v32, %v4657_v29 }
 0x5ac   : > { %v1841_v35 = vpack.c.bf16 %v1840_v33, %v1840_v33 }
 0x5ae   : > { %4167 = vmatmul.mubr.msk.bf16.vlgmr.msra.gmra.mrb[12].mxu1 %vm1829_vm4, %v1841_v35 }
 0x5af   : > { %4171 = vmatpush3.bf16.xpose.msra.mxu1 %v1902_v36  ;;  %4172 = vmatprep.mubr.msk.bf16.mxu1 %vm5349_vm0, %v5348_v0 }
 0x5b0   : > { %4176 = vmatprep.subr.bf16.mxu1 %v5348_v0 }
 0x5b6   : > { %4173 = vmatmul.mubr.msk.bf16.vlgmr.msra.gmra.mrb[16].mxu1 %vm1782_vm2, %v1897_v37 }
 0x5b7   : > { %4178 = vmatprep.mubr.msk.bf16.mxu1 %vm5349_vm0, %v5348_v0 }
 0x681   : > { %v1884_v38 = vpop.f32.mrb[12].mxu1 }
 0x682   : > { %v1890_v39 = vpack.c.bf16 %v1884_v38, %v1884_v38  ;;  %v4168_v40 = vpop.f32.mrb[13].mxu1 }
 0x683   : > { %v1887_v42 = vpop.f32.mrb[14].mxu1 }
 0x684   : > { %1892 = vst.msk [vmem:[#allocation6] sm:$0xf] %vm1582_vm1, %v1890_v39  ;;  %v4169_v43 = vpop.f32.mrb[15].mxu1 }
 0x689   : > { %v1938_v44 = vpop.f32.mrb[16].mxu1 }
 0x68a   : > { %v4174_v45 = vpop.f32.mrb[17].mxu1  ;;  %v1944_v46 = vsel %vm1829_vm4, %v1938_v44, -inf }
 0x68b   : > { %1945 = vmax.xlane.f32.xlu0 %v1944_v46  ;;  %v1941_v47 = vpop.f32.mrb[18].mxu1 }
 0x68c   : > { %v4175_v48 = vpop.f32.mrb[19].mxu1 }
 0x6a1   : > { %1601 = vrot.lane.b32.xlu0 %v6121_v2, %s5350_s18 }
 0x6a5   : > { %1622 = vrot.lane.b32.xlu0 %v6109_v49, %s5351_s19 }
 0x6a9   : > { %2015 = vrot.lane.b32.xlu0 %v6128_v9, %s5351_s19 }
 0x718   : > { %v1946_v50 = vpop.xlane.xlu0 %1945 }
 0x719   : > { %v1947_v51 = vsub.f32 %v1938_v44, %v1946_v50 }
 0x71b   : > { %v1948_v52 = vmul.f32 1.442695, %v1947_v51 }
 0x71c   : > { %v1602_v53 = vpop.permute.xlu0 %1601 }
 0x71d   : > { %4660 = vpow2.f32 %v1948_v52  ;;  %1605 = vst.msk [vmem:[#allocation3 + $0x4] sm:$0xf] %vm1582_vm1, %v1602_v53 }
 0x720   : > { %v1623_v54 = vpop.permute.xlu0 %1622 }
 0x721   : > { %1626 = vst.msk [vmem:[#allocation2 + $0x8] sm:$0xf] %vm1582_vm1, %v1623_v54 }
 0x724   : > { %v1957_v55 = vld [vmem:[#allocation3 + $0x4] sm:$0xf]  ;;  %v2016_v6 = vpop.permute.xlu0 %2015 }
 0x725   : > { %v1962_v56 = vsel %vm1846_vm3, %v1957_v55, 0 }
 0x726   : > { %4177 = vmatpush3.bf16.msra.mxu1 %v1962_v56  ;;  %v4592_v56 = vld [vmem:[#allocation18] sm:$0xff]  }
 0x727   : > { %v4661_v57 = vpop.eup %4660  ;;  %4182 = vmatprep.subr.bf16.mxu1 %v5348_v0  ;;  %4207 = vmatpush3.bf16.msra.mxu0 %v4592_v56 }
 0x728   : > { %v1950_v59 = vsel %vm1829_vm4, %v4661_v57, 0.0  ;;  %v2014_v1 = vld [vmem:[#allocation2 + $0x8] sm:$0xf]  ;;  %4208 = vmatprep.subr.bf16.mxu0 %v5348_v0 }
 0x729   : > { %1951 = vadd.xlane.f32.xlu1 %v1950_v59  ;;  %v2021_v4 = vsel %vm1782_vm2, %v2014_v1, 0  ;;  %v4594_v59 = vld [vmem:[#allocation18 + $0x10] sm:$0xff]   ;;  %v4599_v1 = vld [vmem:[#allocation18 + $0x38] sm:$0xff]  }
 0x73a   : > { %1627 = vrot.lane.b32.xlu1 %v6121_v2, %s5351_s19 }
 0x7b6   : > { %v1952_v60 = vpop.xlane.xlu1 %1951 }
 0x7b7   : > { %4662 = vrcp.f32 %v1952_v60  ;;  %v4595_v60 = vld [vmem:[#allocation18 + $0x18] sm:$0xff]  }
 0x7ba   : > { %v1628_v61 = vpop.permute.xlu1 %1627 }
 0x7bb   : > { %1631 = vst.msk [vmem:[#allocation3 + $0x8] sm:$0xf] %vm1582_vm1, %v1628_v61  ;;  %v4596_v61 = vld [vmem:[#allocation18 + $0x20] sm:$0xff]  }
 0x7c1   : > { %v4663_v62 = vpop.eup %4662 }
 0x7c2   : > { %v1954_v63 = vmul.f32 %v4663_v62, %v4661_v57  ;;  %v2076_v5 = vld [vmem:[#allocation3 + $0x8] sm:$0xf]  ;;  %v4593_v57 = vld [vmem:[#allocation18 + $0x8] sm:$0xff]  }
 0x7c3   : > { %v2081_v7 = vsel %vm1846_vm3, %v2076_v5, 0  ;;  %4209 = vmatpush3.bf16.msra.mxu0 %v4593_v57  ;;  %v4597_v62 = vld [vmem:[#allocation18 + $0x28] sm:$0xff]  }
 0x7c4   : > { %v1955_v3 = vpack.c.bf16 %v1954_v63, %v1954_v63  ;;  %4210 = vmatprep.subr.bf16.mxu0 %v5348_v0  ;;  %v4598_v63 = vld [vmem:[#allocation18 + $0x30] sm:$0xff]  }
 0x7c6   : > { %4179 = vmatmul.mubr.msk.bf16.vlgmr.msra.gmra.mrb[20].mxu1 %vm1829_vm4, %v1955_v3 }
 0x7c7   : > { %4183 = vmatpush3.bf16.xpose.msra.mxu1 %v2021_v4  ;;  %4184 = vmatprep.mubr.msk.bf16.mxu1 %vm5349_vm0, %v5348_v0 }
 0x7c8   : > { %4188 = vmatprep.subr.bf16.mxu1 %v5348_v0  ;;  %4211 = vmatpush3.bf16.msra.mxu0 %v4594_v59 }
 0x7c9   : > { %4212 = vmatprep.subr.bf16.mxu0 %v5348_v0 }
 0x7cc   : > { %4213 = vmatpush3.bf16.msra.mxu0 %v4595_v60 }
 0x7cd   : > { %4214 = vmatprep.subr.bf16.mxu0 %v5348_v0 }
 0x7ce   : > { %4185 = vmatmul.mubr.msk.bf16.vlgmr.msra.gmra.mrb[24].mxu1 %vm1782_vm2, %v2016_v6 }
 0x7cf   : > { %4189 = vmatpush3.bf16.msra.mxu1 %v2081_v7  ;;  %4190 = vmatprep.mubr.msk.bf16.mxu1 %vm5349_vm0, %v5348_v0 }
 0x7d0   : > { %4194 = vmatprep.subr.bf16.mxu1 %v5348_v0  ;;  %4215 = vmatpush3.bf16.msra.mxu0 %v4596_v61 }
 0x7d1   : > { %4216 = vmatprep.subr.bf16.mxu0 %v5348_v0 }
 0x7d4   : > { %4217 = vmatpush3.bf16.msra.mxu0 %v4597_v62 }
 0x7d5   : > { %4218 = vmatprep.subr.bf16.mxu0 %v5348_v0 }
 0x7d8   : > { %4219 = vmatpush3.bf16.msra.mxu0 %v4598_v63 }
 0x7d9   : > { %4220 = vmatprep.subr.bf16.mxu0 %v5348_v0 }
 0x7dc   : > { %4221 = vmatpush3.bf16.msra.mxu0 %v4599_v1 }
 0x7dd   : > { %4246 = vmatprep.subr.bf16.mxu0 %v5348_v0 }
 0x899   : > { %v1998_v8 = vpop.f32.mrb[20].mxu1 }
 0x89a   : > { %v4180_v10 = vpop.f32.mrb[21].mxu1  ;;  %v3926_v39 = vpack.c.bf16 %v1998_v8, %v1998_v8 }
 0x89b   : > { %v2001_v11 = vpop.f32.mrb[22].mxu1  ;;  %v2505_v10 = vld [vmem:[#allocation4] sm:$0xf] }
 0x89c   : > { %v4181_v12 = vpop.f32.mrb[23].mxu1 }
 0x89d   : > { %v2510_v12 = vsel %vm1782_vm2, %v2505_v10, 0 }
 0x8a1   : > { %v2057_v13 = vpop.f32.mrb[24].mxu1 }
 0x8a2   : > { %v4186_v14 = vpop.f32.mrb[25].mxu1  ;;  %v2063_v15 = vsel %vm1829_vm4, %v2057_v13, -inf }
 0x8a3   : > { %2064 = vmax.xlane.f32.xlu0 %v2063_v15  ;;  %v2060_v16 = vpop.f32.mrb[26].mxu1  ;;  %v1668_v14 = vunpack.c.l.bf16 %v6096_v41  ;;  %v4602_v41 = vld [vmem:[#allocation24 + $0x10] sm:$0xff]  }
 0x8a4   : > { %v4187_v17 = vpop.f32.mrb[27].mxu1 }
 0x930   : > { %v2065_v19 = vpop.xlane.xlu0 %2064 }
 0x931   : > { %v2066_v20 = vsub.f32 %v2057_v13, %v2065_v19  ;;  %v3841_v13 = vld [vmem:[#allocation19] ss:$0 sm:$0xff] }
 0x933   : > { %v2067_v21 = vmul.f32 1.442695, %v2066_v20 }
 0x935   : > { %4664 = vpow2.f32 %v2067_v21 }
 0x93f   : > { %v4665_v22 = vpop.eup %4664 }
 0x940   : > { %v2069_v23 = vsel %vm1829_vm4, %v4665_v22, 0.0 }
 0x941   : > { %2070 = vadd.xlane.f32.xlu1 %v2069_v23  ;;  %v4601_v23 = vld [vmem:[#allocation24 + $0x8] sm:$0xff]  }
 0x952   : > { %1642 = vrot.lane.b32.xlu1 %v6109_v49, %s5352_s17 }
 0x956   : > { %2134 = vrot.lane.b32.xlu1 %v6128_v9, %s5352_s17 }
 0x9ce   : > { %v2071_v24 = vpop.xlane.xlu1 %2070 }
 0x9cf   : > { %4666 = vrcp.f32 %v2071_v24 }
 0x9d2   : > { %v1643_v25 = vpop.permute.xlu1 %1642 }
 0x9d3   : > { %1646 = vst.msk [vmem:[#allocation2 + $0xc] sm:$0xf] %vm1582_vm1, %v1643_v25 }
 0x9d6   : > { %v2135_v49 = vpop.permute.xlu1 %2134 }
 0x9d9   : > { %v4667_v26 = vpop.eup %4666 }
 0x9da   : > { %v2073_v27 = vmul.f32 %v4667_v26, %v4665_v22  ;;  %v2133_v28 = vld [vmem:[#allocation2 + $0xc] sm:$0xf]  ;;  %v4600_v22 = vld [vmem:[#allocation24] sm:$0xff]  }
 0x9db   : > { %v2140_v30 = vsel %vm1782_vm2, %v2133_v28, 0 }
 0x9dc   : > { %v2074_v29 = vpack.c.bf16 %v2073_v27, %v2073_v27 }
 0x9de   : > { %4191 = vmatmul.mubr.msk.bf16.vlgmr.msra.gmra.mrb[28].mxu1 %vm1829_vm4, %v2074_v29 }
 0x9df   : > { %4195 = vmatpush3.bf16.xpose.msra.mxu1 %v2140_v30  ;;  %4196 = vmatprep.mubr.msk.bf16.mxu1 %vm5349_vm0, %v5348_v0  ;;  %v4603_v30 = vld [vmem:[#allocation24 + $0x18] sm:$0xff]  }
 0x9e0   : > { %4200 = vmatprep.subr.bf16.mxu1 %v5348_v0 }
 0x9e6   : > { %4197 = vmatmul.mubr.msk.bf16.vlgmr.msra.gmra.mrb[32].mxu1 %vm1782_vm2, %v2135_v49  ;;  %v4604_v49 = vld [vmem:[#allocation24 + $0x20] sm:$0xff]  }
 0x9e7   : > { %4202 = vmatprep.mubr.msk.bf16.mxu1 %vm5349_vm0, %v5348_v0 }
 0xab1   : > { %v2117_v9 = vpop.f32.mrb[28].mxu1 }
 0xab2   : > { %v4192_v31 = vpop.f32.mrb[29].mxu1  ;;  %v3927_v40 = vpack.c.bf16 %v2117_v9, %v2117_v9  ;;  %v4605_v9 = vld [vmem:[#allocation24 + $0x28] sm:$0xff]  }
 0xab3   : > { %v2120_v32 = vpop.f32.mrb[30].mxu1  ;;  %v4606_v31 = vld [vmem:[#allocation24 + $0x30] sm:$0xff]  }
 0xab4   : > { %v4193_v33 = vpop.f32.mrb[31].mxu1  ;;  %v4607_v32 = vld [vmem:[#allocation24 + $0x38] sm:$0xff]  }
 0xab9   : > { %v2176_v34 = vpop.f32.mrb[32].mxu1 }
 0xaba   : > { %v4198_v35 = vpop.f32.mrb[33].mxu1  ;;  %v2182_v36 = vsel %vm1829_vm4, %v2176_v34, -inf }
 0xabb   : > { %2183 = vmax.xlane.f32.xlu0 %v2182_v36  ;;  %v2179_v37 = vpop.f32.mrb[34].mxu1 }
 0xabc   : > { %v4199_v38 = vpop.f32.mrb[35].mxu1  ;;  %v3850_v37 = vld [vmem:[#allocation21] ss:$0 sm:$0xff] }
 0xad1   : > { %1647 = vrot.lane.b32.xlu0 %v6121_v2, %s5352_s17 }
 0xad5   : > { %2008 = vrot.lane.b32.xlu0 %v3926_v39, %s5352_s17  ;;  %v3851_v39 = vld [vmem:[#allocation22] ss:$0 sm:$0xff] }
 0xad9   : > { %2127 = vrot.lane.b32.xlu0 %v3927_v40, %s5351_s19 }
 0xb48   : > { %v2184_v42 = vpop.xlane.xlu0 %2183 }
 0xb49   : > { %v2185_v43 = vsub.f32 %v2176_v34, %v2184_v42 }
 0xb4b   : > { %v2186_v44 = vmul.f32 1.442695, %v2185_v43  ;;  %v2564_v43 = vld [vmem:[#allocation5] sm:$0xf] }
 0xb4c   : > { %v1648_v45 = vpop.permute.xlu0 %1647 }
 0xb4d   : > { %4668 = vpow2.f32 %v2186_v44  ;;  %1651 = vst.msk [vmem:[#allocation3 + $0xc] sm:$0xf] %vm1582_vm1, %v1648_v45  ;;  %v2569_v45 = vsel %vm1846_vm3, %v2564_v43, 0 }
 0xb50   : > { %v2009_v46 = vpop.permute.xlu0 %2008 }
 0xb51   : > { %2012 = vst.msk [vmem:[#allocation6] sm:$0xf] %vm2011_vm5, %v2009_v46  ;;  %v3852_v46 = vld [vmem:[#allocation25] ss:$0 sm:$0xff] }
 0xb54   : > { %v2128_v47 = vpop.permute.xlu0 %2127  ;;  %v2195_v2 = vld [vmem:[#allocation3 + $0xc] sm:$0xf] }
 0xb55   : > { %2131 = vst.msk [vmem:[#allocation6] sm:$0xf] %vm2130_vm6, %v2128_v47  ;;  %v2200_v48 = vsel %vm1846_vm3, %v2195_v2, 0 }
 0xb56   : > { %4201 = vmatpush3.bf16.msra.mxu1 %v2200_v48 }
 0xb57   : > { %v4669_v50 = vpop.eup %4668  ;;  %4226 = vmatprep.subr.bf16.mxu1 %v5348_v0 }
 0xb58   : > { %v2188_v51 = vsel %vm1829_vm4, %v4669_v50, 0.0 }
 0xb59   : > { %2189 = vadd.xlane.f32.xlu1 %v2188_v51 }
 0xbe6   : > { %v2190_v52 = vpop.xlane.xlu1 %2189 }
 0xbe7   : > { %4670 = vrcp.f32 %v2190_v52 }
 0xbf1   : > { %v4671_v53 = vpop.eup %4670 }
 0xbf2   : > { %v2192_v54 = vmul.f32 %v4671_v53, %v4669_v50 }
 0xbf4   : > { %v2193_v55 = vpack.c.bf16 %v2192_v54, %v2192_v54 }
 0xbf6   : > { %4203 = vmatmul.mubr.msk.bf16.vlgmr.msra.gmra.mrb[36].mxu1 %vm1829_vm4, %v2193_v55 }
 0xbf7   : > { %4242 = vmatprep.mubr.msk.bf16.mxu1 %vm5349_vm0, %v5348_v0  ;;  %4227 = vmatpush3.bf16.msra.mxu1 %v4600_v22 }
 0xbf8   : > { %4228 = vmatprep.subr.bf16.mxu1 %v5348_v0 }
 0xbfb   : > { %4229 = vmatpush3.bf16.msra.mxu1 %v4601_v23 }
 0xbfc   : > { %4230 = vmatprep.subr.bf16.mxu1 %v5348_v0 }
 0xbff   : > { %4231 = vmatpush3.bf16.msra.mxu1 %v4602_v41 }
 0xc00   : > { %4232 = vmatprep.subr.bf16.mxu1 %v5348_v0 }
 0xc03   : > { %4233 = vmatpush3.bf16.msra.mxu1 %v4603_v30 }
 0xc04   : > { %4234 = vmatprep.subr.bf16.mxu1 %v5348_v0 }
 0xc07   : > { %4235 = vmatpush3.bf16.msra.mxu1 %v4604_v49 }
 0xc08   : > { %4236 = vmatprep.subr.bf16.mxu1 %v5348_v0 }
 0xc0b   : > { %4237 = vmatpush3.bf16.msra.mxu1 %v4605_v9 }
 0xc0c   : > { %4238 = vmatprep.subr.bf16.mxu1 %v5348_v0 }
 0xc0f   : > { %4239 = vmatpush3.bf16.msra.mxu1 %v4606_v31 }
 0xc10   : > { %4240 = vmatprep.subr.bf16.mxu1 %v5348_v0 }
 0xc13   : > { %4241 = vmatpush3.bf16.msra.mxu1 %v4607_v32 }
 0xc14   : > { %4252 = vmatprep.subr.bf16.mxu1 %v5348_v0 }
 0xcc9   : > { %v2236_v3 = vpop.f32.mrb[36].mxu1 }
 0xcca   : > { %v3928_v4 = vpack.c.bf16 %v2236_v3, %v2236_v3  ;;  %v4204_v5 = vpop.f32.mrb[37].mxu1 }
 0xccb   : > { %v2239_v6 = vpop.f32.mrb[38].mxu1 }
 0xccc   : > { %2246 = vrot.lane.b32.xlu0 %v3928_v4, %s5350_s18  ;;  %v4205_v7 = vpop.f32.mrb[39].mxu1 }
 0xd3e   : > { %v2247_v8 = vpop.permute.xlu0 %2246 }
 0xd3f   : > { %2250 = vst.msk [vmem:[#allocation6] sm:$0xf] %vm2249_vm7, %v2247_v8 }
 0xd46   : > { %v2251_v11 = vld [vmem:[#allocation6] sm:$0xf] }
 0xd47   : > { %4223 = vmatmul.mubr.bf16.vlgmr.msra.gmra.mrb[12].mxu0 %v2251_v11 }
 0xd48   : > { %4247 = vmatpush3.bf16.xpose.msra.mxu0 %v2510_v12  ;;  %4248 = vmatprep.mubr.msk.bf16.mxu0 %vm5349_vm0, %v5348_v0 }
 0xd49   : > { %4258 = vmatprep.subr.bf16.mxu0 %v5348_v0 }
 0xe1a   : > { %v2357_v15 = vpop.f32.mrb[12].mxu0 }
 0xe1b   : > { %v2358_v16 = vadd.f32 %v3841_v13, %v2357_v15  ;;  %v4224_v17 = vpop.f32.mrb[13].mxu0 }
 0xe1c   : > { %v2360_v19 = vpop.f32.mrb[14].mxu0 }
 0xe1d   : > { %v4225_v20 = vpop.f32.mrb[15].mxu0  ;;  %v2363_v21 = vadd.f32 %v2358_v16, %v1668_v14 }
 0xe1f   : > { %2364 = vadd.xlane.f32.xlu1 %v2363_v21 }
 0xe30   : > { %1609 = vrot.lane.b32.xlu1 %v6117_v58, %s5350_s18 }
 0xe34   : > { %1632 = vrot.lane.b32.xlu1 %v6117_v58, %s5351_s19 }
 0xe38   : > { %1652 = vrot.lane.b32.xlu1 %v6117_v58, %s5352_s17 }
 0xeac   : > { %v2365_v24 = vpop.xlane.xlu1 %2364 }
 0xead   : > { %v2367_v25 = vmul.f32 0.0078125, %v2365_v24 }
 0xeaf   : > { %v2368_v26 = vsub.f32 %v2363_v21, %v2367_v25 }
 0xeb0   : > { %v1610_v27 = vpop.permute.xlu1 %1609 }
 0xeb1   : > { %1613 = vst.msk [vmem:[#allocation4 + $0x4] sm:$0xf] %vm1582_vm1, %v1610_v27  ;;  %v2369_v28 = vmul.f32 %v2368_v26, %v2368_v26 }
 0xeb3   : > { %2370 = vadd.xlane.f32.xlu0 %v2369_v28 }
 0xeb4   : > { %v1633_v58 = vpop.permute.xlu1 %1632 }
 0xeb5   : > { %1636 = vst.msk [vmem:[#allocation4 + $0x8] sm:$0xf] %vm1582_vm1, %v1633_v58 }
 0xeb8   : > { %v1653_v29 = vpop.permute.xlu1 %1652  ;;  %v2614_v53 = vld [vmem:[#allocation4 + $0x4] sm:$0xf] }
 0xeb9   : > { %1656 = vst.msk [vmem:[#allocation4 + $0xc] sm:$0xf] %vm1582_vm1, %v1653_v29  ;;  %v2622_v54 = vsel %vm1782_vm2, %v2614_v53, 0 }
 0xebc   : > { %v2733_v55 = vld [vmem:[#allocation4 + $0x8] sm:$0xf] }
 0xebd   : > { %v2740_v57 = vsel %vm1782_vm2, %v2733_v55, 0 }
 0xec0   : > { %v2851_v59 = vld [vmem:[#allocation4 + $0xc] sm:$0xf] }
 0xec1   : > { %v2858_v61 = vsel %vm1782_vm2, %v2851_v59, 0 }
 0xf40   : > { %v2371_v33 = vpop.xlane.xlu0 %2370 }
 0xf41   : > { %v2372_v34 = vmul.f32 0.0078125, %v2371_v33 }
 0xf43   : > { %v2373_v35 = vadd.f32 1e-05, %v2372_v34 }
 0xf45   : > { %4672 = vrsqrt.f32 %v2373_v35 }
 0xf4f   : > { %v4673_v36 = vpop.eup %4672 }
 0xf50   : > { %v2375_v38 = vmul.f32 %v4673_v36, %v2368_v26 }
 0xf52   : > { %v2383_v40 = vmul.f32 %v3850_v37, %v2375_v38 }
 0xf54   : > { %v6240_v42 = vadd.f32 %v3851_v39, %v2383_v40 }
 0xf56   : > { %v2392_v44 = vpack.c.bf16 %v6240_v42, %v6240_v42 }
 0xf58   : > { %4243 = vmatmul.mubr.bf16.vlgmr.msra.gmra.mrb[40].mxu1 %v2392_v44 }
 0xf59   : > { %4253 = vmatpush3.bf16.msra.mxu1 %v2569_v45  ;;  %4254 = vmatprep.mubr.msk.bf16.mxu1 %vm5349_vm0, %v5348_v0 }
 0xf5a   : > { %4264 = vmatprep.subr.bf16.mxu1 %v5348_v0 }
0x102b   : > { %v2498_v47 = vpop.f32.mrb[40].mxu1 }
0x102c   : > { %v2499_v2 = vadd.f32 %v3852_v46, %v2498_v47  ;;  %v4244_v48 = vpop.f32.mrb[41].mxu1 }
0x102d   : > { %v2501_v50 = vpop.f32.mrb[42].mxu1 }
0x102e   : > { %v2504_v51 = vpack.c.bf16 %v2499_v2, %v2499_v2  ;;  %v4245_v52 = vpop.f32.mrb[43].mxu1 }
0x1030   : > { %2734 = vrot.lane.b32.xlu0 %v2504_v51, %s5351_s19  ;;  %2616 = vrot.lane.b32.xlu1 %v2504_v51, %s5350_s18 }
0x1031   : > { %4249 = vmatmul.mubr.msk.bf16.vlgmr.msra.gmra.mrb[16].mxu0 %vm1782_vm2, %v2504_v51 }
0x1032   : > { %4259 = vmatpush3.bf16.xpose.msra.mxu0 %v2622_v54  ;;  %4260 = vmatprep.mubr.msk.bf16.mxu0 %vm5349_vm0, %v5348_v0 }
0x1033   : > { %4270 = vmatprep.subr.bf16.mxu0 %v5348_v0 }
0x1034   : > { %2852 = vrot.lane.b32.xlu1 %v2504_v51, %s5352_s17 }
0x10a2   : > { %v2617_v56 = vpop.permute.xlu1 %2616  ;;  %v2735_v60 = vpop.permute.xlu0 %2734 }
0x10a3   : > { %4261 = vmatmul.mubr.msk.bf16.vlgmr.msra.gmra.mrb[20].mxu0 %vm1782_vm2, %v2617_v56 }
0x10a4   : > { %4271 = vmatpush3.bf16.xpose.msra.mxu0 %v2740_v57  ;;  %4272 = vmatprep.mubr.msk.bf16.mxu0 %vm5349_vm0, %v5348_v0 }
0x10a5   : > { %4282 = vmatprep.subr.bf16.mxu0 %v5348_v0 }
0x10a6   : > { %v2853_v62 = vpop.permute.xlu1 %2852 }
0x10ab   : > { %4273 = vmatmul.mubr.msk.bf16.vlgmr.msra.gmra.mrb[24].mxu0 %vm1782_vm2, %v2735_v60 }
0x10ac   : > { %4283 = vmatpush3.bf16.xpose.msra.mxu0 %v2858_v61  ;;  %4284 = vmatprep.mubr.msk.bf16.mxu0 %vm5349_vm0, %v5348_v0 }
0x10ad   : > { %4294 = vmatprep.subr.bf16.mxu0 %v5348_v0 }
0x10b3   : > { %4285 = vmatmul.mubr.msk.bf16.vlgmr.msra.gmra.mrb[28].mxu0 %vm1782_vm2, %v2853_v62 }
0x10b4   : > { %4310 = vmatprep.mubr.msk.bf16.mxu0 %vm5349_vm0, %v5348_v0 }
0x1104   : > { %v2546_v63 = vpop.f32.mrb[16].mxu0 }
0x1105   : > { %v4250_v1 = vpop.f32.mrb[17].mxu0  ;;  %v2552_v3 = vsel %vm1829_vm4, %v2546_v63, -inf }
0x1106   : > { %2553 = vmax.xlane.f32.xlu1 %v2552_v3  ;;  %v2549_v4 = vpop.f32.mrb[18].mxu0 }
0x1107   : > { %v4251_v5 = vpop.f32.mrb[19].mxu0 }
0x1176   : > { %v2658_v6 = vpop.f32.mrb[20].mxu0 }
0x1177   : > { %v4262_v7 = vpop.f32.mrb[21].mxu0  ;;  %v2664_v8 = vsel %vm1829_vm4, %v2658_v6, -inf }
0x1178   : > { %2665 = vmax.xlane.f32.xlu0 %v2664_v8  ;;  %v2661_v10 = vpop.f32.mrb[22].mxu0 }
0x1179   : > { %v4263_v11 = vpop.f32.mrb[23].mxu0  ;;  %v4608_v10 = vld [vmem:[%s6557_s26] sm:$0xff]  }
0x117a   : > { %4295 = vmatpush3.bf16.msra.mxu0 %v4608_v10  ;;  %v4649_v10 = vld [vmem:[#allocation34 + $0x20] sm:$0xff]  }
0x117b   : > { %4296 = vmatprep.subr.bf16.mxu0 %v5348_v0 }
0x117e   : > { %v2776_v12 = vpop.f32.mrb[24].mxu0 }
0x117f   : > { %v4274_v13 = vpop.f32.mrb[25].mxu0  ;;  %v2782_v14 = vsel %vm1829_vm4, %v2776_v12, -inf }
0x1180   : > { %2783 = vmax.xlane.f32.xlu1 %v2782_v14  ;;  %v2779_v15 = vpop.f32.mrb[26].mxu0 }
0x1181   : > { %v4275_v16 = vpop.f32.mrb[27].mxu0 }
0x1186   : > { %v2894_v17 = vpop.f32.mrb[28].mxu0 }
0x1187   : > { %v4286_v19 = vpop.f32.mrb[29].mxu0  ;;  %v2900_v20 = vsel %vm1829_vm4, %v2894_v17, -inf }
0x1188   : > { %2901 = vmax.xlane.f32.xlu1 %v2900_v20  ;;  %v2897_v21 = vpop.f32.mrb[30].mxu0  ;;  %v4611_v20 = vld [vmem:[%s6557_s26 + $0x18] sm:$0xff]  }
0x1189   : > { %v4287_v22 = vpop.f32.mrb[31].mxu0 }
0x1193   : > { %v2554_v23 = vpop.xlane.xlu1 %2553 }
0x1194   : > { %v2555_v41 = vsub.f32 %v2546_v63, %v2554_v23 }
0x1196   : > { %v2556_v24 = vmul.f32 1.442695, %v2555_v41 }
0x1198   : > { %4674 = vpow2.f32 %v2556_v24  ;;  %v4612_v24 = vld [vmem:[%s6557_s26 + $0x20] sm:$0xff]  }
0x11a2   : > { %v4675_v25 = vpop.eup %4674 }
0x11a3   : > { %v2558_v26 = vsel %vm1829_vm4, %v4675_v25, 0.0 }
0x11a4   : > { %2559 = vadd.xlane.f32.xlu1 %v2558_v26  ;;  %v4614_v26 = vld [vmem:[%s6557_s26 + $0x30] sm:$0xff]  }
0x1205   : > { %v2666_v27 = vpop.xlane.xlu0 %2665 }
0x1206   : > { %v2667_v28 = vsub.f32 %v2658_v6, %v2666_v27  ;;  %v4615_v27 = vld [vmem:[%s6557_s26 + $0x38] sm:$0xff]  }
0x1208   : > { %v2668_v58 = vmul.f32 1.442695, %v2667_v28 }
0x120a   : > { %4676 = vpow2.f32 %v2668_v58 }
0x120d   : > { %v2784_v29 = vpop.xlane.xlu1 %2783 }
0x120e   : > { %v2785_v30 = vsub.f32 %v2776_v12, %v2784_v29  ;;  %v4609_v12 = vld [vmem:[%s6557_s26 + $0x8] sm:$0xff]  }
0x120f   : > { %4297 = vmatpush3.bf16.msra.mxu0 %v4609_v12  ;;  %v4651_v12 = vld [vmem:[#allocation34 + $0x28] sm:$0xff]  }
0x1210   : > { %v2786_v49 = vmul.f32 1.442695, %v2785_v30  ;;  %4298 = vmatprep.subr.bf16.mxu0 %v5348_v0 }
0x1212   : > { %4678 = vpow2.f32 %v2786_v49 }
0x1214   : > { %v4677_v9 = vpop.eup %4676 }
0x1215   : > { %v2670_v31 = vsel %vm1829_vm4, %v4677_v9, 0.0  ;;  %v2902_v34 = vpop.xlane.xlu1 %2901 }
0x1216   : > { %2671 = vadd.xlane.f32.xlu1 %v2670_v31  ;;  %v2903_v36 = vsub.f32 %v2894_v17, %v2902_v34  ;;  %v4610_v17 = vld [vmem:[%s6557_s26 + $0x10] sm:$0xff]  }
0x1217   : > { %4299 = vmatpush3.bf16.msra.mxu0 %v4610_v17  ;;  %v3881_v17 = vld [vmem:[%s6559_s13] ss:$0 sm:$0xff] }
0x1218   : > { %v2904_v37 = vmul.f32 1.442695, %v2903_v36  ;;  %4300 = vmatprep.subr.bf16.mxu0 %v5348_v0 }
0x121b   : > { %4301 = vmatpush3.bf16.msra.mxu0 %v4611_v20  ;;  %v3882_v20 = vld [vmem:[%s6560_s25] ss:$0 sm:$0xff]  ;;  %s1129_s25 = scalar_lea.vmem [#allocation36], %s3780_s14  ;;  %s5206_s14 = sshll.u32 %s5354_s0, 4  ;;  %s5207_s14 = int_to_ptr.vmem [resolvable:$false] %s5206_s14 }
0x121c   : > { %v4679_v32 = vpop.eup %4678  ;;  %4302 = vmatprep.subr.bf16.mxu0 %v5348_v0  ;;  %s3481_s11 = sshll.u32 %s1129_s25, 4  ;;  %s6368_s11 = int_to_ptr.vmem [resolvable:$true] %s3481_s11 }
0x121d   : > { %v2788_v33 = vsel %vm1829_vm4, %v4679_v32, 0.0  ;;  %s5202_s4 = scalar_lea.vmem %s6368_s11, 128  ;;  %p5209_p4 = scmp.lt.s32.totalorder %s6368_s11, %s5207_s14 }
0x121e   : > { %2789 = vadd.xlane.f32.xlu0 %v2788_v33  ;;  %p5203_p3 = scmp.ne.s32.totalorder %s6368_s11, %s5202_s4 }
0x121f   : > { %4303 = vmatpush3.bf16.msra.mxu0 %v4612_v24  ;;  %v4653_v24 = vld [vmem:[#allocation34 + $0x30] sm:$0xff]  }
0x1220   : > { %4304 = vmatprep.subr.bf16.mxu0 %v5348_v0  ;;  %p5204_p6 = pnand %p5203_p3, %p6567_p12 }
0x1222   : > { %p5205_p13 = pneg %p5204_p6 }
0x1227   : > { %1637 = vrot.lane.b32.xlu1 %v6138_v18, %s5351_s19 }
0x1231   : > { %v2560_v35 = vpop.xlane.xlu1 %2559 }
0x1232   : > { %4680 = vrcp.f32 %v2560_v35 }
0x1233   : > { %4682 = vpow2.f32 %v2904_v37 }
0x1234   : > { %1617 = vrot.lane.b32.xlu0 %v6138_v18, %s5350_s18 }
0x123c   : > { %v4681_v38 = vpop.eup %4680 }
0x123d   : > { %v2562_v39 = vmul.f32 %v4681_v38, %v4675_v25  ;;  %v4683_v43 = vpop.eup %4682  ;;  %v4613_v25 = vld [vmem:[%s6557_s26 + $0x28] sm:$0xff]  }
0x123e   : > { %v2906_v44 = vsel %vm1829_vm4, %v4683_v43, 0.0  ;;  %4305 = vmatpush3.bf16.msra.mxu0 %v4613_v25  ;;  %v4654_v25 = vld [vmem:[#allocation34 + $0x78] sm:$0xff]  }
0x123f   : > { %v2563_v40 = vpack.c.bf16 %v2562_v39, %v2562_v39  ;;  %4306 = vmatprep.subr.bf16.mxu0 %v5348_v0 }
0x1241   : > { %4255 = vmatmul.mubr.msk.bf16.vlgmr.msra.gmra.mrb[44].mxu1 %vm1829_vm4, %v2563_v40  ;;  %v4616_v40 = vld [vmem:[#allocation33] ss:$8 sps:$4 sm:$0xff]  }
0x1242   : > { %4266 = vmatprep.mubr.msk.bf16.mxu1 %vm5349_vm0, %v5348_v0  ;;  %4307 = vmatpush3.bf16.msra.mxu0 %v4614_v26  ;;  %v4655_v26 = vld [vmem:[#allocation34 + $0x38] sm:$0xff]  }
0x1243   : > { %4308 = vmatprep.subr.bf16.mxu0 %v5348_v0 }
0x1246   : > { %4309 = vmatpush3.bf16.msra.mxu0 %v4615_v27  ;;  %v3127_v27 = vlaneseq }
0x124b   : > { %2907 = vadd.xlane.f32.xlu1 %v2906_v44  ;;  %v4621_v44 = vld [vmem:[#allocation33 + $0x14] ss:$8 sps:$4 sm:$0xff]  }
0x125c   : > { %1657 = vrot.lane.b32.xlu1 %v6138_v18, %s5352_s17 }
0x12a3   : > { %v2672_v45 = vpop.xlane.xlu1 %2671 }
0x12a4   : > { %4684 = vrcp.f32 %v2672_v45  ;;  %v4619_v45 = vld [vmem:[#allocation33 + $0x10] ss:$8 sps:$4 sm:$0xff]  }
0x12a7   : > { %v1638_v46 = vpop.permute.xlu1 %1637 }
0x12a8   : > { %1641 = vst.msk [vmem:[#allocation5 + $0x8] sm:$0xf] %vm1582_vm1, %v1638_v46  ;;  %v4624_v46 = vld [vmem:[#allocation33 + $0x24] ss:$8 sps:$4 sm:$0xff]  }
0x12ab   : > { %v2790_v47 = vpop.xlane.xlu0 %2789 }
0x12ac   : > { %4686 = vrcp.f32 %v2790_v47  ;;  %v4622_v47 = vld [vmem:[#allocation33 + $0x20] ss:$8 sps:$4 sm:$0xff]  }
0x12ae   : > { %v4685_v48 = vpop.eup %4684 }
0x12af   : > { %v1618_v2 = vpop.permute.xlu0 %1617  ;;  %v2674_v50 = vmul.f32 %v4685_v48, %v4677_v9  ;;  %v2795_v53 = vld [vmem:[#allocation5 + $0x8] sm:$0xf] }
0x12b0   : > { %1621 = vst.msk [vmem:[#allocation5 + $0x4] sm:$0xf] %vm1582_vm1, %v1618_v2  ;;  %v2800_v55 = vsel %vm1846_vm3, %v2795_v53, 0  ;;  %v4630_v53 = vld [vmem:[#allocation33 + $0x44] ss:$8 sps:$4 sm:$0xff]  }
0x12b1   : > { %v2675_v54 = vpack.c.bf16 %v2674_v50, %v2674_v50 }
0x12b6   : > { %v4687_v18 = vpop.eup %4686 }
0x12b7   : > { %v2677_v51 = vld [vmem:[#allocation5 + $0x4] sm:$0xf]  ;;  %v2792_v56 = vmul.f32 %v4687_v18, %v4679_v32 }
0x12b8   : > { %v2682_v52 = vsel %vm1846_vm3, %v2677_v51, 0  ;;  %v4633_v18 = vld [vmem:[#allocation33 + $0x54] ss:$8 sps:$4 sm:$0xff]  }
0x12b9   : > { %4265 = vmatpush3.bf16.msra.mxu1 %v2682_v52  ;;  %v2793_v57 = vpack.c.bf16 %v2792_v56, %v2792_v56  ;;  %v4627_v52 = vld [vmem:[#allocation33 + $0x34] ss:$8 sps:$4 sm:$0xff]   ;;  %v4634_v56 = vld [vmem:[#allocation33 + $0x60] ss:$8 sps:$4 sm:$0xff]  }
0x12ba   : > { %4276 = vmatprep.subr.bf16.mxu1 %v5348_v0 }
0x12bc   : > { %4267 = vmatmul.mubr.msk.bf16.vlgmr.msra.gmra.mrb[48].mxu1 %vm1829_vm4, %v2675_v54  ;;  %v4628_v54 = vld [vmem:[#allocation33 + $0x40] ss:$8 sps:$4 sm:$0xff]  }
0x12bd   : > { %4277 = vmatpush3.bf16.msra.mxu1 %v2800_v55  ;;  %4278 = vmatprep.mubr.msk.bf16.mxu1 %vm5349_vm0, %v5348_v0  ;;  %v4631_v55 = vld [vmem:[#allocation33 + $0x50] ss:$8 sps:$4 sm:$0xff]  }
0x12be   : > { %4288 = vmatprep.subr.bf16.mxu1 %v5348_v0 }
0x12c4   : > { %4279 = vmatmul.mubr.msk.bf16.vlgmr.msra.gmra.mrb[52].mxu1 %vm1829_vm4, %v2793_v57  ;;  %v4636_v57 = vld [vmem:[#allocation33 + $0x64] ss:$8 sps:$4 sm:$0xff]  }
0x12c5   : > { %4290 = vmatprep.mubr.msk.bf16.mxu1 %vm5349_vm0, %v5348_v0  ;;  %v3872_v0 = vld [vmem:[%s6558_s30] ss:$0 sm:$0xff]  ;;  %s5208_s30 = scalar_lea.vmem %s5207_s14, 256 }
0x12c6   : > { %p5210_p9 = scmp.lt.s32.totalorder %s5208_s30, %s5202_s4 }
0x12c8   : > { %p5211_p0 = por %p5210_p9, %p5209_p4 }
0x12ca   : > { %p5212_p7 = pnand %p5211_p0, %p5205_p13 }
0x12d8   : > { %v2908_v59 = vpop.xlane.xlu1 %2907 }
0x12d9   : > { %4688 = vrcp.f32 %v2908_v59  ;;  %v4639_v59 = vld [vmem:[#allocation33 + $0x74] ss:$8 sps:$4 sm:$0xff]  }
0x12dc   : > { %v1658_v60 = vpop.permute.xlu1 %1657 }
0x12dd   : > { %1661 = vst.msk [vmem:[#allocation5 + $0xc] sm:$0xf] %vm1582_vm1, %v1658_v60  ;;  %v5353_v60 = vmov 0  }
0x12e3   : > { %v4689_v61 = vpop.eup %4688 }
0x12e4   : > { %v2910_v62 = vmul.f32 %v4689_v61, %v4683_v43  ;;  %v2913_v63 = vld [vmem:[#allocation5 + $0xc] sm:$0xf]  ;;  %v4618_v43 = vld [vmem:[#allocation33 + $0x4] ss:$8 sps:$4 sm:$0xff]  }
0x12e5   : > { %v2918_v1 = vsel %vm1846_vm3, %v2913_v63, 0  ;;  %v4637_v61 = vld [vmem:[#allocation33 + $0x70] ss:$8 sps:$4 sm:$0xff]   ;;  %v4641_v63 = vld [vmem:[#allocation34] sm:$0xff]  }
0x12e6   : > { %4289 = vmatpush3.bf16.msra.mxu1 %v2918_v1  ;;  %v2911_v3 = vpack.c.bf16 %v2910_v62, %v2910_v62  ;;  %v4640_v62 = vld [vmem:[#allocation34 + $0x40] sm:$0xff]   ;;  %v4642_v1 = vld [vmem:[#allocation34 + $0x48] sm:$0xff]  }
0x12e7   : > { %3217 = vmatprep.subr.bf16.mxu1 %v4618_v43  ;;  %4036 = vmatprep.subr.bf16.mxu0 %v4640_v62 }
0x12e9   : > { %4291 = vmatmul.mubr.msk.bf16.vlgmr.msra.gmra.mrb[56].mxu1 %vm1829_vm4, %v2911_v3  ;;  %v4643_v3 = vld [vmem:[#allocation34 + $0x8] sm:$0xff]  }
0x12ea   : > { %3218 = vmatpush1.bf16.msra.mxu1 %v4616_v40  ;;  %3249 = vmatprep.mubr.bf16.mxu1 %v5353_v60 }
0x12eb   : > { %3219 = vmatprep.subr.bf16.mxu1 %v4621_v44 }
0x12ee   : > { %3220 = vmatpush1.bf16.msra.mxu1 %v4619_v45 }
0x12ef   : > { %3221 = vmatprep.subr.bf16.mxu1 %v4624_v46 }
0x12f2   : > { %3222 = vmatpush1.bf16.msra.mxu1 %v4622_v47 }
0x12f3   : > { %3223 = vmatprep.subr.bf16.mxu1 %v4627_v52 }
0x1314   : > { %v2605_v4 = vpop.f32.mrb[44].mxu1 }
0x1315   : > { %v2611_v5 = vpack.c.bf16 %v2605_v4, %v2605_v4  ;;  %v4256_v6 = vpop.f32.mrb[45].mxu1  ;;  %v4644_v4 = vld [vmem:[#allocation34 + $0x50] sm:$0xff]  }
0x1316   : > { %v2608_v7 = vpop.f32.mrb[46].mxu1  ;;  %v4646_v6 = vld [vmem:[#allocation34 + $0x58] sm:$0xff]  }
0x1317   : > { %2612 = vst.msk [vmem:[#allocation6] sm:$0xf] %vm1582_vm1, %v2611_v5  ;;  %v4257_v8 = vpop.f32.mrb[47].mxu1  ;;  %v4645_v5 = vld [vmem:[#allocation34 + $0x10] sm:$0xff]   ;;  %v4647_v7 = vld [vmem:[#allocation34 + $0x18] sm:$0xff]  }
0x1318   : > { %v4648_v8 = vld [vmem:[#allocation34 + $0x60] sm:$0xff]  }
0x138f   : > { %v2718_v11 = vpop.f32.mrb[48].mxu1 }
0x1390   : > { %v3929_v13 = vpack.c.bf16 %v2718_v11, %v2718_v11  ;;  %v4268_v14 = vpop.f32.mrb[49].mxu1  ;;  %v4650_v11 = vld [vmem:[#allocation34 + $0x68] sm:$0xff]  }
0x1391   : > { %v2721_v15 = vpop.f32.mrb[50].mxu1 }
0x1392   : > { %2728 = vrot.lane.b32.xlu0 %v3929_v13, %s5352_s17  ;;  %v4269_v16 = vpop.f32.mrb[51].mxu1  ;;  %s6562_s17 = sld [smem:[#allocation76_spill]] }
0x1397   : > { %v2836_v19 = vpop.f32.mrb[52].mxu1 }
0x1398   : > { %v3930_v21 = vpack.c.bf16 %v2836_v19, %v2836_v19  ;;  %v4280_v22 = vpop.f32.mrb[53].mxu1  ;;  %v3899_v43 = vld [vmem:[%s6562_s17] ss:$0 sm:$0xff]  ;;  %s3467_s17 = scalar_lea.sflag [#allocation9], %s5991_s16 }
0x1399   : > { %v2839_v23 = vpop.f32.mrb[54].mxu1 }
0x139a   : > { %2846 = vrot.lane.b32.xlu1 %v3930_v21, %s5351_s19  ;;  %v4281_v41 = vpop.f32.mrb[55].mxu1  ;;  %s6366_s19 = scalar_lea.hbm %s6566_s12, %s3919_s10 }
0x139b   : > { %v4652_v41 = vld [vmem:[#allocation34 + $0x70] sm:$0xff]  }
0x13bc   : > { %v2954_v28 = vpop.f32.mrb[56].mxu1 }
0x13bd   : > { %v3931_v58 = vpack.c.bf16 %v2954_v28, %v2954_v28  ;;  %v4292_v29 = vpop.f32.mrb[57].mxu1  ;;  %v3128_v28 = vshrl.u32 %v3127_v27, 7 }
0x13be   : > { %v2957_v30 = vpop.f32.mrb[58].mxu1  ;;  %v3125_v29 = vld [vmem:[%s6561_s22] sm:$0x3] }
0x13bf   : > { %2964 = vrot.lane.b32.xlu0 %v3931_v58, %s5350_s18  ;;  %v4293_v49 = vpop.f32.mrb[59].mxu1  ;;  %v3129_v58 = vsub.s32 0, %v3128_v28  ;;  %v3133_v30 = vsub.s32 1, %v3128_v28  ;;  %s6564_s18 = sld [smem:[#allocation77_spill]] }
0x13c1   : > { %v3130_v49 = vrot.slane %v3125_v29, %v3129_v58 }
0x1404   : > { %v2729_v9 = vpop.permute.xlu0 %2728 }
0x1405   : > { %2731 = vst.msk [vmem:[#allocation6] sm:$0xf] %vm2011_vm5, %v2729_v9  ;;  %v3134_v9 = vrot.slane %v3125_v29, %v3133_v30 }
0x140c   : > { %v2847_v31 = vpop.permute.xlu1 %2846 }
0x140d   : > { %2849 = vst.msk [vmem:[#allocation6] sm:$0xf] %vm2130_vm6, %v2847_v31 }
0x1431   : > { %v2965_v32 = vpop.permute.xlu0 %2964 }
0x1432   : > { %2967 = vst.msk [vmem:[#allocation6] sm:$0xf] %vm2249_vm7, %v2965_v32 }
0x1439   : > { %v2968_v33 = vld [vmem:[#allocation6] sm:$0xf] }
0x143a   : > { %4311 = vmatmul.mubr.bf16.vlgmr.msra.gmra.mrb[32].mxu0 %v2968_v33 }
0x143b   : > { %4037 = vmatpush3.bf16.msra.mxu0 %v4641_v63 }
0x143c   : > { %4038 = vmatprep.subr.bf16.mxu0 %v4642_v1 }
0x143f   : > { %4039 = vmatpush3.bf16.msra.mxu0 %v4643_v3 }
0x1440   : > { %4040 = vmatprep.subr.bf16.mxu0 %v4644_v4 }
0x1443   : > { %4041 = vmatpush3.bf16.msra.mxu0 %v4645_v5 }
0x1444   : > { %4042 = vmatprep.subr.bf16.mxu0 %v4646_v6 }
0x1447   : > { %4043 = vmatpush3.bf16.msra.mxu0 %v4647_v7 }
0x1448   : > { %4044 = vmatprep.subr.bf16.mxu0 %v4648_v8 }
0x144b   : > { %4045 = vmatpush3.bf16.msra.mxu0 %v4649_v10 }
0x144c   : > { %4046 = vmatprep.subr.bf16.mxu0 %v4650_v11 }
0x144f   : > { %4047 = vmatpush3.bf16.msra.mxu0 %v4651_v12 }
0x1450   : > { %4048 = vmatprep.subr.bf16.mxu0 %v4652_v41 }
0x1453   : > { %4049 = vmatpush3.bf16.msra.mxu0 %v4653_v24 }
0x1454   : > { %4050 = vmatprep.subr.bf16.mxu0 %v4654_v25 }
0x1457   : > { %4051 = vmatpush3.bf16.msra.mxu0 %v4655_v26 }
0x150d   : > { %v3074_v34 = vpop.f32.mrb[32].mxu0 }
0x150e   : > { %v3075_v35 = vadd.f32 %v3872_v0, %v3074_v34  ;;  %v4312_v36 = vpop.f32.mrb[33].mxu0 }
0x150f   : > { %v3077_v37 = vpop.f32.mrb[34].mxu0 }
0x1510   : > { %v4313_v38 = vpop.f32.mrb[35].mxu0  ;;  %v3080_v39 = vadd.f32 %v3075_v35, %v6240_v42  ;;  %v4625_v42 = vld [vmem:[#allocation33 + $0x30] ss:$8 sps:$4 sm:$0xff]  }
0x1511   : > { %3224 = vmatpush1.bf16.msra.mxu1 %v4625_v42 }
0x1512   : > { %3081 = vadd.xlane.f32.xlu1 %v3080_v39  ;;  %3225 = vmatprep.subr.bf16.mxu1 %v4630_v53 }
0x1515   : > { %3226 = vmatpush1.bf16.msra.mxu1 %v4628_v54 }
0x1516   : > { %3227 = vmatprep.subr.bf16.mxu1 %v4633_v18 }
0x1519   : > { %3228 = vmatpush1.bf16.msra.mxu1 %v4631_v55 }
0x151a   : > { %3229 = vmatprep.subr.bf16.mxu1 %v4636_v57 }
0x151d   : > { %3230 = vmatpush1.bf16.msra.mxu1 %v4634_v56  ;;  %v3916_v56 = vld [vmem:[%s6564_s18] ss:$0 sm:$0xff] }
0x151e   : > { %3231 = vmatprep.subr.bf16.mxu1 %v4639_v59  ;;  %v3917_v59 = vld [vmem:[%s6565_s24] ss:$0 sm:$0xff] }
0x1521   : > { %3232 = vmatpush1.bf16.msra.mxu1 %v4637_v61 }
0x159f   : > { %v3082_v2 = vpop.xlane.xlu1 %3081 }
0x15a0   : > { %v3083_v48 = vmul.f32 0.0078125, %v3082_v2 }
0x15a2   : > { %v3084_v50 = vsub.f32 %v3080_v39, %v3083_v48 }
0x15a4   : > { %v3085_v51 = vmul.f32 %v3084_v50, %v3084_v50 }
0x15a6   : > { %3086 = vadd.xlane.f32.xlu0 %v3085_v51 }
0x1633   : > { %v3087_v13 = vpop.xlane.xlu0 %3086 }
0x1634   : > { %v3088_v14 = vmul.f32 0.0078125, %v3087_v13 }
0x1636   : > { %v3089_v15 = vadd.f32 1e-05, %v3088_v14 }
0x1638   : > { %4690 = vrsqrt.f32 %v3089_v15 }
0x1642   : > { %v4691_v16 = vpop.eup %4690 }
0x1643   : > { %v3091_v19 = vmul.f32 %v4691_v16, %v3084_v50 }
0x1645   : > { %v3099_v21 = vmul.f32 %v3881_v17, %v3091_v19 }
0x1647   : > { %v3107_v22 = vadd.f32 %v3882_v20, %v3099_v21 }
0x1649   : > { %v3108_v23 = vpack.c.bf16 %v3107_v22, %v3107_v22 }
0x164b   : > { %3250 = vmatmul.mubr.bf16.vlgmr.msra.gmra.mrb[60].mxu1 %v3108_v23 }
0x171e   : > { %v3251_v31 = vpop.f32.mrb[60].mxu1 }
0x171f   : > { %v3252_v32 = vadd.f32 %v3251_v31, %v3130_v49  ;;  %v3253_v33 = vpop.f32.mrb[61].mxu1 }
0x1720   : > { %v3254_v0 = vadd.f32 %v3253_v33, %v3134_v9  ;;  %v3255_v34 = vpop.f32.mrb[62].mxu1 }
0x1721   : > { %v3258_v35 = vmax.f32 %v3252_v32, 0.0  ;;  %v3256_v36 = vpop.f32.mrb[63].mxu1 }
0x1722   : > { %v3259_v37 = vmax.f32 %v3254_v0, 0.0 }
0x1723   : > { %v3260_v39 = vpack.c.bf16 %v3258_v35, %v3258_v35 }
0x1724   : > { %v3261_v38 = vpack.c.bf16 %v3259_v37, %v3259_v37 }
0x1726   : > { %3429 = vmatprep.mubr.bf16.mxu0 %v3261_v38 }
0x1727   : > { %3430 = vmatmul.mubr.bf16.vlgmr.msra.gmra.mrb[36].mxu0 %v3260_v39 }
0x17fa   : > { %v4052_v40 = vpop.f32.mrb[36].mxu0 }
0x17fb   : > { %v4053_v44 = vpop.f32.mrb[37].mxu0 }
0x17fc   : > { %v4054_v45 = vadd.f32 %v4053_v44, %v4052_v40  ;;  %v4055_v46 = vpop.f32.mrb[38].mxu0 }
0x17fd   : > { %v4056_v47 = vpop.f32.mrb[39].mxu0 }
0x17fe   : > { %v3432_v2 = vadd.f32 %v4054_v45, %v3899_v43 }
0x1800   : > { %v3437_v48 = vadd.f32 %v3432_v2, %v3107_v22 }
0x1802   : > { %3438 = vadd.xlane.f32.xlu0 %v3437_v48 }
0x188f   : > { %v3439_v50 = vpop.xlane.xlu0 %3438 }
0x1890   : > { %v3440_v51 = vmul.f32 0.0078125, %v3439_v50 }
0x1892   : > { %v3441_v52 = vsub.f32 %v3437_v48, %v3440_v51 }
0x1894   : > { %v3442_v42 = vmul.f32 %v3441_v52, %v3441_v52 }
0x1896   : > { %3443 = vadd.xlane.f32.xlu1 %v3442_v42 }
0x1923   : > { %v3444_v53 = vpop.xlane.xlu1 %3443 }
0x1924   : > { %v3445_v54 = vmul.f32 0.0078125, %v3444_v53 }
0x1926   : > { %v3446_v18 = vadd.f32 1e-05, %v3445_v54 }
0x1928   : > { %4692 = vrsqrt.f32 %v3446_v18 }
0x1932   : > { %v4693_v55 = vpop.eup %4692 }
0x1933   : > { %v3448_v57 = vmul.f32 %v4693_v55, %v3441_v52 }
0x1935   : > { %v3456_v60 = vmul.f32 %v3916_v56, %v3448_v57 }
0x1937   : > { %v3464_v61 = vadd.f32 %v3917_v59, %v3456_v60 }
0x1939   : > { %3465 = vst [vmem:[%s1129_s25] sm:$0xff] %v3464_v61 }
0x193a   : > { %5215 = shalt.err (!%p5212_p7)
}
0x193b   : > { %s5216_s16 = scalar_lea.hbm %s6366_s19, 128  ;;  %s5220_s13 = scalar_lea.hbm %s6566_s12, 256 }
0x193c   : > { %p5217_p11 = scmp.ne.s32.totalorder %s6366_s19, %s5216_s16  ;;  %p5221_p1 = scmp.lt.u32.totalorder %s6366_s19, %s6566_s12 }
0x193d   : > { %p5222_p5 = scmp.lt.u32.totalorder %s5220_s13, %s5216_s16  ;;  %p5224_p3 = scmp.lt.u32.totalorder %s5216_s16, %s6366_s19 }
0x193e   : > { %p5218_p2 = pnand %p5217_p11, %p6567_p12 }
0x193f   : > { %p5223_p8 = por %p5222_p5, %p5221_p1 }
0x1940   : > { %p5219_p10 = pneg %p5218_p2 }
0x1941   : > { %p5225_p6 = por %p5224_p3, %p5223_p8 }
0x1943   : > { %p5226_p13 = pnand %p5225_p6, %p5219_p10 }
0x1945   : > { %5229 = shalt.err (!%p5226_p13)
}
0x1946   : > { %4382 = dma.vmem_to_hbm [thread:$0]  (%p6567_p12), %s6368_s11, 128, %s6366_s19, %s3467_s17  }
0x1947 PF: > { %s3493_s25 = sand.u32 1, %s5304_s8   ;;  %p6568_p4 = scmp.ne.s32.totalorder %s6530_s20, 0 }
0x1948   : > { %p6569_p9 = scmp.ge.s32.totalorder %s5324_s6, 2  ;;  %s3494_s7 = scalar_lea.sflag [#allocation9], %s3493_s25 }
0x194a   : > { %p4441_p0 = pnand %p6569_p9, %p6568_p4 }
0x194c   : > { %5299 = dma.done.wait (!%p4441_p0), %s3494_s7, 128  }
0x194d   : > { %5301 = vsyncadd (!%p4441_p0), %s3494_s7, 4294967168  ;;  %s55_s6 = sadd.s32 1, %s5324_s6   ;;  %s6570_s8 = smov %s5308_s5 }
0x194e   : > { %p52_p7 = scmp.ge.s32.totalorder %s55_s6, 4   ;;  %s6571_s5 = smov %s5312_s9 }
0x194f   : > { %s6572_s9 = smov %s5912_s15  ;;  %s6573_s30 = smov %s5320_s3 }
0x1950   : > { %s6574_s3 = smov %s6576_s2  ;;  %54 = sbr.rel (!%p52_p7) target bundleno = 46 (0x2e), region = 283 }
0x1957   :  { %3499 = vsyncpa [#allocation8], 1 }
0x1958   :  { %3501 = vsyncpa [#allocation8 + $0x1], 1 }
0x1959   :  { %3502 = vsyncpa [#allocation11], 1 }
0x195a   :  { %3504 = vsyncpa [#allocation11 + $0x1], 1 }
0x195b   :  { %3505 = vsyncpa [#allocation14], 1 }
0x195c   :  { %3506 = vsyncpa [#allocation17], 1 }
0x195d   :  { %3507 = vsyncpa [#allocation20], 1 }
0x195e   :  { %3508 = vsyncpa [#allocation23], 1 }
0x195f   :  { %3509 = vsyncpa [#allocation26], 1 }
0x1960   :  { %3510 = vsyncpa [#allocation29], 1 }
0x1961   :  { %3511 = vsyncpa [#allocation32], 1 }
0x1962   :  { %3512 = vsyncpa [#allocation35], 1 }
0x1963   :  { %3513 = vsyncpa [#allocation9], 1 }
0x1964   :  { %3515 = vsyncpa [#allocation9 + $0x1], 1 }

</bundles_post_ra>
